<compile_context>
chip_gen: v7x
topology: tpu7x:2x2x1
jax: 0.10.0
libtpu: 0.0.40
codegen_flags: <defaults>
</compile_context>

<pallas_src>
import jax
import jax.numpy as jnp
from jax.experimental import pallas as pl
from jax.experimental.pallas import tpu as pltpu

# ----------------------------- model config ---------------------------------
VOCAB     = 64     # token_embeddings_size
D_MODEL   = 32
NUM_HEADS = 4
D_HEAD    = 8      # D_MODEL // NUM_HEADS
D_FF      = 64
FF_H1     = 32     # FeedForward.hidden_dim1
FF_H2     = 32     # FeedForward.hidden_dim2
OUT_DIM   = 3      # Linear.output_dim_hard
PICK_PAD  = 128    # lane-dense padded width for the picker output
EPS       = 1e-6
NEG_INF   = -1e9


# ----------------------------- in-kernel helpers ------------------------------
def _rmsnorm(x, w):
    """T5 LayerNorm: x * rsqrt(mean(x^2)+eps) * weight.  x:(M,D), w:(1,D)."""
    var = jnp.mean(x * x, axis=-1, keepdims=True)
    return x * jax.lax.rsqrt(var + EPS) * w


def _softmax_lastdim(s):
    s = s - jnp.max(s, axis=-1, keepdims=True)
    p = jnp.exp(s)
    return p * pl.reciprocal(jnp.sum(p, axis=-1, keepdims=True), approx=True)


def _attention(q2d, k2d, v2d, wo, pad_mask_hb, causal_mask, B, Lq, Lk):
    """Unscaled T5-style multi-head attention with all heads batched on the leading axis.

    q2d:(B*Lq,D)  k2d,v2d:(B*Lk,D)  wo:(D,D)
    pad_mask_hb:(H*B,1,Lk) additive mask (head-major, batch-minor ordering)
    causal_mask: None or (1,Lq,Lk) additive mask
    Returns output-projected context, shape (B*Lq, D).
    """
    q3 = q2d.reshape(B, Lq, D_MODEL)
    k3 = k2d.reshape(B, Lk, D_MODEL)
    v3 = v2d.reshape(B, Lk, D_MODEL)
    # Merge heads onto the batch axis (h-major): static lane slices + one leading-axis concat.
    qs = jnp.concatenate([q3[:, :, h * D_HEAD:(h + 1) * D_HEAD] for h in range(NUM_HEADS)], axis=0)
    ks = jnp.concatenate([k3[:, :, h * D_HEAD:(h + 1) * D_HEAD] for h in range(NUM_HEADS)], axis=0)
    vs = jnp.concatenate([v3[:, :, h * D_HEAD:(h + 1) * D_HEAD] for h in range(NUM_HEADS)], axis=0)

    s = jnp.einsum("bqd,bkd->bqk", qs, ks,
                   preferred_element_type=jnp.float32)                 # (H*B, Lq, Lk)
    s = s + pad_mask_hb
    if causal_mask is not None:
        s = s + causal_mask                                            # (1,Lq,Lk) broadcasts
    p = _softmax_lastdim(s)                                            # one softmax, all heads
    ctx = jnp.einsum("bqk,bkd->bqd", p, vs,
                     preferred_element_type=jnp.float32)               # (H*B, Lq, dh)
    # Un-merge heads back onto lanes, then a single output projection.
    ctx = jnp.concatenate([ctx[h * B:(h + 1) * B] for h in range(NUM_HEADS)], axis=-1)  # (B,Lq,D)
    return jnp.dot(ctx.reshape(B * Lq, D_MODEL), wo, preferred_element_type=jnp.float32)


# ----------------------------- fused kernel ----------------------------------
def _joint_kernel(xe_ref, xd_ref, sm_ref, tm_ref, lab_ref,
                  eln1_ref, ewqkv_ref, ewo_ref, eln2_ref, ewi_ref, ewff_ref, elnf_ref,
                  fw1_ref, fb1_ref, fw2_ref, fb2_ref, lw_ref, lb_ref,
                  dln1_ref, dwqkv_ref, dwo_ref, dlnx_ref, dcq_ref, dckv_ref, dco_ref,
                  dln2_ref, dwi_ref, dwff_ref, dlnf_ref, lm_ref,
                  pick_ref, loss_ref):
    """Single-pass: T5 encoder block + picker head + T5 decoder block + tied LM head + CE loss."""
    B, S = sm_ref.shape
    _, T = tm_ref.shape

    # ---- additive attention masks, built in-kernel from raw (B,S)/(B,T) masks ----
    enc_pad = ((1.0 - sm_ref[...]) * NEG_INF).reshape(B, 1, S)
    enc_pad_hb = jnp.concatenate([enc_pad] * NUM_HEADS, axis=0)          # (H*B,1,S)
    dec_pad = ((1.0 - tm_ref[...]) * NEG_INF).reshape(B, 1, T)
    dec_pad_hb = jnp.concatenate([dec_pad] * NUM_HEADS, axis=0)          # (H*B,1,T)
    row = jax.lax.broadcasted_iota(jnp.int32, (1, T, T), 1)
    col = jax.lax.broadcasted_iota(jnp.int32, (1, T, T), 2)
    causal = jnp.where(col <= row, 0.0, NEG_INF)                         # (1,T,T)

    # =========================== encoder block ===========================
    h = xe_ref[...]                                                      # (B*S, D)
    n = _rmsnorm(h, eln1_ref[...])
    qkv = jnp.dot(n, ewqkv_ref[...], preferred_element_type=jnp.float32)  # (B*S, 3D)
    h = h + _attention(qkv[:, :D_MODEL], qkv[:, D_MODEL:2 * D_MODEL], qkv[:, 2 * D_MODEL:],
                       ewo_ref[...], enc_pad_hb, None, B, S, S)
    n = _rmsnorm(h, eln2_ref[...])
    f = jnp.maximum(jnp.dot(n, ewi_ref[...], preferred_element_type=jnp.float32), 0.0)
    h = h + jnp.dot(f, ewff_ref[...], preferred_element_type=jnp.float32)
    enc = _rmsnorm(h, elnf_ref[...])                                     # encoder output, VMEM-resident

    # =========================== picker head =============================
    p = jnp.maximum(jnp.dot(enc, fw1_ref[...], preferred_element_type=jnp.float32) + fb1_ref[...], 0.0)
    p = jnp.maximum(jnp.dot(p, fw2_ref[...], preferred_element_type=jnp.float32) + fb2_ref[...], 0.0)
    pick_ref[...] = jnp.dot(p, lw_ref[...], preferred_element_type=jnp.float32) + lb_ref[...]

    # =========================== decoder block ===========================
    h = xd_ref[...]                                                      # (B*T, D)
    n = _rmsnorm(h, dln1_ref[...])
    qkv = jnp.dot(n, dwqkv_ref[...], preferred_element_type=jnp.float32)
    h = h + _attention(qkv[:, :D_MODEL], qkv[:, D_MODEL:2 * D_MODEL], qkv[:, 2 * D_MODEL:],
                       dwo_ref[...], dec_pad_hb, causal, B, T, T)
    n = _rmsnorm(h, dlnx_ref[...])
    q = jnp.dot(n, dcq_ref[...], preferred_element_type=jnp.float32)      # (B*T, D)
    kv = jnp.dot(enc, dckv_ref[...], preferred_element_type=jnp.float32)  # (B*S, 2D)
    h = h + _attention(q, kv[:, :D_MODEL], kv[:, D_MODEL:],
                       dco_ref[...], enc_pad_hb, None, B, T, S)
    n = _rmsnorm(h, dln2_ref[...])
    f = jnp.maximum(jnp.dot(n, dwi_ref[...], preferred_element_type=jnp.float32), 0.0)
    h = h + jnp.dot(f, dwff_ref[...], preferred_element_type=jnp.float32)
    dec = _rmsnorm(h, dlnf_ref[...]) * (D_MODEL ** -0.5)                  # T5 tied-head scale (free VPU mul)

    # ==================== tied LM head + cross entropy ====================
    logits = jnp.dot(dec, lm_ref[...], preferred_element_type=jnp.float32)  # (B*T, V)
    M, V = logits.shape
    mx = jnp.max(logits, axis=-1, keepdims=True)
    lse = jnp.log(jnp.sum(jnp.exp(logits - mx), axis=-1, keepdims=True)) + mx
    logp = logits - lse
    ids = jax.lax.broadcasted_iota(jnp.int32, (M, V), 1)
    lab = lab_ref[...]                                                   # (M,1) int32
    onehot = (ids == lab).astype(jnp.float32)
    picked = jnp.sum(logp * onehot, axis=-1, keepdims=True)              # (M,1)
    valid = (lab >= 0).astype(jnp.float32)                               # ignore_index=-100
    num = jnp.sum(picked * valid, axis=0, keepdims=True)                 # (1,1)
    den = jnp.sum(valid, axis=0, keepdims=True)                          # (1,1)
    loss_ref[...] = -num * pl.reciprocal(jnp.maximum(den, 1.0), approx=True)


# ----------------------------- glue (plain JAX) -------------------------------
def shift_right(labels):
    B = labels.shape[0]
    start = jnp.zeros((B, 1), labels.dtype)          # decoder_start_token_id = pad = 0
    shifted = jnp.concatenate([start, labels[:, :-1]], axis=1)
    return jnp.where(shifted == -100, 0, shifted)


def joint_model_forward(params, input_ids, src_mask, labels, tgt_mask):
    B, S = input_ids.shape
    T = labels.shape[1]

    # TODO(synk): embedding gathers kept in the wrapper (scalar-prefetch gather fusion is
    #             only worthwhile at much larger B*L).
    x_enc = jnp.take(params["emb"], input_ids, axis=0).reshape(B * S, D_MODEL)
    x_dec = jnp.take(params["emb"], shift_right(labels), axis=0).reshape(B * T, D_MODEL)
    labels2d = labels.reshape(B * T, 1).astype(jnp.int32)

    vmem = pl.BlockSpec(memory_space=pltpu.MemorySpace.VMEM)
    pick_pad, loss = pl.pallas_call(
        _joint_kernel,
        out_shape=(jax.ShapeDtypeStruct((B * S, PICK_PAD), jnp.float32),
                   jax.ShapeDtypeStruct((1, 1), jnp.float32)),
        in_specs=[vmem] * 30,
        out_specs=(vmem, vmem),
    )(x_enc, x_dec, src_mask, tgt_mask, labels2d,
      params["enc_ln1"], params["enc_wqkv"], params["enc_wo"], params["enc_ln2"],
      params["enc_wi"], params["enc_wo_ff"], params["enc_lnf"],
      params["ffn_w1"], params["ffn_b1"], params["ffn_w2"], params["ffn_b2"],
      params["lin_w_pad"], params["lin_b_pad"],
      params["dec_ln1"], params["dec_wqkv"], params["dec_wo"], params["dec_ln_x"],
      params["dec_cq"], params["dec_ckv"], params["dec_co"],
      params["dec_ln2"], params["dec_wi"], params["dec_wo_ff"], params["dec_lnf"],
      params["lm_wT"])

    logit_picker = pick_pad[:, :OUT_DIM].reshape(B, S, OUT_DIM)
    return logit_picker, loss[0, 0]


# ----------------------------- parameter init --------------------------------
def init_params(key):
    p = {}

    def nrm(k, shape, scale=0.05):
        return scale * jax.random.normal(k, shape, jnp.float32)

    keys = iter(jax.random.split(key, 64))
    p["emb"] = nrm(next(keys), (VOCAB, D_MODEL))

    for pre in ("enc_", "dec_"):
        p[pre + "ln1"] = jnp.ones((1, D_MODEL), jnp.float32)
        p[pre + "ln2"] = jnp.ones((1, D_MODEL), jnp.float32)
        p[pre + "lnf"] = jnp.ones((1, D_MODEL), jnp.float32)
        wq = nrm(next(keys), (D_MODEL, D_MODEL))
        wk = nrm(next(keys), (D_MODEL, D_MODEL))
        wv = nrm(next(keys), (D_MODEL, D_MODEL))
        p[pre + "wqkv"] = jnp.concatenate([wq, wk, wv], axis=1)   # fused QKV, pre-built at init
        p[pre + "wo"] = nrm(next(keys), (D_MODEL, D_MODEL))
        p[pre + "wi"] = nrm(next(keys), (D_MODEL, D_FF))
        p[pre + "wo_ff"] = nrm(next(keys), (D_FF, D_MODEL))
    # decoder cross-attention
    p["dec_ln_x"] = jnp.ones((1, D_MODEL), jnp.float32)
    p["dec_cq"] = nrm(next(keys), (D_MODEL, D_MODEL))
    ck = nrm(next(keys), (D_MODEL, D_MODEL))
    cv = nrm(next(keys), (D_MODEL, D_MODEL))
    p["dec_ckv"] = jnp.concatenate([ck, cv], axis=1)              # fused cross K/V, pre-built at init
    p["dec_co"] = nrm(next(keys), (D_MODEL, D_MODEL))

    # FeedForward picker + final Linear (with biases, like nn.Linear); lane-padded at init
    p["ffn_w1"] = nrm(next(keys), (D_MODEL, FF_H1))
    p["ffn_b1"] = nrm(next(keys), (1, FF_H1))
    p["ffn_w2"] = nrm(next(keys), (FF_H1, FF_H2))
    p["ffn_b2"] = nrm(next(keys), (1, FF_H2))
    lin_w = nrm(next(keys), (FF_H2, OUT_DIM))
    lin_b = nrm(next(keys), (1, OUT_DIM))
    p["lin_w_pad"] = jnp.zeros((FF_H2, PICK_PAD), jnp.float32).at[:, :OUT_DIM].set(lin_w)
    p["lin_b_pad"] = jnp.zeros((1, PICK_PAD), jnp.float32).at[:, :OUT_DIM].set(lin_b)

    # tied LM head: pre-transposed once at init; d_model**-0.5 scale applied in-kernel
    p["lm_wT"] = p["emb"].T
    return p


# ----------------------------- main ------------------------------------------
if __name__ == "__main__":
    key = jax.random.PRNGKey(0)
    k_par, k_ids, k_lab = jax.random.split(key, 3)

    B, S, T = 2, 8, 8
    params = init_params(k_par)

    input_ids = jax.random.randint(k_ids, (B, S), 1, VOCAB, dtype=jnp.int32)
    labels = jax.random.randint(k_lab, (B, T), 1, VOCAB, dtype=jnp.int32)
    src_mask = jnp.ones((B, S), jnp.float32).at[1, -2:].set(0.0)
    tgt_mask = jnp.ones((B, T), jnp.float32).at[1, -1:].set(0.0)

    fwd = jax.jit(joint_model_forward)
    logit_picker, loss = fwd(params, input_ids, src_mask, labels, tgt_mask)
    jax.block_until_ready((logit_picker, loss))

    assert logit_picker.shape == (B, S, OUT_DIM)
    assert loss.shape == ()
    assert bool(jnp.isfinite(loss)) and bool(jnp.all(jnp.isfinite(logit_picker)))
    print("KERNEL_OK")
</pallas_src>

<mosaic_0001>
module attributes {stable_mosaic.version = 11 : i64} {
  func.func @_joint_kernel(%arg0: memref<16x32xf32, #tpu.memory_space<vmem>>, %arg1: memref<16x32xf32, #tpu.memory_space<vmem>>, %arg2: memref<2x8xf32, #tpu.memory_space<vmem>>, %arg3: memref<2x8xf32, #tpu.memory_space<vmem>>, %arg4: memref<16x1xi32, #tpu.memory_space<vmem>>, %arg5: memref<1x32xf32, #tpu.memory_space<vmem>>, %arg6: memref<32x96xf32, #tpu.memory_space<vmem>>, %arg7: memref<32x32xf32, #tpu.memory_space<vmem>>, %arg8: memref<1x32xf32, #tpu.memory_space<vmem>>, %arg9: memref<32x64xf32, #tpu.memory_space<vmem>>, %arg10: memref<64x32xf32, #tpu.memory_space<vmem>>, %arg11: memref<1x32xf32, #tpu.memory_space<vmem>>, %arg12: memref<32x32xf32, #tpu.memory_space<vmem>>, %arg13: memref<1x32xf32, #tpu.memory_space<vmem>>, %arg14: memref<32x32xf32, #tpu.memory_space<vmem>>, %arg15: memref<1x32xf32, #tpu.memory_space<vmem>>, %arg16: memref<32x128xf32, #tpu.memory_space<vmem>>, %arg17: memref<1x128xf32, #tpu.memory_space<vmem>>, %arg18: memref<1x32xf32, #tpu.memory_space<vmem>>, %arg19: memref<32x96xf32, #tpu.memory_space<vmem>>, %arg20: memref<32x32xf32, #tpu.memory_space<vmem>>, %arg21: memref<1x32xf32, #tpu.memory_space<vmem>>, %arg22: memref<32x32xf32, #tpu.memory_space<vmem>>, %arg23: memref<32x64xf32, #tpu.memory_space<vmem>>, %arg24: memref<32x32xf32, #tpu.memory_space<vmem>>, %arg25: memref<1x32xf32, #tpu.memory_space<vmem>>, %arg26: memref<32x64xf32, #tpu.memory_space<vmem>>, %arg27: memref<64x32xf32, #tpu.memory_space<vmem>>, %arg28: memref<1x32xf32, #tpu.memory_space<vmem>>, %arg29: memref<32x64xf32, #tpu.memory_space<vmem>>, %arg30: memref<16x128xf32, #tpu.memory_space<vmem>>, %arg31: memref<1x1xf32, #tpu.memory_space<vmem>>) attributes {dimension_semantics = [], scalar_prefetch = 0 : i64, scratch_operands = 0 : i64, tpu.core_type = #tpu.core_type<tc>} {
    %c0 = arith.constant 0 : index
    %c0_0 = arith.constant 0 : index
    %0 = vector.load %arg2[%c0, %c0_0] : memref<2x8xf32, #tpu.memory_space<vmem>>, vector<2x8xf32>
    %cst = arith.constant 1.000000e+00 : f32
    %1 = vector.broadcast %cst : f32 to vector<2x8xf32>
    %2 = arith.subf %1, %0 : vector<2x8xf32>
    %cst_1 = arith.constant -1.000000e+09 : f32
    %3 = vector.broadcast %cst_1 : f32 to vector<2x8xf32>
    %4 = arith.mulf %2, %3 : vector<2x8xf32>
    %5 = vector.shape_cast %4 : vector<2x8xf32> to vector<2x1x8xf32>
    %6 = tpu.concatenate %5, %5, %5, %5 in 0 : vector<2x1x8xf32>, vector<2x1x8xf32>, vector<2x1x8xf32>, vector<2x1x8xf32> -> vector<8x1x8xf32>
    %c0_2 = arith.constant 0 : index
    %c0_3 = arith.constant 0 : index
    %7 = vector.load %arg3[%c0_2, %c0_3] : memref<2x8xf32, #tpu.memory_space<vmem>>, vector<2x8xf32>
    %cst_4 = arith.constant 1.000000e+00 : f32
    %8 = vector.broadcast %cst_4 : f32 to vector<2x8xf32>
    %9 = arith.subf %8, %7 : vector<2x8xf32>
    %cst_5 = arith.constant -1.000000e+09 : f32
    %10 = vector.broadcast %cst_5 : f32 to vector<2x8xf32>
    %11 = arith.mulf %9, %10 : vector<2x8xf32>
    %12 = vector.shape_cast %11 : vector<2x8xf32> to vector<2x1x8xf32>
    %13 = tpu.concatenate %12, %12, %12, %12 in 0 : vector<2x1x8xf32>, vector<2x1x8xf32>, vector<2x1x8xf32>, vector<2x1x8xf32> -> vector<8x1x8xf32>
    %14 = tpu.iota {dimensions = array<i32: 1>} : vector<1x8x8xi32>
    %15 = tpu.iota {dimensions = array<i32: 2>} : vector<1x8x8xi32>
    %16 = arith.cmpi sle, %15, %14 : vector<1x8x8xi32>
    %cst_6 = arith.constant 0.000000e+00 : f32
    %cst_7 = arith.constant -1.000000e+09 : f32
    %17 = vector.broadcast %cst_6 : f32 to vector<1x8x8xf32>
    %18 = vector.broadcast %cst_7 : f32 to vector<1x8x8xf32>
    %19 = arith.select %16, %17, %18 : vector<1x8x8xi1>, vector<1x8x8xf32>
    %c0_8 = arith.constant 0 : index
    %c0_9 = arith.constant 0 : index
    %20 = vector.load %arg0[%c0_8, %c0_9] : memref<16x32xf32, #tpu.memory_space<vmem>>, vector<16x32xf32>
    %c0_10 = arith.constant 0 : index
    %c0_11 = arith.constant 0 : index
    %21 = vector.load %arg5[%c0_10, %c0_11] : memref<1x32xf32, #tpu.memory_space<vmem>>, vector<1x32xf32>
    %22 = arith.mulf %20, %20 : vector<16x32xf32>
    %cst_12 = arith.constant dense<0.000000e+00> : vector<16xf32>
    %23 = vector.multi_reduction <add>, %22, %cst_12 [1] : vector<16x32xf32> to vector<16xf32>
    %24 = vector.shape_cast %23 : vector<16xf32> to vector<16x1xf32>
    %cst_13 = arith.constant 3.200000e+01 : f32
    %25 = vector.broadcast %cst_13 : f32 to vector<16x1xf32>
    %26 = arith.divf %24, %25 : vector<16x1xf32>
    %cst_14 = arith.constant 9.99999997E-7 : f32
    %27 = vector.broadcast %cst_14 : f32 to vector<16x1xf32>
    %28 = arith.addf %26, %27 : vector<16x1xf32>
    %29 = math.rsqrt %28 : vector<16x1xf32>
    %30 = vector.broadcast %29 : vector<16x1xf32> to vector<16x32xf32>
    %31 = arith.mulf %20, %30 : vector<16x32xf32>
    %32 = vector.broadcast %21 : vector<1x32xf32> to vector<16x32xf32>
    %33 = arith.mulf %31, %32 : vector<16x32xf32>
    %c0_15 = arith.constant 0 : index
    %c0_16 = arith.constant 0 : index
    %34 = vector.load %arg6[%c0_15, %c0_16] : memref<32x96xf32, #tpu.memory_space<vmem>>, vector<32x96xf32>
    %cst_17 = arith.constant dense<0.000000e+00> : vector<16x96xf32>
    %35 = tpu.matmul %33, %34, %cst_17 {dimension_numbers = #tpu.dot_dimension_numbers<[1], [0], [0], [1], [0, 0, 1, 1], [], []>} : vector<16x32xf32>, vector<32x96xf32>, vector<16x96xf32> -> vector<16x96xf32>
    %36 = vector.extract_strided_slice %35 {offsets = [0, 0], sizes = [16, 32], strides = [1, 1]} : vector<16x96xf32> to vector<16x32xf32>
    %37 = vector.extract_strided_slice %35 {offsets = [0, 32], sizes = [16, 32], strides = [1, 1]} : vector<16x96xf32> to vector<16x32xf32>
    %38 = vector.extract_strided_slice %35 {offsets = [0, 64], sizes = [16, 32], strides = [1, 1]} : vector<16x96xf32> to vector<16x32xf32>
    %c0_18 = arith.constant 0 : index
    %c0_19 = arith.constant 0 : index
    %39 = vector.load %arg7[%c0_18, %c0_19] : memref<32x32xf32, #tpu.memory_space<vmem>>, vector<32x32xf32>
    %40 = vector.shape_cast %36 : vector<16x32xf32> to vector<2x8x32xf32>
    %41 = vector.shape_cast %37 : vector<16x32xf32> to vector<2x8x32xf32>
    %42 = vector.shape_cast %38 : vector<16x32xf32> to vector<2x8x32xf32>
    %43 = vector.extract_strided_slice %40 {offsets = [0, 0, 0], sizes = [2, 8, 8], strides = [1, 1, 1]} : vector<2x8x32xf32> to vector<2x8x8xf32>
    %44 = vector.extract_strided_slice %40 {offsets = [0, 0, 8], sizes = [2, 8, 8], strides = [1, 1, 1]} : vector<2x8x32xf32> to vector<2x8x8xf32>
    %45 = vector.extract_strided_slice %40 {offsets = [0, 0, 16], sizes = [2, 8, 8], strides = [1, 1, 1]} : vector<2x8x32xf32> to vector<2x8x8xf32>
    %46 = vector.extract_strided_slice %40 {offsets = [0, 0, 24], sizes = [2, 8, 8], strides = [1, 1, 1]} : vector<2x8x32xf32> to vector<2x8x8xf32>
    %47 = tpu.concatenate %43, %44, %45, %46 in 0 : vector<2x8x8xf32>, vector<2x8x8xf32>, vector<2x8x8xf32>, vector<2x8x8xf32> -> vector<8x8x8xf32>
    %48 = vector.extract_strided_slice %41 {offsets = [0, 0, 0], sizes = [2, 8, 8], strides = [1, 1, 1]} : vector<2x8x32xf32> to vector<2x8x8xf32>
    %49 = vector.extract_strided_slice %41 {offsets = [0, 0, 8], sizes = [2, 8, 8], strides = [1, 1, 1]} : vector<2x8x32xf32> to vector<2x8x8xf32>
    %50 = vector.extract_strided_slice %41 {offsets = [0, 0, 16], sizes = [2, 8, 8], strides = [1, 1, 1]} : vector<2x8x32xf32> to vector<2x8x8xf32>
    %51 = vector.extract_strided_slice %41 {offsets = [0, 0, 24], sizes = [2, 8, 8], strides = [1, 1, 1]} : vector<2x8x32xf32> to vector<2x8x8xf32>
    %52 = tpu.concatenate %48, %49, %50, %51 in 0 : vector<2x8x8xf32>, vector<2x8x8xf32>, vector<2x8x8xf32>, vector<2x8x8xf32> -> vector<8x8x8xf32>
    %53 = vector.extract_strided_slice %42 {offsets = [0, 0, 0], sizes = [2, 8, 8], strides = [1, 1, 1]} : vector<2x8x32xf32> to vector<2x8x8xf32>
    %54 = vector.extract_strided_slice %42 {offsets = [0, 0, 8], sizes = [2, 8, 8], strides = [1, 1, 1]} : vector<2x8x32xf32> to vector<2x8x8xf32>
    %55 = vector.extract_strided_slice %42 {offsets = [0, 0, 16], sizes = [2, 8, 8], strides = [1, 1, 1]} : vector<2x8x32xf32> to vector<2x8x8xf32>
    %56 = vector.extract_strided_slice %42 {offsets = [0, 0, 24], sizes = [2, 8, 8], strides = [1, 1, 1]} : vector<2x8x32xf32> to vector<2x8x8xf32>
    %57 = tpu.concatenate %53, %54, %55, %56 in 0 : vector<2x8x8xf32>, vector<2x8x8xf32>, vector<2x8x8xf32>, vector<2x8x8xf32> -> vector<8x8x8xf32>
    "tpu.trace_start"() <{level = 10 : i32, message = "bqd,bkd->bqk"}> : () -> ()
    %cst_20 = arith.constant dense<0.000000e+00> : vector<8x8x8xf32>
    %58 = tpu.matmul %47, %52, %cst_20 {dimension_numbers = #tpu.dot_dimension_numbers<[2], [2], [1], [1], [0, 0, 0, 1, 1, 1], [0], [0]>} : vector<8x8x8xf32>, vector<8x8x8xf32>, vector<8x8x8xf32> -> vector<8x8x8xf32>
    "tpu.trace_stop"() : () -> ()
    %59 = vector.broadcast %6 : vector<8x1x8xf32> to vector<8x8x8xf32>
    %60 = arith.addf %58, %59 : vector<8x8x8xf32>
    %cst_21 = arith.constant dense<0xFF800000> : vector<8x8xf32>
    %61 = vector.multi_reduction <maximumf>, %60, %cst_21 [2] : vector<8x8x8xf32> to vector<8x8xf32>
    %62 = vector.shape_cast %61 : vector<8x8xf32> to vector<8x8x1xf32>
    %63 = vector.broadcast %62 : vector<8x8x1xf32> to vector<8x8x8xf32>
    %64 = arith.subf %60, %63 : vector<8x8x8xf32>
    %65 = math.exp %64 : vector<8x8x8xf32>
    %cst_22 = arith.constant dense<0.000000e+00> : vector<8x8xf32>
    %66 = vector.multi_reduction <add>, %65, %cst_22 [2] : vector<8x8x8xf32> to vector<8x8xf32>
    %67 = vector.shape_cast %66 : vector<8x8xf32> to vector<8x8x1xf32>
    %68 = tpu.reciprocal %67 {approx = true} : vector<8x8x1xf32> -> vector<8x8x1xf32>
    %69 = vector.broadcast %68 : vector<8x8x1xf32> to vector<8x8x8xf32>
    %70 = arith.mulf %65, %69 : vector<8x8x8xf32>
    "tpu.trace_start"() <{level = 10 : i32, message = "bqk,bkd->bqd"}> : () -> ()
    %cst_23 = arith.constant dense<0.000000e+00> : vector<8x8x8xf32>
    %71 = tpu.matmul %70, %57, %cst_23 {dimension_numbers = #tpu.dot_dimension_numbers<[2], [1], [1], [2], [0, 0, 0, 1, 1, 2], [0], [0]>} : vector<8x8x8xf32>, vector<8x8x8xf32>, vector<8x8x8xf32> -> vector<8x8x8xf32>
    "tpu.trace_stop"() : () -> ()
    %72 = vector.extract_strided_slice %71 {offsets = [0, 0, 0], sizes = [2, 8, 8], strides = [1, 1, 1]} : vector<8x8x8xf32> to vector<2x8x8xf32>
    %73 = vector.extract_strided_slice %71 {offsets = [2, 0, 0], sizes = [2, 8, 8], strides = [1, 1, 1]} : vector<8x8x8xf32> to vector<2x8x8xf32>
    %74 = vector.extract_strided_slice %71 {offsets = [4, 0, 0], sizes = [2, 8, 8], strides = [1, 1, 1]} : vector<8x8x8xf32> to vector<2x8x8xf32>
    %75 = vector.extract_strided_slice %71 {offsets = [6, 0, 0], sizes = [2, 8, 8], strides = [1, 1, 1]} : vector<8x8x8xf32> to vector<2x8x8xf32>
    %76 = tpu.concatenate %72, %73, %74, %75 in 2 : vector<2x8x8xf32>, vector<2x8x8xf32>, vector<2x8x8xf32>, vector<2x8x8xf32> -> vector<2x8x32xf32>
    %77 = vector.shape_cast %76 : vector<2x8x32xf32> to vector<16x32xf32>
    %cst_24 = arith.constant dense<0.000000e+00> : vector<16x32xf32>
    %78 = tpu.matmul %77, %39, %cst_24 {dimension_numbers = #tpu.dot_dimension_numbers<[1], [0], [0], [1], [0, 0, 1, 1], [], []>} : vector<16x32xf32>, vector<32x32xf32>, vector<16x32xf32> -> vector<16x32xf32>
    %79 = arith.addf %20, %78 : vector<16x32xf32>
    %c0_25 = arith.constant 0 : index
    %c0_26 = arith.constant 0 : index
    %80 = vector.load %arg8[%c0_25, %c0_26] : memref<1x32xf32, #tpu.memory_space<vmem>>, vector<1x32xf32>
    %81 = arith.mulf %79, %79 : vector<16x32xf32>
    %cst_27 = arith.constant dense<0.000000e+00> : vector<16xf32>
    %82 = vector.multi_reduction <add>, %81, %cst_27 [1] : vector<16x32xf32> to vector<16xf32>
    %83 = vector.shape_cast %82 : vector<16xf32> to vector<16x1xf32>
    %cst_28 = arith.constant 3.200000e+01 : f32
    %84 = vector.broadcast %cst_28 : f32 to vector<16x1xf32>
    %85 = arith.divf %83, %84 : vector<16x1xf32>
    %cst_29 = arith.constant 9.99999997E-7 : f32
    %86 = vector.broadcast %cst_29 : f32 to vector<16x1xf32>
    %87 = arith.addf %85, %86 : vector<16x1xf32>
    %88 = math.rsqrt %87 : vector<16x1xf32>
    %89 = vector.broadcast %88 : vector<16x1xf32> to vector<16x32xf32>
    %90 = arith.mulf %79, %89 : vector<16x32xf32>
    %91 = vector.broadcast %80 : vector<1x32xf32> to vector<16x32xf32>
    %92 = arith.mulf %90, %91 : vector<16x32xf32>
    %c0_30 = arith.constant 0 : index
    %c0_31 = arith.constant 0 : index
    %93 = vector.load %arg9[%c0_30, %c0_31] : memref<32x64xf32, #tpu.memory_space<vmem>>, vector<32x64xf32>
    %cst_32 = arith.constant dense<0.000000e+00> : vector<16x64xf32>
    %94 = tpu.matmul %92, %93, %cst_32 {dimension_numbers = #tpu.dot_dimension_numbers<[1], [0], [0], [1], [0, 0, 1, 1], [], []>} : vector<16x32xf32>, vector<32x64xf32>, vector<16x64xf32> -> vector<16x64xf32>
    %cst_33 = arith.constant 0.000000e+00 : f32
    %95 = vector.broadcast %cst_33 : f32 to vector<16x64xf32>
    %96 = arith.maximumf %94, %95 : vector<16x64xf32>
    %c0_34 = arith.constant 0 : index
    %c0_35 = arith.constant 0 : index
    %97 = vector.load %arg10[%c0_34, %c0_35] : memref<64x32xf32, #tpu.memory_space<vmem>>, vector<64x32xf32>
    %cst_36 = arith.constant dense<0.000000e+00> : vector<16x32xf32>
    %98 = tpu.matmul %96, %97, %cst_36 {dimension_numbers = #tpu.dot_dimension_numbers<[1], [0], [0], [1], [0, 0, 1, 1], [], []>} : vector<16x64xf32>, vector<64x32xf32>, vector<16x32xf32> -> vector<16x32xf32>
    %99 = arith.addf %79, %98 : vector<16x32xf32>
    %c0_37 = arith.constant 0 : index
    %c0_38 = arith.constant 0 : index
    %100 = vector.load %arg11[%c0_37, %c0_38] : memref<1x32xf32, #tpu.memory_space<vmem>>, vector<1x32xf32>
    %101 = arith.mulf %99, %99 : vector<16x32xf32>
    %cst_39 = arith.constant dense<0.000000e+00> : vector<16xf32>
    %102 = vector.multi_reduction <add>, %101, %cst_39 [1] : vector<16x32xf32> to vector<16xf32>
    %103 = vector.shape_cast %102 : vector<16xf32> to vector<16x1xf32>
    %cst_40 = arith.constant 3.200000e+01 : f32
    %104 = vector.broadcast %cst_40 : f32 to vector<16x1xf32>
    %105 = arith.divf %103, %104 : vector<16x1xf32>
    %cst_41 = arith.constant 9.99999997E-7 : f32
    %106 = vector.broadcast %cst_41 : f32 to vector<16x1xf32>
    %107 = arith.addf %105, %106 : vector<16x1xf32>
    %108 = math.rsqrt %107 : vector<16x1xf32>
    %109 = vector.broadcast %108 : vector<16x1xf32> to vector<16x32xf32>
    %110 = arith.mulf %99, %109 : vector<16x32xf32>
    %111 = vector.broadcast %100 : vector<1x32xf32> to vector<16x32xf32>
    %112 = arith.mulf %110, %111 : vector<16x32xf32>
    %c0_42 = arith.constant 0 : index
    %c0_43 = arith.constant 0 : index
    %113 = vector.load %arg12[%c0_42, %c0_43] : memref<32x32xf32, #tpu.memory_space<vmem>>, vector<32x32xf32>
    %cst_44 = arith.constant dense<0.000000e+00> : vector<16x32xf32>
    %114 = tpu.matmul %112, %113, %cst_44 {dimension_numbers = #tpu.dot_dimension_numbers<[1], [0], [0], [1], [0, 0, 1, 1], [], []>} : vector<16x32xf32>, vector<32x32xf32>, vector<16x32xf32> -> vector<16x32xf32>
    %c0_45 = arith.constant 0 : index
    %c0_46 = arith.constant 0 : index
    %115 = vector.load %arg13[%c0_45, %c0_46] : memref<1x32xf32, #tpu.memory_space<vmem>>, vector<1x32xf32>
    %116 = vector.broadcast %115 : vector<1x32xf32> to vector<16x32xf32>
    %117 = arith.addf %114, %116 : vector<16x32xf32>
    %cst_47 = arith.constant 0.000000e+00 : f32
    %118 = vector.broadcast %cst_47 : f32 to vector<16x32xf32>
    %119 = arith.maximumf %117, %118 : vector<16x32xf32>
    %c0_48 = arith.constant 0 : index
    %c0_49 = arith.constant 0 : index
    %120 = vector.load %arg14[%c0_48, %c0_49] : memref<32x32xf32, #tpu.memory_space<vmem>>, vector<32x32xf32>
    %cst_50 = arith.constant dense<0.000000e+00> : vector<16x32xf32>
    %121 = tpu.matmul %119, %120, %cst_50 {dimension_numbers = #tpu.dot_dimension_numbers<[1], [0], [0], [1], [0, 0, 1, 1], [], []>} : vector<16x32xf32>, vector<32x32xf32>, vector<16x32xf32> -> vector<16x32xf32>
    %c0_51 = arith.constant 0 : index
    %c0_52 = arith.constant 0 : index
    %122 = vector.load %arg15[%c0_51, %c0_52] : memref<1x32xf32, #tpu.memory_space<vmem>>, vector<1x32xf32>
    %123 = vector.broadcast %122 : vector<1x32xf32> to vector<16x32xf32>
    %124 = arith.addf %121, %123 : vector<16x32xf32>
    %cst_53 = arith.constant 0.000000e+00 : f32
    %125 = vector.broadcast %cst_53 : f32 to vector<16x32xf32>
    %126 = arith.maximumf %124, %125 : vector<16x32xf32>
    %c0_54 = arith.constant 0 : index
    %c0_55 = arith.constant 0 : index
    %127 = vector.load %arg16[%c0_54, %c0_55] : memref<32x128xf32, #tpu.memory_space<vmem>>, vector<32x128xf32>
    %cst_56 = arith.constant dense<0.000000e+00> : vector<16x128xf32>
    %128 = tpu.matmul %126, %127, %cst_56 {dimension_numbers = #tpu.dot_dimension_numbers<[1], [0], [0], [1], [0, 0, 1, 1], [], []>} : vector<16x32xf32>, vector<32x128xf32>, vector<16x128xf32> -> vector<16x128xf32>
    %c0_57 = arith.constant 0 : index
    %c0_58 = arith.constant 0 : index
    %129 = vector.load %arg17[%c0_57, %c0_58] : memref<1x128xf32, #tpu.memory_space<vmem>>, vector<1x128xf32>
    %130 = vector.broadcast %129 : vector<1x128xf32> to vector<16x128xf32>
    %131 = arith.addf %128, %130 : vector<16x128xf32>
    %c0_59 = arith.constant 0 : index
    %c0_60 = arith.constant 0 : index
    %132 = vector.load %arg30[%c0_59, %c0_60] : memref<16x128xf32, #tpu.memory_space<vmem>>, vector<16x128xf32>
    tpu.vector_store %arg30[%c0_59, %c0_60], %131 {strides = array<i32>} : memref<16x128xf32, #tpu.memory_space<vmem>>, vector<16x128xf32>,
    %c0_61 = arith.constant 0 : index
    %c0_62 = arith.constant 0 : index
    %133 = vector.load %arg1[%c0_61, %c0_62] : memref<16x32xf32, #tpu.memory_space<vmem>>, vector<16x32xf32>
    %c0_63 = arith.constant 0 : index
    %c0_64 = arith.constant 0 : index
    %134 = vector.load %arg18[%c0_63, %c0_64] : memref<1x32xf32, #tpu.memory_space<vmem>>, vector<1x32xf32>
    %135 = arith.mulf %133, %133 : vector<16x32xf32>
    %cst_65 = arith.constant dense<0.000000e+00> : vector<16xf32>
    %136 = vector.multi_reduction <add>, %135, %cst_65 [1] : vector<16x32xf32> to vector<16xf32>
    %137 = vector.shape_cast %136 : vector<16xf32> to vector<16x1xf32>
    %cst_66 = arith.constant 3.200000e+01 : f32
    %138 = vector.broadcast %cst_66 : f32 to vector<16x1xf32>
    %139 = arith.divf %137, %138 : vector<16x1xf32>
    %cst_67 = arith.constant 9.99999997E-7 : f32
    %140 = vector.broadcast %cst_67 : f32 to vector<16x1xf32>
    %141 = arith.addf %139, %140 : vector<16x1xf32>
    %142 = math.rsqrt %141 : vector<16x1xf32>
    %143 = vector.broadcast %142 : vector<16x1xf32> to vector<16x32xf32>
    %144 = arith.mulf %133, %143 : vector<16x32xf32>
    %145 = vector.broadcast %134 : vector<1x32xf32> to vector<16x32xf32>
    %146 = arith.mulf %144, %145 : vector<16x32xf32>
    %c0_68 = arith.constant 0 : index
    %c0_69 = arith.constant 0 : index
    %147 = vector.load %arg19[%c0_68, %c0_69] : memref<32x96xf32, #tpu.memory_space<vmem>>, vector<32x96xf32>
    %cst_70 = arith.constant dense<0.000000e+00> : vector<16x96xf32>
    %148 = tpu.matmul %146, %147, %cst_70 {dimension_numbers = #tpu.dot_dimension_numbers<[1], [0], [0], [1], [0, 0, 1, 1], [], []>} : vector<16x32xf32>, vector<32x96xf32>, vector<16x96xf32> -> vector<16x96xf32>
    %149 = vector.extract_strided_slice %148 {offsets = [0, 0], sizes = [16, 32], strides = [1, 1]} : vector<16x96xf32> to vector<16x32xf32>
    %150 = vector.extract_strided_slice %148 {offsets = [0, 32], sizes = [16, 32], strides = [1, 1]} : vector<16x96xf32> to vector<16x32xf32>
    %151 = vector.extract_strided_slice %148 {offsets = [0, 64], sizes = [16, 32], strides = [1, 1]} : vector<16x96xf32> to vector<16x32xf32>
    %c0_71 = arith.constant 0 : index
    %c0_72 = arith.constant 0 : index
    %152 = vector.load %arg20[%c0_71, %c0_72] : memref<32x32xf32, #tpu.memory_space<vmem>>, vector<32x32xf32>
    %153 = vector.shape_cast %149 : vector<16x32xf32> to vector<2x8x32xf32>
    %154 = vector.shape_cast %150 : vector<16x32xf32> to vector<2x8x32xf32>
    %155 = vector.shape_cast %151 : vector<16x32xf32> to vector<2x8x32xf32>
    %156 = vector.extract_strided_slice %153 {offsets = [0, 0, 0], sizes = [2, 8, 8], strides = [1, 1, 1]} : vector<2x8x32xf32> to vector<2x8x8xf32>
    %157 = vector.extract_strided_slice %153 {offsets = [0, 0, 8], sizes = [2, 8, 8], strides = [1, 1, 1]} : vector<2x8x32xf32> to vector<2x8x8xf32>
    %158 = vector.extract_strided_slice %153 {offsets = [0, 0, 16], sizes = [2, 8, 8], strides = [1, 1, 1]} : vector<2x8x32xf32> to vector<2x8x8xf32>
    %159 = vector.extract_strided_slice %153 {offsets = [0, 0, 24], sizes = [2, 8, 8], strides = [1, 1, 1]} : vector<2x8x32xf32> to vector<2x8x8xf32>
    %160 = tpu.concatenate %156, %157, %158, %159 in 0 : vector<2x8x8xf32>, vector<2x8x8xf32>, vector<2x8x8xf32>, vector<2x8x8xf32> -> vector<8x8x8xf32>
    %161 = vector.extract_strided_slice %154 {offsets = [0, 0, 0], sizes = [2, 8, 8], strides = [1, 1, 1]} : vector<2x8x32xf32> to vector<2x8x8xf32>
    %162 = vector.extract_strided_slice %154 {offsets = [0, 0, 8], sizes = [2, 8, 8], strides = [1, 1, 1]} : vector<2x8x32xf32> to vector<2x8x8xf32>
    %163 = vector.extract_strided_slice %154 {offsets = [0, 0, 16], sizes = [2, 8, 8], strides = [1, 1, 1]} : vector<2x8x32xf32> to vector<2x8x8xf32>
    %164 = vector.extract_strided_slice %154 {offsets = [0, 0, 24], sizes = [2, 8, 8], strides = [1, 1, 1]} : vector<2x8x32xf32> to vector<2x8x8xf32>
    %165 = tpu.concatenate %161, %162, %163, %164 in 0 : vector<2x8x8xf32>, vector<2x8x8xf32>, vector<2x8x8xf32>, vector<2x8x8xf32> -> vector<8x8x8xf32>
    %166 = vector.extract_strided_slice %155 {offsets = [0, 0, 0], sizes = [2, 8, 8], strides = [1, 1, 1]} : vector<2x8x32xf32> to vector<2x8x8xf32>
    %167 = vector.extract_strided_slice %155 {offsets = [0, 0, 8], sizes = [2, 8, 8], strides = [1, 1, 1]} : vector<2x8x32xf32> to vector<2x8x8xf32>
    %168 = vector.extract_strided_slice %155 {offsets = [0, 0, 16], sizes = [2, 8, 8], strides = [1, 1, 1]} : vector<2x8x32xf32> to vector<2x8x8xf32>
    %169 = vector.extract_strided_slice %155 {offsets = [0, 0, 24], sizes = [2, 8, 8], strides = [1, 1, 1]} : vector<2x8x32xf32> to vector<2x8x8xf32>
    %170 = tpu.concatenate %166, %167, %168, %169 in 0 : vector<2x8x8xf32>, vector<2x8x8xf32>, vector<2x8x8xf32>, vector<2x8x8xf32> -> vector<8x8x8xf32>
    "tpu.trace_start"() <{level = 10 : i32, message = "bqd,bkd->bqk"}> : () -> ()
    %cst_73 = arith.constant dense<0.000000e+00> : vector<8x8x8xf32>
    %171 = tpu.matmul %160, %165, %cst_73 {dimension_numbers = #tpu.dot_dimension_numbers<[2], [2], [1], [1], [0, 0, 0, 1, 1, 1], [0], [0]>} : vector<8x8x8xf32>, vector<8x8x8xf32>, vector<8x8x8xf32> -> vector<8x8x8xf32>
    "tpu.trace_stop"() : () -> ()
    %172 = vector.broadcast %13 : vector<8x1x8xf32> to vector<8x8x8xf32>
    %173 = arith.addf %171, %172 : vector<8x8x8xf32>
    %174 = vector.broadcast %19 : vector<1x8x8xf32> to vector<8x8x8xf32>
    %175 = arith.addf %173, %174 : vector<8x8x8xf32>
    %cst_74 = arith.constant dense<0xFF800000> : vector<8x8xf32>
    %176 = vector.multi_reduction <maximumf>, %175, %cst_74 [2] : vector<8x8x8xf32> to vector<8x8xf32>
    %177 = vector.shape_cast %176 : vector<8x8xf32> to vector<8x8x1xf32>
    %178 = vector.broadcast %177 : vector<8x8x1xf32> to vector<8x8x8xf32>
    %179 = arith.subf %175, %178 : vector<8x8x8xf32>
    %180 = math.exp %179 : vector<8x8x8xf32>
    %cst_75 = arith.constant dense<0.000000e+00> : vector<8x8xf32>
    %181 = vector.multi_reduction <add>, %180, %cst_75 [2] : vector<8x8x8xf32> to vector<8x8xf32>
    %182 = vector.shape_cast %181 : vector<8x8xf32> to vector<8x8x1xf32>
    %183 = tpu.reciprocal %182 {approx = true} : vector<8x8x1xf32> -> vector<8x8x1xf32>
    %184 = vector.broadcast %183 : vector<8x8x1xf32> to vector<8x8x8xf32>
    %185 = arith.mulf %180, %184 : vector<8x8x8xf32>
    "tpu.trace_start"() <{level = 10 : i32, message = "bqk,bkd->bqd"}> : () -> ()
    %cst_76 = arith.constant dense<0.000000e+00> : vector<8x8x8xf32>
    %186 = tpu.matmul %185, %170, %cst_76 {dimension_numbers = #tpu.dot_dimension_numbers<[2], [1], [1], [2], [0, 0, 0, 1, 1, 2], [0], [0]>} : vector<8x8x8xf32>, vector<8x8x8xf32>, vector<8x8x8xf32> -> vector<8x8x8xf32>
    "tpu.trace_stop"() : () -> ()
    %187 = vector.extract_strided_slice %186 {offsets = [0, 0, 0], sizes = [2, 8, 8], strides = [1, 1, 1]} : vector<8x8x8xf32> to vector<2x8x8xf32>
    %188 = vector.extract_strided_slice %186 {offsets = [2, 0, 0], sizes = [2, 8, 8], strides = [1, 1, 1]} : vector<8x8x8xf32> to vector<2x8x8xf32>
    %189 = vector.extract_strided_slice %186 {offsets = [4, 0, 0], sizes = [2, 8, 8], strides = [1, 1, 1]} : vector<8x8x8xf32> to vector<2x8x8xf32>
    %190 = vector.extract_strided_slice %186 {offsets = [6, 0, 0], sizes = [2, 8, 8], strides = [1, 1, 1]} : vector<8x8x8xf32> to vector<2x8x8xf32>
    %191 = tpu.concatenate %187, %188, %189, %190 in 2 : vector<2x8x8xf32>, vector<2x8x8xf32>, vector<2x8x8xf32>, vector<2x8x8xf32> -> vector<2x8x32xf32>
    %192 = vector.shape_cast %191 : vector<2x8x32xf32> to vector<16x32xf32>
    %cst_77 = arith.constant dense<0.000000e+00> : vector<16x32xf32>
    %193 = tpu.matmul %192, %152, %cst_77 {dimension_numbers = #tpu.dot_dimension_numbers<[1], [0], [0], [1], [0, 0, 1, 1], [], []>} : vector<16x32xf32>, vector<32x32xf32>, vector<16x32xf32> -> vector<16x32xf32>
    %194 = arith.addf %133, %193 : vector<16x32xf32>
    %c0_78 = arith.constant 0 : index
    %c0_79 = arith.constant 0 : index
    %195 = vector.load %arg21[%c0_78, %c0_79] : memref<1x32xf32, #tpu.memory_space<vmem>>, vector<1x32xf32>
    %196 = arith.mulf %194, %194 : vector<16x32xf32>
    %cst_80 = arith.constant dense<0.000000e+00> : vector<16xf32>
    %197 = vector.multi_reduction <add>, %196, %cst_80 [1] : vector<16x32xf32> to vector<16xf32>
    %198 = vector.shape_cast %197 : vector<16xf32> to vector<16x1xf32>
    %cst_81 = arith.constant 3.200000e+01 : f32
    %199 = vector.broadcast %cst_81 : f32 to vector<16x1xf32>
    %200 = arith.divf %198, %199 : vector<16x1xf32>
    %cst_82 = arith.constant 9.99999997E-7 : f32
    %201 = vector.broadcast %cst_82 : f32 to vector<16x1xf32>
    %202 = arith.addf %200, %201 : vector<16x1xf32>
    %203 = math.rsqrt %202 : vector<16x1xf32>
    %204 = vector.broadcast %203 : vector<16x1xf32> to vector<16x32xf32>
    %205 = arith.mulf %194, %204 : vector<16x32xf32>
    %206 = vector.broadcast %195 : vector<1x32xf32> to vector<16x32xf32>
    %207 = arith.mulf %205, %206 : vector<16x32xf32>
    %c0_83 = arith.constant 0 : index
    %c0_84 = arith.constant 0 : index
    %208 = vector.load %arg22[%c0_83, %c0_84] : memref<32x32xf32, #tpu.memory_space<vmem>>, vector<32x32xf32>
    %cst_85 = arith.constant dense<0.000000e+00> : vector<16x32xf32>
    %209 = tpu.matmul %207, %208, %cst_85 {dimension_numbers = #tpu.dot_dimension_numbers<[1], [0], [0], [1], [0, 0, 1, 1], [], []>} : vector<16x32xf32>, vector<32x32xf32>, vector<16x32xf32> -> vector<16x32xf32>
    %c0_86 = arith.constant 0 : index
    %c0_87 = arith.constant 0 : index
    %210 = vector.load %arg23[%c0_86, %c0_87] : memref<32x64xf32, #tpu.memory_space<vmem>>, vector<32x64xf32>
    %cst_88 = arith.constant dense<0.000000e+00> : vector<16x64xf32>
    %211 = tpu.matmul %112, %210, %cst_88 {dimension_numbers = #tpu.dot_dimension_numbers<[1], [0], [0], [1], [0, 0, 1, 1], [], []>} : vector<16x32xf32>, vector<32x64xf32>, vector<16x64xf32> -> vector<16x64xf32>
    %212 = vector.extract_strided_slice %211 {offsets = [0, 0], sizes = [16, 32], strides = [1, 1]} : vector<16x64xf32> to vector<16x32xf32>
    %213 = vector.extract_strided_slice %211 {offsets = [0, 32], sizes = [16, 32], strides = [1, 1]} : vector<16x64xf32> to vector<16x32xf32>
    %c0_89 = arith.constant 0 : index
    %c0_90 = arith.constant 0 : index
    %214 = vector.load %arg24[%c0_89, %c0_90] : memref<32x32xf32, #tpu.memory_space<vmem>>, vector<32x32xf32>
    %215 = vector.shape_cast %209 : vector<16x32xf32> to vector<2x8x32xf32>
    %216 = vector.shape_cast %212 : vector<16x32xf32> to vector<2x8x32xf32>
    %217 = vector.shape_cast %213 : vector<16x32xf32> to vector<2x8x32xf32>
    %218 = vector.extract_strided_slice %215 {offsets = [0, 0, 0], sizes = [2, 8, 8], strides = [1, 1, 1]} : vector<2x8x32xf32> to vector<2x8x8xf32>
    %219 = vector.extract_strided_slice %215 {offsets = [0, 0, 8], sizes = [2, 8, 8], strides = [1, 1, 1]} : vector<2x8x32xf32> to vector<2x8x8xf32>
    %220 = vector.extract_strided_slice %215 {offsets = [0, 0, 16], sizes = [2, 8, 8], strides = [1, 1, 1]} : vector<2x8x32xf32> to vector<2x8x8xf32>
    %221 = vector.extract_strided_slice %215 {offsets = [0, 0, 24], sizes = [2, 8, 8], strides = [1, 1, 1]} : vector<2x8x32xf32> to vector<2x8x8xf32>
    %222 = tpu.concatenate %218, %219, %220, %221 in 0 : vector<2x8x8xf32>, vector<2x8x8xf32>, vector<2x8x8xf32>, vector<2x8x8xf32> -> vector<8x8x8xf32>
    %223 = vector.extract_strided_slice %216 {offsets = [0, 0, 0], sizes = [2, 8, 8], strides = [1, 1, 1]} : vector<2x8x32xf32> to vector<2x8x8xf32>
    %224 = vector.extract_strided_slice %216 {offsets = [0, 0, 8], sizes = [2, 8, 8], strides = [1, 1, 1]} : vector<2x8x32xf32> to vector<2x8x8xf32>
    %225 = vector.extract_strided_slice %216 {offsets = [0, 0, 16], sizes = [2, 8, 8], strides = [1, 1, 1]} : vector<2x8x32xf32> to vector<2x8x8xf32>
    %226 = vector.extract_strided_slice %216 {offsets = [0, 0, 24], sizes = [2, 8, 8], strides = [1, 1, 1]} : vector<2x8x32xf32> to vector<2x8x8xf32>
    %227 = tpu.concatenate %223, %224, %225, %226 in 0 : vector<2x8x8xf32>, vector<2x8x8xf32>, vector<2x8x8xf32>, vector<2x8x8xf32> -> vector<8x8x8xf32>
    %228 = vector.extract_strided_slice %217 {offsets = [0, 0, 0], sizes = [2, 8, 8], strides = [1, 1, 1]} : vector<2x8x32xf32> to vector<2x8x8xf32>
    %229 = vector.extract_strided_slice %217 {offsets = [0, 0, 8], sizes = [2, 8, 8], strides = [1, 1, 1]} : vector<2x8x32xf32> to vector<2x8x8xf32>
    %230 = vector.extract_strided_slice %217 {offsets = [0, 0, 16], sizes = [2, 8, 8], strides = [1, 1, 1]} : vector<2x8x32xf32> to vector<2x8x8xf32>
    %231 = vector.extract_strided_slice %217 {offsets = [0, 0, 24], sizes = [2, 8, 8], strides = [1, 1, 1]} : vector<2x8x32xf32> to vector<2x8x8xf32>
    %232 = tpu.concatenate %228, %229, %230, %231 in 0 : vector<2x8x8xf32>, vector<2x8x8xf32>, vector<2x8x8xf32>, vector<2x8x8xf32> -> vector<8x8x8xf32>
    "tpu.trace_start"() <{level = 10 : i32, message = "bqd,bkd->bqk"}> : () -> ()
    %cst_91 = arith.constant dense<0.000000e+00> : vector<8x8x8xf32>
    %233 = tpu.matmul %222, %227, %cst_91 {dimension_numbers = #tpu.dot_dimension_numbers<[2], [2], [1], [1], [0, 0, 0, 1, 1, 1], [0], [0]>} : vector<8x8x8xf32>, vector<8x8x8xf32>, vector<8x8x8xf32> -> vector<8x8x8xf32>
    "tpu.trace_stop"() : () -> ()
    %234 = vector.broadcast %6 : vector<8x1x8xf32> to vector<8x8x8xf32>
    %235 = arith.addf %233, %234 : vector<8x8x8xf32>
    %cst_92 = arith.constant dense<0xFF800000> : vector<8x8xf32>
    %236 = vector.multi_reduction <maximumf>, %235, %cst_92 [2] : vector<8x8x8xf32> to vector<8x8xf32>
    %237 = vector.shape_cast %236 : vector<8x8xf32> to vector<8x8x1xf32>
    %238 = vector.broadcast %237 : vector<8x8x1xf32> to vector<8x8x8xf32>
    %239 = arith.subf %235, %238 : vector<8x8x8xf32>
    %240 = math.exp %239 : vector<8x8x8xf32>
    %cst_93 = arith.constant dense<0.000000e+00> : vector<8x8xf32>
    %241 = vector.multi_reduction <add>, %240, %cst_93 [2] : vector<8x8x8xf32> to vector<8x8xf32>
    %242 = vector.shape_cast %241 : vector<8x8xf32> to vector<8x8x1xf32>
    %243 = tpu.reciprocal %242 {approx = true} : vector<8x8x1xf32> -> vector<8x8x1xf32>
    %244 = vector.broadcast %243 : vector<8x8x1xf32> to vector<8x8x8xf32>
    %245 = arith.mulf %240, %244 : vector<8x8x8xf32>
    "tpu.trace_start"() <{level = 10 : i32, message = "bqk,bkd->bqd"}> : () -> ()
    %cst_94 = arith.constant dense<0.000000e+00> : vector<8x8x8xf32>
    %246 = tpu.matmul %245, %232, %cst_94 {dimension_numbers = #tpu.dot_dimension_numbers<[2], [1], [1], [2], [0, 0, 0, 1, 1, 2], [0], [0]>} : vector<8x8x8xf32>, vector<8x8x8xf32>, vector<8x8x8xf32> -> vector<8x8x8xf32>
    "tpu.trace_stop"() : () -> ()
    %247 = vector.extract_strided_slice %246 {offsets = [0, 0, 0], sizes = [2, 8, 8], strides = [1, 1, 1]} : vector<8x8x8xf32> to vector<2x8x8xf32>
    %248 = vector.extract_strided_slice %246 {offsets = [2, 0, 0], sizes = [2, 8, 8], strides = [1, 1, 1]} : vector<8x8x8xf32> to vector<2x8x8xf32>
    %249 = vector.extract_strided_slice %246 {offsets = [4, 0, 0], sizes = [2, 8, 8], strides = [1, 1, 1]} : vector<8x8x8xf32> to vector<2x8x8xf32>
    %250 = vector.extract_strided_slice %246 {offsets = [6, 0, 0], sizes = [2, 8, 8], strides = [1, 1, 1]} : vector<8x8x8xf32> to vector<2x8x8xf32>
    %251 = tpu.concatenate %247, %248, %249, %250 in 2 : vector<2x8x8xf32>, vector<2x8x8xf32>, vector<2x8x8xf32>, vector<2x8x8xf32> -> vector<2x8x32xf32>
    %252 = vector.shape_cast %251 : vector<2x8x32xf32> to vector<16x32xf32>
    %cst_95 = arith.constant dense<0.000000e+00> : vector<16x32xf32>
    %253 = tpu.matmul %252, %214, %cst_95 {dimension_numbers = #tpu.dot_dimension_numbers<[1], [0], [0], [1], [0, 0, 1, 1], [], []>} : vector<16x32xf32>, vector<32x32xf32>, vector<16x32xf32> -> vector<16x32xf32>
    %254 = arith.addf %194, %253 : vector<16x32xf32>
    %c0_96 = arith.constant 0 : index
    %c0_97 = arith.constant 0 : index
    %255 = vector.load %arg25[%c0_96, %c0_97] : memref<1x32xf32, #tpu.memory_space<vmem>>, vector<1x32xf32>
    %256 = arith.mulf %254, %254 : vector<16x32xf32>
    %cst_98 = arith.constant dense<0.000000e+00> : vector<16xf32>
    %257 = vector.multi_reduction <add>, %256, %cst_98 [1] : vector<16x32xf32> to vector<16xf32>
    %258 = vector.shape_cast %257 : vector<16xf32> to vector<16x1xf32>
    %cst_99 = arith.constant 3.200000e+01 : f32
    %259 = vector.broadcast %cst_99 : f32 to vector<16x1xf32>
    %260 = arith.divf %258, %259 : vector<16x1xf32>
    %cst_100 = arith.constant 9.99999997E-7 : f32
    %261 = vector.broadcast %cst_100 : f32 to vector<16x1xf32>
    %262 = arith.addf %260, %261 : vector<16x1xf32>
    %263 = math.rsqrt %262 : vector<16x1xf32>
    %264 = vector.broadcast %263 : vector<16x1xf32> to vector<16x32xf32>
    %265 = arith.mulf %254, %264 : vector<16x32xf32>
    %266 = vector.broadcast %255 : vector<1x32xf32> to vector<16x32xf32>
    %267 = arith.mulf %265, %266 : vector<16x32xf32>
    %c0_101 = arith.constant 0 : index
    %c0_102 = arith.constant 0 : index
    %268 = vector.load %arg26[%c0_101, %c0_102] : memref<32x64xf32, #tpu.memory_space<vmem>>, vector<32x64xf32>
    %cst_103 = arith.constant dense<0.000000e+00> : vector<16x64xf32>
    %269 = tpu.matmul %267, %268, %cst_103 {dimension_numbers = #tpu.dot_dimension_numbers<[1], [0], [0], [1], [0, 0, 1, 1], [], []>} : vector<16x32xf32>, vector<32x64xf32>, vector<16x64xf32> -> vector<16x64xf32>
    %cst_104 = arith.constant 0.000000e+00 : f32
    %270 = vector.broadcast %cst_104 : f32 to vector<16x64xf32>
    %271 = arith.maximumf %269, %270 : vector<16x64xf32>
    %c0_105 = arith.constant 0 : index
    %c0_106 = arith.constant 0 : index
    %272 = vector.load %arg27[%c0_105, %c0_106] : memref<64x32xf32, #tpu.memory_space<vmem>>, vector<64x32xf32>
    %cst_107 = arith.constant dense<0.000000e+00> : vector<16x32xf32>
    %273 = tpu.matmul %271, %272, %cst_107 {dimension_numbers = #tpu.dot_dimension_numbers<[1], [0], [0], [1], [0, 0, 1, 1], [], []>} : vector<16x64xf32>, vector<64x32xf32>, vector<16x32xf32> -> vector<16x32xf32>
    %274 = arith.addf %254, %273 : vector<16x32xf32>
    %c0_108 = arith.constant 0 : index
    %c0_109 = arith.constant 0 : index
    %275 = vector.load %arg28[%c0_108, %c0_109] : memref<1x32xf32, #tpu.memory_space<vmem>>, vector<1x32xf32>
    %276 = arith.mulf %274, %274 : vector<16x32xf32>
    %cst_110 = arith.constant dense<0.000000e+00> : vector<16xf32>
    %277 = vector.multi_reduction <add>, %276, %cst_110 [1] : vector<16x32xf32> to vector<16xf32>
    %278 = vector.shape_cast %277 : vector<16xf32> to vector<16x1xf32>
    %cst_111 = arith.constant 3.200000e+01 : f32
    %279 = vector.broadcast %cst_111 : f32 to vector<16x1xf32>
    %280 = arith.divf %278, %279 : vector<16x1xf32>
    %cst_112 = arith.constant 9.99999997E-7 : f32
    %281 = vector.broadcast %cst_112 : f32 to vector<16x1xf32>
    %282 = arith.addf %280, %281 : vector<16x1xf32>
    %283 = math.rsqrt %282 : vector<16x1xf32>
    %284 = vector.broadcast %283 : vector<16x1xf32> to vector<16x32xf32>
    %285 = arith.mulf %274, %284 : vector<16x32xf32>
    %286 = vector.broadcast %275 : vector<1x32xf32> to vector<16x32xf32>
    %287 = arith.mulf %285, %286 : vector<16x32xf32>
    %cst_113 = arith.constant 0.176776692 : f32
    %288 = vector.broadcast %cst_113 : f32 to vector<16x32xf32>
    %289 = arith.mulf %287, %288 : vector<16x32xf32>
    %c0_114 = arith.constant 0 : index
    %c0_115 = arith.constant 0 : index
    %290 = vector.load %arg29[%c0_114, %c0_115] : memref<32x64xf32, #tpu.memory_space<vmem>>, vector<32x64xf32>
    %cst_116 = arith.constant dense<0.000000e+00> : vector<16x64xf32>
    %291 = tpu.matmul %289, %290, %cst_116 {dimension_numbers = #tpu.dot_dimension_numbers<[1], [0], [0], [1], [0, 0, 1, 1], [], []>} : vector<16x32xf32>, vector<32x64xf32>, vector<16x64xf32> -> vector<16x64xf32>
    %cst_117 = arith.constant dense<0xFF800000> : vector<16xf32>
    %292 = vector.multi_reduction <maximumf>, %291, %cst_117 [1] : vector<16x64xf32> to vector<16xf32>
    %293 = vector.shape_cast %292 : vector<16xf32> to vector<16x1xf32>
    %294 = vector.broadcast %293 : vector<16x1xf32> to vector<16x64xf32>
    %295 = arith.subf %291, %294 : vector<16x64xf32>
    %296 = math.exp %295 : vector<16x64xf32>
    %cst_118 = arith.constant dense<0.000000e+00> : vector<16xf32>
    %297 = vector.multi_reduction <add>, %296, %cst_118 [1] : vector<16x64xf32> to vector<16xf32>
    %298 = vector.shape_cast %297 : vector<16xf32> to vector<16x1xf32>
    %299 = math.log %298 : vector<16x1xf32>
    %300 = arith.addf %299, %293 : vector<16x1xf32>
    %301 = vector.broadcast %300 : vector<16x1xf32> to vector<16x64xf32>
    %302 = arith.subf %291, %301 : vector<16x64xf32>
    %303 = tpu.iota {dimensions = array<i32: 1>} : vector<16x64xi32>
    %c0_119 = arith.constant 0 : index
    %c0_120 = arith.constant 0 : index
    %304 = vector.load %arg4[%c0_119, %c0_120] : memref<16x1xi32, #tpu.memory_space<vmem>>, vector<16x1xi32>
    %305 = vector.broadcast %304 : vector<16x1xi32> to vector<16x64xi32>
    %306 = arith.cmpi eq, %303, %305 : vector<16x64xi32>
    %307 = arith.extui %306 : vector<16x64xi1> to vector<16x64xi32>
    %308 = arith.sitofp %307 : vector<16x64xi32> to vector<16x64xf32>
    %309 = arith.mulf %302, %308 : vector<16x64xf32>
    %cst_121 = arith.constant dense<0.000000e+00> : vector<16xf32>
    %310 = vector.multi_reduction <add>, %309, %cst_121 [1] : vector<16x64xf32> to vector<16xf32>
    %311 = vector.shape_cast %310 : vector<16xf32> to vector<16x1xf32>
    %c0_i32 = arith.constant 0 : i32
    %312 = vector.broadcast %c0_i32 : i32 to vector<16x1xi32>
    %313 = arith.cmpi sge, %304, %312 : vector<16x1xi32>
    %314 = arith.extui %313 : vector<16x1xi1> to vector<16x1xi32>
    %315 = arith.sitofp %314 : vector<16x1xi32> to vector<16x1xf32>
    %316 = arith.mulf %311, %315 : vector<16x1xf32>
    %cst_122 = arith.constant dense<0.000000e+00> : vector<1xf32>
    %317 = vector.multi_reduction <add>, %316, %cst_122 [0] : vector<16x1xf32> to vector<1xf32>
    %318 = vector.shape_cast %317 : vector<1xf32> to vector<1x1xf32>
    %cst_123 = arith.constant dense<0.000000e+00> : vector<1xf32>
    %319 = vector.multi_reduction <add>, %315, %cst_123 [0] : vector<16x1xf32> to vector<1xf32>
    %320 = vector.shape_cast %319 : vector<1xf32> to vector<1x1xf32>
    %cst_124 = arith.constant 0.000000e+00 : f32
    %321 = vector.broadcast %cst_124 : f32 to vector<1x1xf32>
    %322 = arith.subf %321, %318 : vector<1x1xf32>
    %cst_125 = arith.constant 1.000000e+00 : f32
    %323 = vector.broadcast %cst_125 : f32 to vector<1x1xf32>
    %324 = arith.maximumf %320, %323 : vector<1x1xf32>
    %325 = tpu.reciprocal %324 {approx = true} : vector<1x1xf32> -> vector<1x1xf32>
    %326 = arith.mulf %322, %325 : vector<1x1xf32>
    %c0_126 = arith.constant 0 : index
    %c0_127 = arith.constant 0 : index
    %327 = vector.load %arg31[%c0_126, %c0_127] : memref<1x1xf32, #tpu.memory_space<vmem>>, vector<1x1xf32>
    tpu.vector_store %arg31[%c0_126, %c0_127], %326 {strides = array<i32>} : memref<1x1xf32, #tpu.memory_space<vmem>>, vector<1x1xf32>,
    return
  }
}

</mosaic_0001>

<bundles_post_ra>
// kernel: joint_model_forward.1
= control target key start
LH: loop header
LB: loop body
LE: loop exit
PB: predicated region body
PF: predicated region fallthrough
CT: control target
= control target key end

     0   :  { %s6965_s6 = smov 1   ;;  %s6966_s10 = smov 2   ;;  %s7981_s0 = inlined_call_operand.smem [shape: u32[32], index: -1, kind: input, shape index: {}] }
   0x1   :  { %s7018_s5 = sld [smem:[%s7981_s0]]   ;;  %s6967_s14 = smov 3  }
   0x2   :  { %s7023_s9 = sld [smem:[%s7981_s0 + %s6965_s6]]   ;;  %s6968_s18 = smov 4  }
   0x3   :  { %s7028_s13 = sld [smem:[%s7981_s0 + %s6966_s10]]   ;;  %s6969_s22 = smov 5  }
   0x4   :  { %s7033_s17 = sld [smem:[%s7981_s0 + %s6967_s14]]   ;;  %s6970_s26 = smov 6  }
   0x5   :  { %s7038_s21 = sld [smem:[%s7981_s0 + %s6968_s18]]   ;;  %s6971_s30 = smov 7  }
   0x6   :  { %s7043_s25 = sld [smem:[%s7981_s0 + %s6969_s22]]   ;;  %s6972_s4 = smov 8  }
   0x7   :  { %s7048_s29 = sld [smem:[%s7981_s0 + %s6970_s26]]   ;;  %s6973_s10 = smov 9  }
   0x8   :  { %s7053_s3 = sld [smem:[%s7981_s0 + %s6971_s30]]   ;;  %s6974_s15 = smov 10  }
   0x9   :  { %s7058_s8 = sld [smem:[%s7981_s0 + %s6972_s4]]   ;;  %s6975_s20 = smov 11  }
   0xa   :  { %7989 = sst [smem:[#allocation5_spill]] %s7033_s17  ;;  %s6976_s26 = smov 12  }
   0xb   :  { %7990 = sst [smem:[#allocation6_spill]] %s7038_s21  ;;  %s6977_s1 = smov 13  }
   0xc   :  { %s7063_s14 = sld [smem:[%s7981_s0 + %s6973_s10]]   ;;  %s6978_s7 = smov 14  }
   0xd   :  { %s7068_s19 = sld [smem:[%s7981_s0 + %s6974_s15]]   ;;  %s6979_s15 = smov 15  }
   0xe   :  { %s7073_s24 = sld [smem:[%s7981_s0 + %s6975_s20]]   ;;  %s6980_s22 = smov 16  }
   0xf   :  { %s7078_s30 = sld [smem:[%s7981_s0 + %s6976_s26]]   ;;  %s6981_s28 = smov 17  }
  0x10   :  { %s7083_s6 = sld [smem:[%s7981_s0 + %s6977_s1]]  }
  0x11   :  { %s7088_s12 = sld [smem:[%s7981_s0 + %s6978_s7]]   ;;  %s6982_s7 = smov 18  }
  0x12   :  { %s7093_s20 = sld [smem:[%s7981_s0 + %s6979_s15]]   ;;  %s6983_s15 = smov 19  }
  0x13   :  { %s7098_s27 = sld [smem:[%s7981_s0 + %s6980_s22]]   ;;  %s6984_s22 = smov 20  }
  0x14   :  { %s7103_s4 = sld [smem:[%s7981_s0 + %s6981_s28]]   ;;  %s6985_s28 = smov 21  }
  0x15   :  { %s7108_s21 = sld [smem:[%s7981_s0 + %s6982_s7]]   ;;  %s6986_s7 = smov 22  }
  0x16   :  { %7991 = sst [smem:[#allocation7_spill]] %s7083_s6 }
  0x17   :  { %s7113_s17 = sld [smem:[%s7981_s0 + %s6983_s15]]   ;;  %s6987_s15 = smov 23  }
  0x18   :  { %7992 = sst [smem:[#allocation8_spill]] %s7093_s20 }
  0x19   :  { %s7118_s20 = sld [smem:[%s7981_s0 + %s6984_s22]]   ;;  %s6988_s22 = smov 24  }
  0x1a   :  { %7993 = sst [smem:[#allocation9_spill]] %s7103_s4 }
  0x1b   :  { %7994 = sst [smem:[#allocation10_spill]] %s7108_s21 }
  0x1c   :  { %s7123_s4 = sld [smem:[%s7981_s0 + %s6985_s28]]   ;;  %s6989_s28 = smov 25  }
  0x1d   :  { %s7128_s21 = sld [smem:[%s7981_s0 + %s6986_s7]]   ;;  %s6990_s7 = smov 26  }
  0x1e   :  { %s7133_s6 = sld [smem:[%s7981_s0 + %s6987_s15]]   ;;  %s6991_s15 = smov 27  }
  0x1f   :  { %7995 = sst [smem:[#allocation11_spill]] %s7118_s20 }
  0x20   :  { %s7138_s20 = sld [smem:[%s7981_s0 + %s6988_s22]]   ;;  %s6992_s22 = smov 28  }
  0x22   :  { %7996 = sst [smem:[#allocation12_spill]] %s7123_s4 }
  0x23   :  { %7997 = sst [smem:[#allocation13_spill]] %s7128_s21 }
  0x24   :  { %7998 = sst [smem:[#allocation14_spill]] %s7133_s6 }
  0x25   :  { %s7143_s4 = sld [smem:[%s7981_s0 + %s6989_s28]]   ;;  %s6993_s28 = smov 29  }
  0x26   :  { %7999 = sst [smem:[#allocation15_spill]] %s7138_s20 }
  0x27   :  { %s7148_s21 = sld [smem:[%s7981_s0 + %s6990_s7]]   ;;  %s6994_s7 = smov 30  }
  0x28   :  { %s7153_s6 = sld [smem:[%s7981_s0 + %s6991_s15]]   ;;  %s6995_s15 = smov 31  }
  0x29   :  { %s7158_s20 = sld [smem:[%s7981_s0 + %s6992_s22]]  }
  0x2b   :  { %8000 = sst [smem:[#allocation16_spill]] %s7143_s4 }
  0x2c   :  { %s7163_s4 = sld [smem:[%s7981_s0 + %s6993_s28]]  }
  0x2d   :  { %8001 = sst [smem:[#allocation17_spill]] %s7148_s21 }
  0x2e   :  { %8002 = sst [smem:[#allocation18_spill]] %s7153_s6 }
  0x2f   :  { %s7168_s21 = sld [smem:[%s7981_s0 + %s6994_s7]]  }
  0x30   :  { %s7173_s6 = sld [smem:[%s7981_s0 + %s6995_s15]]  }
  0x31   :  { %v7176_v0 = vld [vmem:[%s7018_s5] sm:$0xff]  ;;  %vm193_vm0 = vcmask 261120   ;;  %v7179_v1 = vld [vmem:[%s7018_s5 + $0x8] sm:$0xff] }
  0x32   :  { %69 = vsyncpa [#allocation3], 0  ;;  %v191_v2 = vmul.f32 %v7176_v0, %v7176_v0  ;;  %v192_v3 = vmul.f32 %v7179_v1, %v7179_v1  ;;  %v217_v6 = vld [vmem:[%s7048_s29] sm:$0xff]  ;;  %v218_v7 = vld [vmem:[%s7048_s29 + $0x8] sm:$0xff]  ;;  %s6996_s0 = smov 120   ;;  %s6997_s5 = smov 112   ;;  %v137_v44 = vlaneseq }
  0x33   :  { %v219_v8 = vld [vmem:[%s7048_s29 + $0x10] sm:$0xff]  ;;  %v6624_v9 = vpack.c.bf16 %v218_v7, %v217_v6  ;;  %v220_v10 = vld [vmem:[%s7048_s29 + $0x18] sm:$0xff]  ;;  %v5893_v19 = vld [vmem:[%s7043_s25] ss:$0 sm:$0xff]  ;;  %v6998_v27 = vmov 0.0   ;;  %vm6999_vm1 = vmmov 0  }
  0x34   :  { %v194_v4 = vsel %vm193_vm0, %v191_v2, 0.0  ;;  %v197_v5 = vsel %vm193_vm0, %v192_v3, 0.0  ;;  %v6628_v11 = vpack.c.bf16 %v220_v10, %v219_v8  ;;  %6214 = vmatprep.subr.mxu1 %v6998_v27  ;;  %6216 = vmatprep.mubr.msk.f32.mxu1 %vm6999_vm1, %v6998_v27  ;;  %s7000_s25 = smov 104   ;;  %s7001_s29 = smov 96   ;;  %vm332_vm2 = vcmask 64512  }
  0x35   :  { %195 = vadd.xlane.f32.xlu0 %v194_v4  ;;  %6625 = vmatprep.subr.bf16.mxu0 %v6624_v9  ;;  %v7002_v42 = vmov 1966171168   ;;  %v130_v45 = vld [vmem:[%s7028_s13] sm:$0x3]  ;;  %v7296_v48 = vshrl.u32 %v137_v44, 7  ;;  %s7003_s13 = smov 64  }
  0x36   :  { %6627 = vmatpush3.bf16.msra.mxu0 %v6624_v9  ;;  %v135_v43 = vunpack.c.l.s4 %v7002_v42  ;;  %v131_v46 = vsub.f32 1.0, %v130_v45  ;;  %s7004_s22 = smov 8   ;;  %s7005_s23 = smov 16   ;;  %vm1661_vm3 = vcmask 130048   ;;  %vm1664_vm4 = vcmask 195584  }
  0x37   :  { %6629 = vmatprep.subr.bf16.mxu0 %v6628_v11  ;;  %v7304_v53 = vsub.s32 0, %v7296_v48  ;;  %vm1870_vm5 = vcmask 523264   ;;  %s8013_s26 = sld [smem:[#allocation17_spill]]  ;;  %s8014_s28 = sld [smem:[#allocation18_spill]]  ;;  %vm5819_vm11 = vcmask 7168   ;;  %vm5842_vm12 = vcmask 0  }
  0x38   :  { %v136_v47 = vunpack.c.0.s8 %v135_v43  ;;  %v132_v49 = vmul.f32 -1e+09, %v131_v46  ;;  %s8015_s1 = sld [smem:[#allocation16_spill]] }
  0x39   :  { %198 = vadd.xlane.f32.xlu0 %v197_v5 }
  0x3a   :  { %6631 = vmatpush3.bf16.msra.mxu0 %v6628_v11  ;;  %v7299_v50 = vsub.s32 %v136_v47, %v7296_v48 }
  0x3b   :  { %6234 = vmatprep.subr.mxu0 %v6998_v27 }
  0x3c   :  { %v140_v51 = vrot.slane %v132_v49, %v7299_v50 }
  0x3e   :  { %v148_v52 = vrot.slane %v140_v51, %v7299_v50  ;;  %v141_v54 = vcombine.high %v140_v51, %v140_v51 }
  0x40   :  { %v7307_v55 = vrot.slane %v148_v52, %v7304_v53  ;;  %v155_v56 = vrot.slane %v141_v54, %v7299_v50 }
  0x42   :  { %v7312_v60 = vrot.slane %v155_v56, %v7304_v53 }
  0xc2   :  { %v196_v12 = vpop.xlane.xlu0 %195 }
  0xc3   :  { %v201_v13 = vmul.f32 0.03125, %v196_v12 }
  0xc5   :  { %v203_v14 = vadd.f32 1e-06, %v201_v13 }
  0xc6   :  { %v199_v15 = vpop.xlane.xlu0 %198 }
  0xc7   :  { %6807 = vrsqrt.f32 %v203_v14  ;;  %v202_v16 = vmul.f32 0.03125, %v199_v15 }
  0xc9   :  { %v204_v17 = vadd.f32 1e-06, %v202_v16 }
  0xcb   :  { %6809 = vrsqrt.f32 %v204_v17 }
  0xd1   :  { %v6808_v18 = vpop.eup %6807 }
  0xd2   :  { %v207_v20 = vmul.f32 %v6808_v18, %v7176_v0 }
  0xd4   :  { %v215_v21 = vmul.f32 %v5893_v19, %v207_v20 }
  0xd5   :  { %v6810_v22 = vpop.eup %6809 }
  0xd6   :  { %v208_v23 = vmul.f32 %v6810_v22, %v7179_v1  ;;  %6211 = vmatprep.mubr.msk.f32.mxu0 %vm193_vm0, %v215_v21 }
  0xd8   :  { %v216_v24 = vmul.f32 %v5893_v19, %v208_v23 }
  0xda   :  { %6212 = vmatmul.mubr.msk.f32.vlgmr.msra.gmra.mrb[0].mxu0 %vm193_vm0, %v216_v24 }
  0xdb   :  { %6236 = vmatprep.mubr.msk.f32.mxu0 %vm6999_vm1, %v6998_v27 }
 0x1ad   :  { %v7196_v25 = vpop.f32.mrb[0].mxu0 }
 0x1ae   :  { %310 = vrot.lane.b32.xlu1 %v7196_v25, %s6996_s0  ;;  %v7200_v26 = vpop.f32.mrb[1].mxu0 }
 0x1af   :  { %312 = vrot.lane.b32.xlu0 %v7200_v26, %s6997_s5 }
 0x1b2   :  { %308 = vrot.lane.b32.xlu1 %v7200_v26, %s6996_s0 }
 0x1b6   :  { %314 = vrot.lane.b32.xlu1 %v7196_v25, %s6997_s5 }
 0x1ba   :  { %316 = vrot.lane.b32.xlu1 %v7200_v26, %s7000_s25 }
 0x1be   :  { %318 = vrot.lane.b32.xlu1 %v7196_v25, %s7000_s25 }
 0x1c2   :  { %330 = vrot.lane.b32.xlu1 %v7200_v26, %s7001_s29 }
 0x1c6   :  { %407 = vrot.lane.b32.xlu1 %v7196_v25, %s7001_s29 }
 0x220   :  { %v7222_v28 = vpop.permute.xlu1 %310 }
 0x221   :  { %559 = vrot.lane.b32.xlu0 %v7222_v28, %s7001_s29  ;;  %v7230_v30 = vpop.permute.xlu0 %312 }
 0x224   :  { %v7226_v29 = vpop.permute.xlu1 %308 }
 0x225   :  { %483 = vrot.lane.b32.xlu1 %v7226_v29, %s7001_s29 }
 0x228   :  { %v7232_v31 = vpop.permute.xlu1 %314 }
 0x229   :  { %635 = vrot.lane.b32.xlu1 %v7230_v30, %s7001_s29  ;;  %711 = vrot.lane.b32.xlu0 %v7232_v31, %s7001_s29 }
 0x22c   :  { %v7238_v32 = vpop.permute.xlu1 %316 }
 0x22d   :  { %787 = vrot.lane.b32.xlu1 %v7238_v32, %s7001_s29 }
 0x230   :  { %v7242_v33 = vpop.permute.xlu1 %318 }
 0x231   :  { %863 = vrot.lane.b32.xlu0 %v7242_v33, %s7001_s29 }
 0x234   :  { %v331_v34 = vpop.permute.xlu1 %330 }
 0x235   :  { %6215 = vmatpush3.xpose.msk.msra.mxu1 %vm332_vm2, %v331_v34 }
 0x236   :  { %6219 = vmatprep.subr.mxu1 %v6998_v27 }
 0x238   :  { %6217 = vmatmul.mubr.msk.f32.vlgmr.msra.gmra.mrb[0].mxu1 %vm332_vm2, %v7200_v26  ;;  %v408_v35 = vpop.permute.xlu1 %407 }
 0x239   :  { %6220 = vmatpush3.xpose.msk.msra.mxu1 %vm332_vm2, %v408_v35  ;;  %6221 = vmatprep.mubr.msk.f32.mxu1 %vm6999_vm1, %v6998_v27 }
 0x23a   :  { %6224 = vmatprep.subr.mxu1 %v6998_v27 }
 0x23c   :  { %6222 = vmatmul.mubr.msk.f32.vlgmr.msra.gmra.mrb[2].mxu1 %vm332_vm2, %v7196_v25 }
 0x23d   :  { %6226 = vmatprep.mubr.msk.f32.mxu1 %vm6999_vm1, %v6998_v27 }
 0x293   :  { %v560_v37 = vpop.permute.xlu0 %559 }
 0x297   :  { %v484_v36 = vpop.permute.xlu1 %483 }
 0x298   :  { %6225 = vmatpush3.xpose.msk.msra.mxu1 %vm332_vm2, %v484_v36 }
 0x299   :  { %6229 = vmatprep.subr.mxu1 %v6998_v27 }
 0x29b   :  { %6227 = vmatmul.mubr.msk.f32.vlgmr.msra.gmra.mrb[4].mxu1 %vm332_vm2, %v7226_v29  ;;  %v636_v38 = vpop.permute.xlu1 %635  ;;  %v712_v39 = vpop.permute.xlu0 %711 }
 0x29c   :  { %6230 = vmatpush3.xpose.msk.msra.mxu1 %vm332_vm2, %v560_v37  ;;  %6235 = vmatpush3.xpose.msk.msra.mxu0 %vm332_vm2, %v636_v38 }
 0x29d   :  { %6231 = vmatprep.mubr.msk.f32.mxu1 %vm6999_vm1, %v6998_v27  ;;  %6239 = vmatprep.subr.mxu1 %v6998_v27 }
 0x29e   :  { %6244 = vmatprep.subr.mxu0 %v6998_v27 }
 0x29f   :  { %6232 = vmatmul.mubr.msk.f32.vlgmr.msra.gmra.mrb[6].mxu1 %vm332_vm2, %v7222_v28  ;;  %6237 = vmatmul.mubr.msk.f32.vlgmr.msra.gmra.mrb[2].mxu0 %vm332_vm2, %v7230_v30  ;;  %v788_v40 = vpop.permute.xlu1 %787 }
 0x2a0   :  { %6240 = vmatpush3.xpose.msk.msra.mxu1 %vm332_vm2, %v712_v39  ;;  %6245 = vmatpush3.xpose.msk.msra.mxu0 %vm332_vm2, %v788_v40 }
 0x2a1   :  { %6241 = vmatprep.mubr.msk.f32.mxu1 %vm6999_vm1, %v6998_v27  ;;  %6246 = vmatprep.mubr.msk.f32.mxu0 %vm6999_vm1, %v6998_v27 }
 0x2a2   :  { %6249 = vmatprep.subr.mxu1 %v6998_v27  ;;  %6254 = vmatprep.subr.mxu0 %v6998_v27 }
 0x2a3   :  { %v864_v41 = vpop.permute.xlu0 %863  ;;  %6242 = vmatmul.mubr.msk.f32.vlgmr.msra.gmra.mrb[8].mxu1 %vm332_vm2, %v7232_v31  ;;  %6247 = vmatmul.mubr.msk.f32.vlgmr.msra.gmra.mrb[4].mxu0 %vm332_vm2, %v7238_v32 }
 0x2a4   :  { %6250 = vmatpush3.xpose.msk.msra.mxu1 %vm332_vm2, %v864_v41  ;;  %6251 = vmatprep.mubr.msk.f32.mxu1 %vm6999_vm1, %v6998_v27 }
 0x2a5   :  { %6259 = vmatprep.subr.mxu1 %v6998_v27  ;;  %6256 = vmatprep.mubr.msk.f32.mxu0 %vm6999_vm1, %v6998_v27 }
 0x2a7   :  { %6252 = vmatmul.mubr.msk.f32.vlgmr.msra.gmra.mrb[10].mxu1 %vm332_vm2, %v7242_v33 }
 0x2a8   :  { %6261 = vmatprep.mubr.msk.f32.mxu1 %vm6999_vm1, %v6998_v27 }
 0x30b   :  { %v403_v57 = vpop.f32.mrb[0].mxu1 }
 0x30c   :  { %v404_v58 = vadd.f32 %v403_v57, %v7307_v55  ;;  %v6218_v59 = vpop.f32.mrb[1].mxu1 }
 0x30e   :  { %v939_v61 = vsel %vm332_vm2, %v404_v58, -inf }
 0x30f   :  { %v479_v62 = vpop.f32.mrb[2].mxu1  ;;  %940 = vmax.xlane.f32.xlu1 %v939_v61 }
 0x310   :  { %v480_v63 = vadd.f32 %v479_v62, %v7312_v60  ;;  %v6223_v2 = vpop.f32.mrb[3].mxu1 }
 0x312   :  { %v942_v3 = vsel %vm332_vm2, %v480_v63, -inf }
 0x313   :  { %943 = vmax.xlane.f32.xlu0 %v942_v3 }
 0x36e   :  { %v555_v4 = vpop.f32.mrb[4].mxu1 }
 0x36f   :  { %v556_v5 = vadd.f32 %v555_v4, %v7307_v55  ;;  %v6228_v6 = vpop.f32.mrb[5].mxu1 }
 0x371   :  { %v945_v7 = vsel %vm332_vm2, %v556_v5, -inf }
 0x372   :  { %v631_v8 = vpop.f32.mrb[6].mxu1  ;;  %v707_v9 = vpop.f32.mrb[2].mxu0  ;;  %946 = vmax.xlane.f32.xlu0 %v945_v7 }
 0x373   :  { %v632_v10 = vadd.f32 %v631_v8, %v7312_v60  ;;  %v708_v11 = vadd.f32 %v707_v9, %v7307_v55  ;;  %v6233_v12 = vpop.f32.mrb[7].mxu1  ;;  %v6238_v13 = vpop.f32.mrb[3].mxu0 }
 0x375   :  { %v948_v14 = vsel %vm332_vm2, %v632_v10, -inf  ;;  %v951_v15 = vsel %vm332_vm2, %v708_v11, -inf }
 0x376   :  { %v783_v16 = vpop.f32.mrb[8].mxu1  ;;  %v859_v17 = vpop.f32.mrb[4].mxu0  ;;  %949 = vmax.xlane.f32.xlu1 %v948_v14  ;;  %952 = vmax.xlane.f32.xlu0 %v951_v15 }
 0x377   :  { %v784_v18 = vadd.f32 %v783_v16, %v7312_v60  ;;  %v860_v19 = vadd.f32 %v859_v17, %v7307_v55  ;;  %v6243_v20 = vpop.f32.mrb[9].mxu1  ;;  %v6248_v21 = vpop.f32.mrb[5].mxu0 }
 0x379   :  { %v954_v22 = vsel %vm332_vm2, %v784_v18, -inf  ;;  %v957_v23 = vsel %vm332_vm2, %v860_v19, -inf }
 0x37a   :  { %v935_v24 = vpop.f32.mrb[10].mxu1  ;;  %955 = vmax.xlane.f32.xlu1 %v954_v22  ;;  %958 = vmax.xlane.f32.xlu0 %v957_v23 }
 0x37b   :  { %v936_v34 = vadd.f32 %v935_v24, %v7312_v60  ;;  %v6253_v35 = vpop.f32.mrb[11].mxu1 }
 0x37d   :  { %v960_v36 = vsel %vm332_vm2, %v936_v34, -inf }
 0x37e   :  { %961 = vmax.xlane.f32.xlu1 %v960_v36 }
 0x38f   :  { %1103 = vrot.lane.b32.xlu1 %v7196_v25, %s7003_s13 }
 0x390   :  { %1027 = vrot.lane.b32.xlu0 %v7200_v26, %s7003_s13 }
 0x393   :  { %1179 = vrot.lane.b32.xlu1 %v7226_v29, %s7003_s13 }
 0x394   :  { %1255 = vrot.lane.b32.xlu0 %v7222_v28, %s7003_s13 }
 0x397   :  { %1331 = vrot.lane.b32.xlu1 %v7230_v30, %s7003_s13 }
 0x398   :  { %1407 = vrot.lane.b32.xlu0 %v7232_v31, %s7003_s13 }
 0x39c   :  { %v941_v37 = vpop.xlane.xlu1 %940 }
 0x39d   :  { %v963_v38 = vsub.f32 %v404_v58, %v941_v37 }
 0x39f   :  { %v971_v40 = vmul.f32 1.442695, %v963_v38 }
 0x3a0   :  { %v944_v39 = vpop.xlane.xlu0 %943 }
 0x3a1   :  { %v964_v25 = vsub.f32 %v480_v63, %v944_v39  ;;  %6811 = vpow2.f32 %v971_v40 }
 0x3a3   :  { %v973_v41 = vmul.f32 1.442695, %v964_v25 }
 0x3a5   :  { %6813 = vpow2.f32 %v973_v41 }
 0x3ab   :  { %v7341_v26 = vpop.eup %6811 }
 0x3ac   :  { %v987_v29 = vsel %vm332_vm2, %v7341_v26, 0.0 }
 0x3af   :  { %v7345_v28 = vpop.eup %6813 }
 0x3b0   :  { %v990_v30 = vsel %vm332_vm2, %v7345_v28, 0.0 }
 0x3b7   :  { %988 = vadd.xlane.f32.xlu0 %v987_v29 }
 0x3bb   :  { %991 = vadd.xlane.f32.xlu1 %v990_v30 }
 0x3ff   :  { %v947_v31 = vpop.xlane.xlu0 %946 }
 0x400   :  { %v965_v42 = vsub.f32 %v556_v5, %v947_v31 }
 0x402   :  { %v975_v43 = vmul.f32 1.442695, %v965_v42 }
 0x403   :  { %v950_v45 = vpop.xlane.xlu1 %949  ;;  %v953_v46 = vpop.xlane.xlu0 %952 }
 0x404   :  { %6815 = vpow2.f32 %v975_v43  ;;  %v966_v47 = vsub.f32 %v632_v10, %v950_v45  ;;  %v967_v49 = vsub.f32 %v708_v11, %v953_v46 }
 0x406   :  { %v977_v51 = vmul.f32 1.442695, %v966_v47  ;;  %v979_v52 = vmul.f32 1.442695, %v967_v49 }
 0x407   :  { %v956_v54 = vpop.xlane.xlu1 %955  ;;  %v959_v56 = vpop.xlane.xlu0 %958 }
 0x408   :  { %6817 = vpow2.f32 %v977_v51  ;;  %v968_v57 = vsub.f32 %v784_v18, %v956_v54  ;;  %v969_v58 = vsub.f32 %v860_v19, %v959_v56 }
 0x409   :  { %6819 = vpow2.f32 %v979_v52 }
 0x40a   :  { %v981_v59 = vmul.f32 1.442695, %v968_v57  ;;  %v983_v61 = vmul.f32 1.442695, %v969_v58  ;;  %v302_v57 = vld [vmem:[%s7053_s3] sm:$0xff]  ;;  %v303_v58 = vld [vmem:[%s7053_s3 + $0x8] sm:$0xff] }
 0x40b   :  { %v962_v62 = vpop.xlane.xlu1 %961  ;;  %v1028_v63 = vpop.permute.xlu0 %1027 }
 0x40c   :  { %6821 = vpow2.f32 %v981_v59  ;;  %v970_v2 = vsub.f32 %v936_v34, %v962_v62  ;;  %6255 = vmatpush3.msra.mxu0 %v1028_v63  ;;  %v6632_v59 = vpack.c.bf16 %v303_v58, %v302_v57  ;;  %v305_v62 = vld [vmem:[%s7053_s3 + $0x18] sm:$0xff] }
 0x40d   :  { %6823 = vpow2.f32 %v983_v61  ;;  %6264 = vmatprep.subr.mxu0 %v6998_v27  ;;  %v304_v61 = vld [vmem:[%s7053_s3 + $0x10] sm:$0xff]  ;;  %s7006_s3 = smov 24  }
 0x40e   :  { %v6816_v3 = vpop.eup %6815  ;;  %v985_v4 = vmul.f32 1.442695, %v970_v2  ;;  %v6636_v63 = vpack.c.bf16 %v305_v62, %v304_v61  ;;  %v5922_v62 = vld [vmem:[%s7058_s8] ss:$0 sm:$0xff]  ;;  %s8004_s8 = sld [smem:[#allocation10_spill]] }
 0x40f   :  { %v1104_v5 = vpop.permute.xlu1 %1103  ;;  %v993_v6 = vsel %vm332_vm2, %v6816_v3, 0.0  ;;  %v1256_v17 = vpop.permute.xlu0 %1255 }
 0x410   :  { %6825 = vpow2.f32 %v985_v4  ;;  %6260 = vmatpush3.msra.mxu1 %v1104_v5  ;;  %994 = vadd.xlane.f32.xlu0 %v993_v6 }
 0x411   :  { %6269 = vmatprep.subr.mxu1 %v6998_v27 }
 0x412   :  { %v6818_v7 = vpop.eup %6817 }
 0x413   :  { %v6820_v8 = vpop.eup %6819  ;;  %v996_v9 = vsel %vm332_vm2, %v6818_v7, 0.0  ;;  %v1180_v18 = vpop.permute.xlu1 %1179 }
 0x414   :  { %997 = vadd.xlane.f32.xlu1 %v996_v9  ;;  %v999_v10 = vsel %vm332_vm2, %v6820_v8, 0.0  ;;  %v1408_v19 = vpop.permute.xlu0 %1407 }
 0x415   :  { %1000 = vadd.xlane.f32.xlu0 %v999_v10 }
 0x416   :  { %v6822_v11 = vpop.eup %6821 }
 0x417   :  { %v7354_v12 = vpop.eup %6823  ;;  %v1002_v13 = vsel %vm332_vm2, %v6822_v11, 0.0  ;;  %v1332_v20 = vpop.permute.xlu1 %1331 }
 0x418   :  { %1003 = vadd.xlane.f32.xlu1 %v1002_v13  ;;  %v1005_v14 = vsel %vm332_vm2, %v7354_v12, 0.0 }
 0x419   :  { %1006 = vadd.xlane.f32.xlu0 %v1005_v14 }
 0x41a   :  { %v7359_v15 = vpop.eup %6825 }
 0x41b   :  { %v1008_v16 = vsel %vm332_vm2, %v7359_v15, 0.0 }
 0x41c   :  { %1009 = vadd.xlane.f32.xlu1 %v1008_v16 }
 0x42d   :  { %1483 = vrot.lane.b32.xlu1 %v7238_v32, %s7003_s13 }
 0x42f   :  { %1559 = vrot.lane.b32.xlu0 %v7242_v33, %s7003_s13 }
 0x444   :  { %v989_v21 = vpop.xlane.xlu0 %988 }
 0x445   :  { %6827 = vrcp.f32 %v989_v21 }
 0x448   :  { %v992_v22 = vpop.xlane.xlu1 %991 }
 0x449   :  { %6829 = vrcp.f32 %v992_v22 }
 0x44f   :  { %v6828_v23 = vpop.eup %6827 }
 0x450   :  { %v1019_v24 = vmul.f32 %v6828_v23, %v7341_v26 }
 0x452   :  { %6257 = vmatmul.mubr.msk.f32.vlgmr.msra.gmra.mrb[6].mxu0 %vm332_vm2, %v1019_v24 }
 0x453   :  { %v6830_v34 = vpop.eup %6829  ;;  %6265 = vmatpush3.msra.mxu0 %v1180_v18  ;;  %6266 = vmatprep.mubr.msk.f32.mxu0 %vm6999_vm1, %v6998_v27 }
 0x454   :  { %v1020_v32 = vmul.f32 %v6830_v34, %v7345_v28  ;;  %6274 = vmatprep.subr.mxu0 %v6998_v27 }
 0x456   :  { %6262 = vmatmul.mubr.msk.f32.vlgmr.msra.gmra.mrb[12].mxu1 %vm332_vm2, %v1020_v32 }
 0x457   :  { %6270 = vmatpush3.msra.mxu1 %v1256_v17  ;;  %6271 = vmatprep.mubr.msk.f32.mxu1 %vm6999_vm1, %v6998_v27 }
 0x458   :  { %6279 = vmatprep.subr.mxu1 %v6998_v27 }
 0x49d   :  { %v995_v33 = vpop.xlane.xlu0 %994 }
 0x49e   :  { %6831 = vrcp.f32 %v995_v33 }
 0x4a1   :  { %v998_v35 = vpop.xlane.xlu1 %997 }
 0x4a2   :  { %6833 = vrcp.f32 %v998_v35  ;;  %v1001_v36 = vpop.xlane.xlu0 %1000 }
 0x4a3   :  { %6835 = vrcp.f32 %v1001_v36 }
 0x4a5   :  { %v1004_v37 = vpop.xlane.xlu1 %1003 }
 0x4a6   :  { %6837 = vrcp.f32 %v1004_v37  ;;  %v1007_v38 = vpop.xlane.xlu0 %1006 }
 0x4a7   :  { %6839 = vrcp.f32 %v1007_v38 }
 0x4a8   :  { %v6832_v39 = vpop.eup %6831 }
 0x4a9   :  { %v1010_v40 = vpop.xlane.xlu1 %1009  ;;  %v1021_v25 = vmul.f32 %v6832_v39, %v6816_v3 }
 0x4aa   :  { %6841 = vrcp.f32 %v1010_v40  ;;  %v1560_v46 = vpop.permute.xlu0 %1559 }
 0x4ab   :  { %6267 = vmatmul.mubr.msk.f32.vlgmr.msra.gmra.mrb[8].mxu0 %vm332_vm2, %v1021_v25  ;;  %v1777_v25 = vld [vmem:[%s7063_s14 + $0x10] sm:$0xff] }
 0x4ac   :  { %v6834_v41 = vpop.eup %6833  ;;  %6275 = vmatpush3.msra.mxu0 %v1332_v20  ;;  %6276 = vmatprep.mubr.msk.f32.mxu0 %vm6999_vm1, %v6998_v27 }
 0x4ad   :  { %v6836_v26 = vpop.eup %6835  ;;  %6284 = vmatprep.subr.mxu0 %v6998_v27  ;;  %v1022_v29 = vmul.f32 %v6834_v41, %v6818_v7  ;;  %v1484_v28 = vpop.permute.xlu1 %1483 }
 0x4ae   :  { %v1023_v30 = vmul.f32 %v6836_v26, %v6820_v8  ;;  %v1778_v26 = vld [vmem:[%s7063_s14 + $0x18] sm:$0xff] }
 0x4af   :  { %6272 = vmatmul.mubr.msk.f32.vlgmr.msra.gmra.mrb[14].mxu1 %vm332_vm2, %v1022_v29  ;;  %v6644_v29 = vpack.c.bf16 %v1778_v26, %v1777_v25 }
 0x4b0   :  { %v6838_v31 = vpop.eup %6837  ;;  %6277 = vmatmul.mubr.msk.f32.vlgmr.msra.gmra.mrb[10].mxu0 %vm332_vm2, %v1023_v30  ;;  %6280 = vmatpush3.msra.mxu1 %v1408_v19  ;;  %v1863_v30 = vld [vmem:[%s7068_s19 + $0x8] sm:$0xff] }
 0x4b1   :  { %v6840_v42 = vpop.eup %6839  ;;  %6285 = vmatpush3.msra.mxu0 %v1484_v28  ;;  %6281 = vmatprep.mubr.msk.f32.mxu1 %vm6999_vm1, %v6998_v27  ;;  %v1024_v43 = vmul.f32 %v6838_v31, %v6822_v11  ;;  %v1862_v28 = vld [vmem:[%s7068_s19] sm:$0xff]  ;;  %v1864_v31 = vld [vmem:[%s7068_s19 + $0x10] sm:$0xff] }
 0x4b2   :  { %6286 = vmatprep.mubr.msk.f32.mxu0 %vm6999_vm1, %v6998_v27  ;;  %6289 = vmatprep.subr.mxu1 %v6998_v27  ;;  %v1025_v45 = vmul.f32 %v6840_v42, %v7354_v12  ;;  %v6648_v42 = vpack.c.bf16 %v1863_v30, %v1862_v28 }
 0x4b3   :  { %6282 = vmatmul.mubr.msk.f32.vlgmr.msra.gmra.mrb[16].mxu1 %vm332_vm2, %v1024_v43  ;;  %6633 = vmatprep.subr.bf16.mxu0 %v6632_v59  ;;  %v1865_v43 = vld [vmem:[%s7068_s19 + $0x18] sm:$0xff] }
 0x4b4   :  { %v6842_v47 = vpop.eup %6841  ;;  %6287 = vmatmul.mubr.msk.f32.vlgmr.msra.gmra.mrb[12].mxu0 %vm332_vm2, %v1025_v45  ;;  %6290 = vmatpush3.msra.mxu1 %v1560_v46  ;;  %v6652_v45 = vpack.c.bf16 %v1865_v43, %v1864_v31  ;;  %v1866_v46 = vld [vmem:[%s7068_s19 + $0x20] sm:$0xff] }
 0x4b5   :  { %6291 = vmatprep.mubr.msk.f32.mxu1 %vm6999_vm1, %v6998_v27  ;;  %v1026_v49 = vmul.f32 %v6842_v47, %v7359_v15  ;;  %6635 = vmatpush3.bf16.msra.mxu0 %v6632_v59  ;;  %v1867_v47 = vld [vmem:[%s7068_s19 + $0x28] sm:$0xff] }
 0x4b6   :  { %6637 = vmatprep.subr.bf16.mxu0 %v6636_v63 }
 0x4b7   :  { %6292 = vmatmul.mubr.msk.f32.vlgmr.msra.gmra.mrb[18].mxu1 %vm332_vm2, %v1026_v49  ;;  %v6656_v49 = vpack.c.bf16 %v1867_v47, %v1866_v46 }
 0x4b9   :  { %6639 = vmatpush3.bf16.msra.mxu0 %v6636_v63 }
 0x4ba   :  { %6649 = vmatprep.subr.bf16.mxu0 %v6648_v42 }
 0x525   :  { %v1099_v51 = vpop.f32.mrb[6].mxu0 }
 0x526   :  { %v6258_v52 = vpop.f32.mrb[7].mxu0 }
 0x529   :  { %v1175_v54 = vpop.f32.mrb[12].mxu1 }
 0x52a   :  { %v6263_v56 = vpop.f32.mrb[13].mxu1 }
 0x57e   :  { %v1251_v2 = vpop.f32.mrb[8].mxu0 }
 0x57f   :  { %1637 = vrot.lane.b32.xlu1 %v1251_v2, %s7004_s22  ;;  %v6268_v3 = vpop.f32.mrb[9].mxu0 }
 0x582   :  { %v1327_v4 = vpop.f32.mrb[14].mxu1 }
 0x583   :  { %v1403_v5 = vpop.f32.mrb[10].mxu0  ;;  %1639 = vrot.lane.b32.xlu0 %v1327_v4, %s7004_s22  ;;  %v6273_v6 = vpop.f32.mrb[15].mxu1 }
 0x584   :  { %1645 = vrot.lane.b32.xlu1 %v1403_v5, %s7005_s23  ;;  %v6278_v7 = vpop.f32.mrb[11].mxu0  ;;  %v1868_v5 = vld [vmem:[%s7068_s19 + $0x30] sm:$0xff]  ;;  %v1869_v6 = vld [vmem:[%s7068_s19 + $0x38] sm:$0xff]  ;;  %s8008_s19 = sld [smem:[#allocation11_spill]] }
 0x585   :  { %v6660_v7 = vpack.c.bf16 %v1869_v6, %v1868_v5 }
 0x586   :  { %v1479_v8 = vpop.f32.mrb[16].mxu1 }
 0x587   :  { %v1555_v9 = vpop.f32.mrb[12].mxu0  ;;  %1647 = vrot.lane.b32.xlu0 %v1479_v8, %s7005_s23  ;;  %v6283_v10 = vpop.f32.mrb[17].mxu1 }
 0x588   :  { %1653 = vrot.lane.b32.xlu1 %v1555_v9, %s7006_s3  ;;  %v6288_v11 = vpop.f32.mrb[13].mxu0 }
 0x58a   :  { %v1631_v12 = vpop.f32.mrb[18].mxu1 }
 0x58b   :  { %1655 = vrot.lane.b32.xlu0 %v1631_v12, %s7006_s3  ;;  %v6293_v13 = vpop.f32.mrb[19].mxu1 }
 0x5f1   :  { %v1638_v14 = vpop.permute.xlu1 %1637 }
 0x5f2   :  { %v1659_v17 = vsel %vm332_vm2, %v1099_v51, %v1638_v14 }
 0x5f5   :  { %v1640_v15 = vpop.permute.xlu0 %1639 }
 0x5f6   :  { %v1646_v16 = vpop.permute.xlu1 %1645  ;;  %v1660_v22 = vsel %vm332_vm2, %v1175_v54, %v1640_v15 }
 0x5f7   :  { %v1662_v19 = vsel %vm1661_vm3, %v1659_v17, %v1646_v16 }
 0x5f9   :  { %v1648_v18 = vpop.permute.xlu0 %1647 }
 0x5fa   :  { %v1654_v20 = vpop.permute.xlu1 %1653  ;;  %v1663_v23 = vsel %vm1661_vm3, %v1660_v22, %v1648_v18  ;;  %v1981_v22 = vld [vmem:[%s7078_s30 + $0x10] sm:$0xff] }
 0x5fb   :  { %v1665_v21 = vsel %vm1664_vm4, %v1662_v19, %v1654_v20  ;;  %v1979_v20 = vld [vmem:[%s7078_s30] sm:$0xff] }
 0x5fc   :  { %6302 = vmatprep.mubr.msk.f32.mxu0 %vm193_vm0, %v1665_v21  ;;  %v1980_v21 = vld [vmem:[%s7078_s30 + $0x8] sm:$0xff] }
 0x5fd   :  { %v1656_v24 = vpop.permute.xlu0 %1655 }
 0x5fe   :  { %v1666_v34 = vsel %vm1664_vm4, %v1663_v23, %v1656_v24  ;;  %v6664_v23 = vpack.c.bf16 %v1980_v21, %v1979_v20  ;;  %v1982_v24 = vld [vmem:[%s7078_s30 + $0x18] sm:$0xff]  ;;  %s8010_s30 = sld [smem:[#allocation13_spill]] }
 0x5ff   :  { %6303 = vmatmul.mubr.msk.f32.vlgmr.msra.gmra.mrb[14].mxu0 %vm193_vm0, %v1666_v34  ;;  %v6668_v34 = vpack.c.bf16 %v1982_v24, %v1981_v22  ;;  %v2170_v24 = vld [vmem:[%s7098_s27 + $0x18] sm:$0xff] }
 0x600   :  { %6651 = vmatpush3.bf16.msra.mxu0 %v6648_v42  ;;  %v5927_v42 = vld [vmem:[%s7073_s24] ss:$0 sm:$0xff]  ;;  %s8009_s24 = sld [smem:[#allocation14_spill]] }
 0x601   :  { %6653 = vmatprep.subr.bf16.mxu0 %v6652_v45 }
 0x604   :  { %6655 = vmatpush3.bf16.msra.mxu0 %v6652_v45 }
 0x605   :  { %6657 = vmatprep.subr.bf16.mxu0 %v6656_v49 }
 0x608   :  { %6659 = vmatpush3.bf16.msra.mxu0 %v6656_v49  ;;  %v2075_v49 = vld [vmem:[%s7088_s12 + $0x10] sm:$0xff] }
 0x609   :  { %6661 = vmatprep.subr.bf16.mxu0 %v6660_v7 }
 0x60c   :  { %6663 = vmatpush3.bf16.msra.mxu0 %v6660_v7 }
 0x6d2   :  { %v6304_v32 = vpop.f32.mrb[14].mxu0 }
 0x6d3   :  { %v7414_v33 = vadd.f32 %v6304_v32, %v7179_v1  ;;  %v1739_v35 = vpop.f32.mrb[15].mxu0  ;;  %v1775_v1 = vld [vmem:[%s7063_s14] sm:$0xff] }
 0x6d4   :  { %v7417_v36 = vadd.f32 %v1739_v35, %v7176_v0  ;;  %v1776_v0 = vld [vmem:[%s7063_s14 + $0x8] sm:$0xff]  ;;  %v7453_v32 = vld [vmem:[%s7023_s9] sm:$0xff]  ;;  %s8005_s14 = sld [smem:[#allocation8_spill]] }
 0x6d5   :  { %v1752_v37 = vmul.f32 %v7414_v33, %v7414_v33  ;;  %v6640_v41 = vpack.c.bf16 %v1776_v0, %v1775_v1  ;;  %v2264_v35 = vmul.f32 %v7453_v32, %v7453_v32 }
 0x6d6   :  { %v1751_v38 = vmul.f32 %v7417_v36, %v7417_v36 }
 0x6d7   :  { %v1756_v39 = vsel %vm193_vm0, %v1752_v37, 0.0  ;;  %6641 = vmatprep.subr.bf16.mxu1 %v6640_v41  ;;  %v2266_v37 = vsel %vm193_vm0, %v2264_v35, 0.0 }
 0x6d8   :  { %1757 = vadd.xlane.f32.xlu0 %v1756_v39  ;;  %v1753_v40 = vsel %vm193_vm0, %v1751_v38, 0.0  ;;  %6643 = vmatpush3.bf16.msra.mxu1 %v6640_v41  ;;  %v2073_v39 = vld [vmem:[%s7088_s12] sm:$0xff] }
 0x6d9   :  { %1754 = vadd.xlane.f32.xlu1 %v1753_v40  ;;  %6645 = vmatprep.subr.bf16.mxu1 %v6644_v29  ;;  %v2074_v40 = vld [vmem:[%s7088_s12 + $0x8] sm:$0xff] }
 0x6da   :  { %v6672_v1 = vpack.c.bf16 %v2074_v40, %v2073_v39  ;;  %v5931_v35 = vld [vmem:[%s8005_s14] ss:$0 sm:$0xff] }
 0x6dc   :  { %6647 = vmatpush3.bf16.msra.mxu1 %v6644_v29 }
 0x6dd   :  { %6665 = vmatprep.subr.bf16.mxu1 %v6664_v23 }
 0x765   :  { %v1758_v51 = vpop.xlane.xlu0 %1757 }
 0x766   :  { %v1760_v52 = vmul.f32 0.03125, %v1758_v51  ;;  %v1755_v54 = vpop.xlane.xlu1 %1754  ;;  %v2076_v51 = vld [vmem:[%s7088_s12 + $0x18] sm:$0xff]  ;;  %s8011_s12 = sld [smem:[#allocation12_spill]] }
 0x767   :  { %v1759_v56 = vmul.f32 0.03125, %v1755_v54  ;;  %v2288_v54 = vld [vmem:[%s7113_s17] sm:$0xff] }
 0x768   :  { %v1762_v57 = vadd.f32 1e-06, %v1760_v52  ;;  %v6676_v52 = vpack.c.bf16 %v2076_v51, %v2075_v49 }
 0x769   :  { %v1761_v58 = vadd.f32 1e-06, %v1759_v56  ;;  %v2289_v56 = vld [vmem:[%s7113_s17 + $0x8] sm:$0xff] }
 0x76a   :  { %6843 = vrsqrt.f32 %v1762_v57  ;;  %v6688_v57 = vpack.c.bf16 %v2289_v56, %v2288_v54 }
 0x76b   :  { %6845 = vrsqrt.f32 %v1761_v58  ;;  %v2167_v58 = vld [vmem:[%s7098_s27] sm:$0xff] }
 0x774   :  { %v6844_v59 = vpop.eup %6843 }
 0x775   :  { %v6846_v61 = vpop.eup %6845  ;;  %v1766_v63 = vmul.f32 %v6844_v59, %v7414_v33  ;;  %v2168_v59 = vld [vmem:[%s7098_s27 + $0x8] sm:$0xff] }
 0x776   :  { %v1765_v2 = vmul.f32 %v6846_v61, %v7417_v36  ;;  %v6680_v61 = vpack.c.bf16 %v2168_v59, %v2167_v58 }
 0x777   :  { %v1774_v4 = vmul.f32 %v5922_v62, %v1766_v63 }
 0x778   :  { %v1773_v3 = vmul.f32 %v5922_v62, %v1765_v2  ;;  %6681 = vmatprep.subr.bf16.mxu0 %v6680_v61 }
 0x77a   :  { %6313 = vmatprep.mubr.msk.f32.mxu1 %vm193_vm0, %v1773_v3 }
 0x77b   :  { %6314 = vmatmul.mubr.msk.f32.vlgmr.msra.gmra.mrb[20].mxu1 %vm193_vm0, %v1774_v4 }
 0x77c   :  { %6667 = vmatpush3.bf16.msra.mxu1 %v6664_v23  ;;  %v2169_v23 = vld [vmem:[%s7098_s27 + $0x10] sm:$0xff]  ;;  %s8012_s27 = sld [smem:[#allocation15_spill]] }
 0x77d   :  { %6669 = vmatprep.subr.bf16.mxu1 %v6668_v34 }
 0x780   :  { %6671 = vmatpush3.bf16.msra.mxu1 %v6668_v34  ;;  %v6684_v34 = vpack.c.bf16 %v2170_v24, %v2169_v23 }
 0x781   :  { %6673 = vmatprep.subr.bf16.mxu1 %v6672_v1 }
 0x84e   :  { %v6315_v8 = vpop.f32.mrb[20].mxu1 }
 0x84f   :  { %v1851_v9 = vpop.f32.mrb[21].mxu1  ;;  %v1861_v11 = vmax.f32 %v6315_v8, 0.0 }
 0x850   :  { %v1860_v10 = vmax.f32 %v1851_v9, 0.0 }
 0x852   :  { %6332 = vmatprep.mubr.msk.f32.mxu0 %vm1870_vm5, %v1860_v10 }
 0x853   :  { %6333 = vmatmul.mubr.msk.f32.vlgmr.msra.gmra.mrb[16].mxu0 %vm1870_vm5, %v1861_v11 }
 0x854   :  { %6683 = vmatpush3.bf16.msra.mxu0 %v6680_v61 }
 0x855   :  { %6685 = vmatprep.subr.bf16.mxu0 %v6684_v34 }
 0x858   :  { %6687 = vmatpush3.bf16.msra.mxu0 %v6684_v34 }
 0x859   :  { %6379 = vmatprep.subr.mxu0 %v6998_v27 }
 0x926   :  { %v6334_v12 = vpop.f32.mrb[16].mxu0 }
 0x927   :  { %v1953_v13 = vadd.f32 %v6334_v12, %v7414_v33  ;;  %v1943_v14 = vpop.f32.mrb[17].mxu0  ;;  %v7456_v33 = vld [vmem:[%s7023_s9 + $0x8] sm:$0xff]  ;;  %s8003_s9 = sld [smem:[#allocation7_spill]]  ;;  %v5937_v12 = vld [vmem:[%s8004_s8] ss:$0 sm:$0xff] }
 0x928   :  { %v1952_v15 = vadd.f32 %v1943_v14, %v7417_v36  ;;  %v2265_v36 = vmul.f32 %v7456_v33, %v7456_v33  ;;  %v2290_v14 = vld [vmem:[%s7113_s17 + $0x10] sm:$0xff] }
 0x929   :  { %v1956_v16 = vmul.f32 %v1953_v13, %v1953_v13 }
 0x92a   :  { %v1955_v17 = vmul.f32 %v1952_v15, %v1952_v15  ;;  %v2269_v38 = vsel %vm193_vm0, %v2265_v36, 0.0 }
 0x92b   :  { %v1960_v18 = vsel %vm193_vm0, %v1956_v16, 0.0 }
 0x92c   :  { %1961 = vadd.xlane.f32.xlu1 %v1960_v18  ;;  %v1957_v19 = vsel %vm193_vm0, %v1955_v17, 0.0 }
 0x92d   :  { %1958 = vadd.xlane.f32.xlu0 %v1957_v19  ;;  %v5928_v7 = vld [vmem:[%s8003_s9] ss:$0 sm:$0xff] }
 0x930   :  { %2270 = vadd.xlane.f32.xlu1 %v2269_v38 }
 0x931   :  { %2267 = vadd.xlane.f32.xlu0 %v2266_v37 }
 0x9b9   :  { %v1962_v0 = vpop.xlane.xlu1 %1961 }
 0x9ba   :  { %v1964_v25 = vmul.f32 0.03125, %v1962_v0  ;;  %v1959_v41 = vpop.xlane.xlu0 %1958 }
 0x9bb   :  { %v1963_v26 = vmul.f32 0.03125, %v1959_v41 }
 0x9bc   :  { %v1966_v29 = vadd.f32 1e-06, %v1964_v25 }
 0x9bd   :  { %v1965_v28 = vadd.f32 1e-06, %v1963_v26  ;;  %v2271_v3 = vpop.xlane.xlu1 %2270 }
 0x9be   :  { %6847 = vrsqrt.f32 %v1966_v29  ;;  %v2268_v62 = vpop.xlane.xlu0 %2267  ;;  %v2273_v4 = vmul.f32 0.03125, %v2271_v3 }
 0x9bf   :  { %6849 = vrsqrt.f32 %v1965_v28  ;;  %v2272_v63 = vmul.f32 0.03125, %v2268_v62 }
 0x9c0   :  { %v2275_v5 = vadd.f32 1e-06, %v2273_v4 }
 0x9c1   :  { %v2274_v2 = vadd.f32 1e-06, %v2272_v63 }
 0x9c3   :  { %6851 = vrsqrt.f32 %v2274_v2 }
 0x9c4   :  { %6853 = vrsqrt.f32 %v2275_v5 }
 0x9c8   :  { %v6848_v30 = vpop.eup %6847 }
 0x9c9   :  { %v6850_v31 = vpop.eup %6849  ;;  %v1970_v43 = vmul.f32 %v6848_v30, %v1953_v13 }
 0x9ca   :  { %v1969_v45 = vmul.f32 %v6850_v31, %v1952_v15  ;;  %v2291_v15 = vld [vmem:[%s7113_s17 + $0x18] sm:$0xff]  ;;  %s8006_s17 = sld [smem:[#allocation9_spill]] }
 0x9cb   :  { %v7469_v47 = vmul.f32 %v5927_v42, %v1970_v43  ;;  %v6692_v20 = vpack.c.bf16 %v2291_v15, %v2290_v14 }
 0x9cc   :  { %v7467_v46 = vmul.f32 %v5927_v42, %v1969_v45 }
 0x9cd   :  { %v6852_v6 = vpop.eup %6851 }
 0x9ce   :  { %6343 = vmatprep.mubr.msk.f32.mxu1 %vm193_vm0, %v7467_v46  ;;  %v2278_v9 = vmul.f32 %v6852_v6, %v7453_v32  ;;  %v6854_v16 = vpop.eup %6853 }
 0x9cf   :  { %6344 = vmatmul.mubr.msk.f32.vlgmr.msra.gmra.mrb[22].mxu1 %vm193_vm0, %v7469_v47  ;;  %v2279_v21 = vmul.f32 %v6854_v16, %v7456_v33 }
 0x9d0   :  { %6675 = vmatpush3.bf16.msra.mxu1 %v6672_v1  ;;  %v2286_v18 = vmul.f32 %v5937_v12, %v2278_v9  ;;  %v5934_v45 = vld [vmem:[%s8006_s17] ss:$0 sm:$0xff] }
 0x9d1   :  { %6677 = vmatprep.subr.bf16.mxu1 %v6676_v52  ;;  %v2287_v22 = vmul.f32 %v5937_v12, %v2279_v21  ;;  %v7007_v12 = vmov -1e+09  }
 0x9d4   :  { %6679 = vmatpush3.bf16.msra.mxu1 %v6676_v52 }
 0x9d5   :  { %6689 = vmatprep.subr.bf16.mxu1 %v6688_v57 }
 0xaa2   :  { %v6345_v8 = vpop.f32.mrb[22].mxu1 }
 0xaa3   :  { %v2068_v10 = vadd.f32 %v6345_v8, %v5928_v7  ;;  %v2062_v11 = vpop.f32.mrb[23].mxu1 }
 0xaa4   :  { %v2063_v13 = vadd.f32 %v5928_v7, %v2062_v11  ;;  %v7601_v7 = vand.u32 127, %v137_v44 }
 0xaa5   :  { %v2072_v19 = vmax.f32 %v2068_v10, 0.0 }
 0xaa6   :  { %v2071_v17 = vmax.f32 %v2063_v13, 0.0  ;;  %vm186_vm6 = vcmp.le.s32.totalorder %v7601_v7, %v7296_v48 }
 0xaa7   :  { %v187_v13 = vsel %vm186_vm6, 0.0, %v7007_v12 }
 0xaa8   :  { %6354 = vmatprep.mubr.msk.f32.mxu1 %vm193_vm0, %v2071_v17 }
 0xaa9   :  { %6355 = vmatmul.mubr.msk.f32.vlgmr.msra.gmra.mrb[24].mxu1 %vm193_vm0, %v2072_v19 }
 0xaaa   :  { %6691 = vmatpush3.bf16.msra.mxu1 %v6688_v57  ;;  %6376 = vmatprep.mubr.msk.f32.mxu1 %vm193_vm0, %v2286_v18 }
 0xaab   :  { %6693 = vmatprep.subr.bf16.mxu1 %v6692_v20 }
 0xaae   :  { %6695 = vmatpush3.bf16.msra.mxu1 %v6692_v20 }
 0xaaf   :  { %6384 = vmatprep.subr.mxu1 %v6998_v27 }
 0xab1   :  { %6377 = vmatmul.mubr.msk.f32.vlgmr.msra.gmra.mrb[26].mxu1 %vm193_vm0, %v2287_v22 }
 0xab2   :  { %6386 = vmatprep.mubr.msk.f32.mxu1 %vm6999_vm1, %v6998_v27 }
 0xb7c   :  { %v6356_v36 = vpop.f32.mrb[24].mxu1 }
 0xb7d   :  { %v2162_v37 = vadd.f32 %v6356_v36, %v5931_v35  ;;  %v2156_v38 = vpop.f32.mrb[25].mxu1 }
 0xb7e   :  { %v2157_v39 = vadd.f32 %v5931_v35, %v2156_v38 }
 0xb7f   :  { %v2166_v1 = vmax.f32 %v2162_v37, 0.0 }
 0xb80   :  { %v2165_v40 = vmax.f32 %v2157_v39, 0.0 }
 0xb82   :  { %6365 = vmatprep.mubr.msk.f32.mxu0 %vm193_vm0, %v2165_v40 }
 0xb83   :  { %6366 = vmatmul.mubr.msk.f32.vlgmr.msra.gmra.mrb[18].mxu0 %vm193_vm0, %v2166_v1 }
 0xb84   :  { %v7500_v0 = vpop.f32.mrb[26].mxu1  ;;  %6381 = vmatprep.mubr.msk.f32.mxu0 %vm6999_vm1, %v6998_v27 }
 0xb85   :  { %2381 = vrot.lane.b32.xlu1 %v7500_v0, %s6996_s0  ;;  %v7506_v25 = vpop.f32.mrb[27].mxu1 }
 0xb86   :  { %2379 = vrot.lane.b32.xlu0 %v7506_v25, %s6996_s0 }
 0xb89   :  { %2383 = vrot.lane.b32.xlu1 %v7506_v25, %s6997_s5 }
 0xb8a   :  { %2385 = vrot.lane.b32.xlu0 %v7500_v0, %s6997_s5 }
 0xb8d   :  { %2387 = vrot.lane.b32.xlu1 %v7506_v25, %s7000_s25 }
 0xb8e   :  { %2389 = vrot.lane.b32.xlu0 %v7500_v0, %s7000_s25 }
 0xb91   :  { %2401 = vrot.lane.b32.xlu1 %v7506_v25, %s7001_s29 }
 0xb92   :  { %2477 = vrot.lane.b32.xlu0 %v7500_v0, %s7001_s29 }
 0xbf7   :  { %v7522_v41 = vpop.permute.xlu1 %2381 }
 0xbf8   :  { %2629 = vrot.lane.b32.xlu0 %v7522_v41, %s7001_s29  ;;  %v7526_v26 = vpop.permute.xlu0 %2379 }
 0xbf9   :  { %2553 = vrot.lane.b32.xlu1 %v7526_v26, %s7001_s29 }
 0xbfb   :  { %v7530_v29 = vpop.permute.xlu1 %2383 }
 0xbfc   :  { %v7532_v28 = vpop.permute.xlu0 %2385 }
 0xbfd   :  { %2705 = vrot.lane.b32.xlu1 %v7530_v29, %s7001_s29  ;;  %2781 = vrot.lane.b32.xlu0 %v7532_v28, %s7001_s29 }
 0xbff   :  { %v7538_v30 = vpop.permute.xlu1 %2387 }
 0xc00   :  { %v7540_v31 = vpop.permute.xlu0 %2389 }
 0xc01   :  { %2857 = vrot.lane.b32.xlu1 %v7538_v30, %s7001_s29  ;;  %2933 = vrot.lane.b32.xlu0 %v7540_v31, %s7001_s29 }
 0xc03   :  { %v2402_v42 = vpop.permute.xlu1 %2401 }
 0xc04   :  { %6380 = vmatpush3.xpose.msk.msra.mxu0 %vm332_vm2, %v2402_v42  ;;  %v2478_v43 = vpop.permute.xlu0 %2477 }
 0xc05   :  { %6385 = vmatpush3.xpose.msk.msra.mxu1 %vm332_vm2, %v2478_v43  ;;  %6389 = vmatprep.subr.mxu0 %v6998_v27 }
 0xc06   :  { %6394 = vmatprep.subr.mxu1 %v6998_v27 }
 0xc07   :  { %6382 = vmatmul.mubr.msk.f32.vlgmr.msra.gmra.mrb[20].mxu0 %vm332_vm2, %v7506_v25 }
 0xc08   :  { %6387 = vmatmul.mubr.msk.f32.vlgmr.msra.gmra.mrb[28].mxu1 %vm332_vm2, %v7500_v0  ;;  %6391 = vmatprep.mubr.msk.f32.mxu0 %vm6999_vm1, %v6998_v27 }
 0xc09   :  { %6396 = vmatprep.mubr.msk.f32.mxu1 %vm6999_vm1, %v6998_v27 }
 0xc56   :  { %v6367_v49 = vpop.f32.mrb[18].mxu0 }
 0xc57   :  { %v2256_v51 = vadd.f32 %v6367_v49, %v5934_v45  ;;  %v2250_v52 = vpop.f32.mrb[19].mxu0 }
 0xc58   :  { %v2251_v54 = vadd.f32 %v5934_v45, %v2250_v52 }
 0xc59   :  { %2260 = vst [vmem:[%s7168_s21 + $0x8] sm:$0xff] %v2256_v51 }
 0xc5a   :  { %2259 = vst [vmem:[%s7168_s21] sm:$0xff] %v2251_v54  ;;  %s8007_s21 = sld [smem:[#allocation5_spill]] }
 0xc60   :  { %v156_v63 = vld [vmem:[%s8007_s21] sm:$0x3] }
 0xc61   :  { %v157_v2 = vsub.f32 1.0, %v156_v63 }
 0xc63   :  { %v158_v3 = vmul.f32 -1e+09, %v157_v2 }
 0xc65   :  { %v166_v4 = vrot.slane %v158_v3, %v7299_v50 }
 0xc67   :  { %v167_v5 = vcombine.high %v166_v4, %v166_v4  ;;  %v174_v6 = vrot.slane %v166_v4, %v7299_v50 }
 0xc69   :  { %v181_v8 = vrot.slane %v167_v5, %v7299_v50  ;;  %v2394_v9 = vrot.slane %v174_v6, %v7304_v53 }
 0xc6a   :  { %v2630_v56 = vpop.permute.xlu0 %2629 }
 0xc6b   :  { %v2554_v57 = vpop.permute.xlu1 %2553  ;;  %6395 = vmatpush3.xpose.msk.msra.mxu1 %vm332_vm2, %v2630_v56  ;;  %v2398_v10 = vrot.slane %v181_v8, %v7304_v53 }
 0xc6c   :  { %6390 = vmatpush3.xpose.msk.msra.mxu0 %vm332_vm2, %v2554_v57  ;;  %6404 = vmatprep.subr.mxu1 %v6998_v27 }
 0xc6d   :  { %6399 = vmatprep.subr.mxu0 %v6998_v27 }
 0xc6e   :  { %6397 = vmatmul.mubr.msk.f32.vlgmr.msra.gmra.mrb[30].mxu1 %vm332_vm2, %v7522_v41 }
 0xc6f   :  { %6392 = vmatmul.mubr.msk.f32.vlgmr.msra.gmra.mrb[22].mxu0 %vm332_vm2, %v7526_v26  ;;  %v2706_v58 = vpop.permute.xlu1 %2705  ;;  %v2782_v59 = vpop.permute.xlu0 %2781  ;;  %6406 = vmatprep.mubr.msk.f32.mxu1 %vm6999_vm1, %v6998_v27 }
 0xc70   :  { %6400 = vmatpush3.xpose.msk.msra.mxu0 %vm332_vm2, %v2706_v58  ;;  %6405 = vmatpush3.xpose.msk.msra.mxu1 %vm332_vm2, %v2782_v59 }
 0xc71   :  { %6401 = vmatprep.mubr.msk.f32.mxu0 %vm6999_vm1, %v6998_v27  ;;  %6409 = vmatprep.subr.mxu0 %v6998_v27 }
 0xc72   :  { %6414 = vmatprep.subr.mxu1 %v6998_v27 }
 0xc73   :  { %6402 = vmatmul.mubr.msk.f32.vlgmr.msra.gmra.mrb[24].mxu0 %vm332_vm2, %v7530_v29  ;;  %v2858_v61 = vpop.permute.xlu1 %2857  ;;  %6407 = vmatmul.mubr.msk.f32.vlgmr.msra.gmra.mrb[32].mxu1 %vm332_vm2, %v7532_v28  ;;  %v2934_v62 = vpop.permute.xlu0 %2933 }
 0xc74   :  { %6410 = vmatpush3.xpose.msk.msra.mxu0 %vm332_vm2, %v2858_v61  ;;  %6415 = vmatpush3.xpose.msk.msra.mxu1 %vm332_vm2, %v2934_v62 }
 0xc75   :  { %6411 = vmatprep.mubr.msk.f32.mxu0 %vm6999_vm1, %v6998_v27  ;;  %6416 = vmatprep.mubr.msk.f32.mxu1 %vm6999_vm1, %v6998_v27 }
 0xc76   :  { %6419 = vmatprep.subr.mxu0 %v6998_v27  ;;  %6424 = vmatprep.subr.mxu1 %v6998_v27 }
 0xc77   :  { %6412 = vmatmul.mubr.msk.f32.vlgmr.msra.gmra.mrb[26].mxu0 %vm332_vm2, %v7538_v30  ;;  %6417 = vmatmul.mubr.msk.f32.vlgmr.msra.gmra.mrb[34].mxu1 %vm332_vm2, %v7540_v31 }
 0xc78   :  { %6421 = vmatprep.mubr.msk.f32.mxu0 %vm6999_vm1, %v6998_v27  ;;  %6426 = vmatprep.mubr.msk.f32.mxu1 %vm6999_vm1, %v6998_v27 }
 0xcda   :  { %v2473_v11 = vpop.f32.mrb[20].mxu0 }
 0xcdb   :  { %v2474_v14 = vadd.f32 %v2473_v11, %v2394_v9  ;;  %v6383_v15 = vpop.f32.mrb[21].mxu0  ;;  %v2549_v16 = vpop.f32.mrb[28].mxu1 }
 0xcdc   :  { %v2550_v17 = vadd.f32 %v2549_v16, %v2398_v10  ;;  %v6388_v18 = vpop.f32.mrb[29].mxu1 }
 0xcdd   :  { %v3009_v19 = vadd.f32 %v2474_v14, %v187_v13 }
 0xcde   :  { %v3010_v44 = vadd.f32 %v2550_v17, %v187_v13 }
 0xcdf   :  { %v3017_v20 = vsel %vm332_vm2, %v3009_v19, -inf }
 0xce0   :  { %3018 = vmax.xlane.f32.xlu1 %v3017_v20  ;;  %v3020_v50 = vsel %vm332_vm2, %v3010_v44, -inf }
 0xce1   :  { %3021 = vmax.xlane.f32.xlu0 %v3020_v50 }
 0xd41   :  { %v2701_v21 = vpop.f32.mrb[30].mxu1 }
 0xd42   :  { %v2702_v48 = vadd.f32 %v2701_v21, %v2398_v10  ;;  %v2625_v22 = vpop.f32.mrb[22].mxu0  ;;  %v6398_v53 = vpop.f32.mrb[31].mxu1 }
 0xd43   :  { %v2626_v23 = vadd.f32 %v2625_v22, %v2394_v9  ;;  %v6393_v24 = vpop.f32.mrb[23].mxu0 }
 0xd44   :  { %v3012_v34 = vadd.f32 %v2702_v48, %v187_v13 }
 0xd45   :  { %v3011_v35 = vadd.f32 %v2626_v23, %v187_v13 }
 0xd46   :  { %v2777_v36 = vpop.f32.mrb[24].mxu0  ;;  %v2853_v37 = vpop.f32.mrb[32].mxu1  ;;  %v3026_v38 = vsel %vm332_vm2, %v3012_v34, -inf }
 0xd47   :  { %v2778_v39 = vadd.f32 %v2777_v36, %v2394_v9  ;;  %v2854_v40 = vadd.f32 %v2853_v37, %v2398_v10  ;;  %v6403_v1 = vpop.f32.mrb[25].mxu0  ;;  %3027 = vmax.xlane.f32.xlu1 %v3026_v38  ;;  %v6408_v42 = vpop.f32.mrb[33].mxu1  ;;  %v3023_v43 = vsel %vm332_vm2, %v3011_v35, -inf }
 0xd48   :  { %3024 = vmax.xlane.f32.xlu0 %v3023_v43 }
 0xd49   :  { %v3013_v45 = vadd.f32 %v2778_v39, %v187_v13  ;;  %v3014_v49 = vadd.f32 %v2854_v40, %v187_v13 }
 0xd4a   :  { %v2929_v51 = vpop.f32.mrb[26].mxu0  ;;  %v3005_v52 = vpop.f32.mrb[34].mxu1 }
 0xd4b   :  { %v2930_v54 = vadd.f32 %v2929_v51, %v2394_v9  ;;  %v3006_v56 = vadd.f32 %v3005_v52, %v2398_v10  ;;  %v6413_v57 = vpop.f32.mrb[27].mxu0  ;;  %v6418_v58 = vpop.f32.mrb[35].mxu1  ;;  %v3029_v59 = vsel %vm332_vm2, %v3013_v45, -inf  ;;  %v3032_v61 = vsel %vm332_vm2, %v3014_v49, -inf }
 0xd4c   :  { %3030 = vmax.xlane.f32.xlu0 %v3029_v59  ;;  %3033 = vmax.xlane.f32.xlu1 %v3032_v61 }
 0xd4d   :  { %v3015_v62 = vadd.f32 %v2930_v54, %v187_v13  ;;  %v3016_v63 = vadd.f32 %v3006_v56, %v187_v13 }
 0xd4f   :  { %v3035_v2 = vsel %vm332_vm2, %v3015_v62, -inf  ;;  %v3038_v3 = vsel %vm332_vm2, %v3016_v63, -inf }
 0xd50   :  { %3036 = vmax.xlane.f32.xlu0 %v3035_v2  ;;  %3039 = vmax.xlane.f32.xlu1 %v3038_v3 }
 0xd61   :  { %3181 = vrot.lane.b32.xlu1 %v7500_v0, %s7003_s13 }
 0xd65   :  { %3257 = vrot.lane.b32.xlu1 %v7526_v26, %s7003_s13 }
 0xd66   :  { %3105 = vrot.lane.b32.xlu0 %v7506_v25, %s7003_s13 }
 0xd69   :  { %3409 = vrot.lane.b32.xlu1 %v7530_v29, %s7003_s13 }
 0xd6a   :  { %3333 = vrot.lane.b32.xlu0 %v7522_v41, %s7003_s13 }
 0xd6d   :  { %v3019_v4 = vpop.xlane.xlu1 %3018 }
 0xd6e   :  { %3485 = vrot.lane.b32.xlu0 %v7532_v28, %s7003_s13  ;;  %v3022_v5 = vpop.xlane.xlu0 %3021  ;;  %v3041_v6 = vsub.f32 %v3009_v19, %v3019_v4 }
 0xd6f   :  { %v3042_v8 = vsub.f32 %v3010_v44, %v3022_v5 }
 0xd70   :  { %v3049_v0 = vmul.f32 1.442695, %v3041_v6 }
 0xd71   :  { %v3051_v9 = vmul.f32 1.442695, %v3042_v8 }
 0xd72   :  { %6855 = vpow2.f32 %v3049_v0 }
 0xd73   :  { %6857 = vpow2.f32 %v3051_v9 }
 0xd7c   :  { %v7628_v26 = vpop.eup %6855 }
 0xd7d   :  { %v7630_v25 = vpop.eup %6857  ;;  %v3065_v29 = vsel %vm332_vm2, %v7628_v26, 0.0 }
 0xd7e   :  { %v3068_v41 = vsel %vm332_vm2, %v7630_v25, 0.0 }
 0xd8d   :  { %3066 = vadd.xlane.f32.xlu0 %v3065_v29  ;;  %3069 = vadd.xlane.f32.xlu1 %v3068_v41 }
 0xdd4   :  { %v3028_v28 = vpop.xlane.xlu1 %3027 }
 0xdd5   :  { %v3044_v10 = vsub.f32 %v3012_v34, %v3028_v28  ;;  %v3025_v11 = vpop.xlane.xlu0 %3024 }
 0xdd6   :  { %v3043_v12 = vsub.f32 %v3011_v35, %v3025_v11 }
 0xdd7   :  { %v3055_v13 = vmul.f32 1.442695, %v3044_v10 }
 0xdd8   :  { %v3053_v14 = vmul.f32 1.442695, %v3043_v12 }
 0xdd9   :  { %6859 = vpow2.f32 %v3055_v13  ;;  %v3034_v15 = vpop.xlane.xlu1 %3033  ;;  %v3031_v16 = vpop.xlane.xlu0 %3030 }
 0xdda   :  { %6861 = vpow2.f32 %v3053_v14  ;;  %v3046_v17 = vsub.f32 %v3014_v49, %v3034_v15  ;;  %v3045_v18 = vsub.f32 %v3013_v45, %v3031_v16 }
 0xddc   :  { %v3059_v19 = vmul.f32 1.442695, %v3046_v17  ;;  %v3057_v44 = vmul.f32 1.442695, %v3045_v18 }
 0xddd   :  { %v3040_v20 = vpop.xlane.xlu1 %3039  ;;  %v3037_v50 = vpop.xlane.xlu0 %3036 }
 0xdde   :  { %6863 = vpow2.f32 %v3059_v19  ;;  %v3048_v21 = vsub.f32 %v3016_v63, %v3040_v20  ;;  %v3047_v48 = vsub.f32 %v3015_v62, %v3037_v50  ;;  %v2373_v19 = vld [vmem:[%s8008_s19] sm:$0xff]  ;;  %v2375_v50 = vld [vmem:[%s8008_s19 + $0x10] sm:$0xff] }
 0xddf   :  { %6865 = vpow2.f32 %v3057_v44  ;;  %v2374_v44 = vld [vmem:[%s8008_s19 + $0x8] sm:$0xff] }
 0xde0   :  { %v3063_v22 = vmul.f32 1.442695, %v3048_v21  ;;  %v3061_v53 = vmul.f32 1.442695, %v3047_v48  ;;  %v6696_v20 = vpack.c.bf16 %v2374_v44, %v2373_v19  ;;  %v2376_v21 = vld [vmem:[%s8008_s19 + $0x18] sm:$0xff] }
 0xde1   :  { %v3182_v23 = vpop.permute.xlu1 %3181  ;;  %v3106_v24 = vpop.permute.xlu0 %3105  ;;  %v6700_v48 = vpack.c.bf16 %v2376_v21, %v2375_v50  ;;  %v5966_v50 = vld [vmem:[%s8011_s12] ss:$0 sm:$0xff] }
 0xde2   :  { %6867 = vpow2.f32 %v3063_v22  ;;  %6420 = vmatpush3.msra.mxu0 %v3106_v24  ;;  %6425 = vmatpush3.msra.mxu1 %v3182_v23  ;;  %v3936_v22 = vld [vmem:[%s8009_s24] sm:$0xff] }
 0xde3   :  { %v6860_v34 = vpop.eup %6859  ;;  %6869 = vpow2.f32 %v3061_v53  ;;  %6429 = vmatprep.subr.mxu0 %v6998_v27  ;;  %6434 = vmatprep.subr.mxu1 %v6998_v27  ;;  %v3937_v53 = vld [vmem:[%s8009_s24 + $0x8] sm:$0xff] }
 0xde4   :  { %v6862_v35 = vpop.eup %6861  ;;  %v3074_v36 = vsel %vm332_vm2, %v6860_v34, 0.0  ;;  %v6712_v23 = vpack.c.bf16 %v3937_v53, %v3936_v22 }
 0xde5   :  { %3075 = vadd.xlane.f32.xlu1 %v3074_v36  ;;  %v3071_v37 = vsel %vm332_vm2, %v6862_v35, 0.0  ;;  %v3258_v51 = vpop.permute.xlu1 %3257  ;;  %v3334_v52 = vpop.permute.xlu0 %3333 }
 0xde6   :  { %3072 = vadd.xlane.f32.xlu0 %v3071_v37 }
 0xde8   :  { %v6864_v38 = vpop.eup %6863 }
 0xde9   :  { %v6866_v39 = vpop.eup %6865  ;;  %v3080_v40 = vsel %vm332_vm2, %v6864_v38, 0.0  ;;  %v3410_v54 = vpop.permute.xlu1 %3409 }
 0xdea   :  { %3081 = vadd.xlane.f32.xlu1 %v3080_v40  ;;  %v3077_v1 = vsel %vm332_vm2, %v6866_v39, 0.0  ;;  %v3486_v56 = vpop.permute.xlu0 %3485 }
 0xdeb   :  { %3078 = vadd.xlane.f32.xlu0 %v3077_v1 }
 0xdec   :  { %v7642_v42 = vpop.eup %6867 }
 0xded   :  { %v7644_v43 = vpop.eup %6869  ;;  %v3086_v45 = vsel %vm332_vm2, %v7642_v42, 0.0 }
 0xdee   :  { %3087 = vadd.xlane.f32.xlu1 %v3086_v45  ;;  %v3083_v49 = vsel %vm332_vm2, %v7644_v43, 0.0 }
 0xdef   :  { %3084 = vadd.xlane.f32.xlu0 %v3083_v49 }
 0xdff   :  { %3561 = vrot.lane.b32.xlu1 %v7538_v30, %s7003_s13 }
 0xe05   :  { %3637 = vrot.lane.b32.xlu0 %v7540_v31, %s7003_s13 }
 0xe1a   :  { %v3070_v57 = vpop.xlane.xlu1 %3069  ;;  %v3067_v58 = vpop.xlane.xlu0 %3066 }
 0xe1b   :  { %6871 = vrcp.f32 %v3070_v57  ;;  %v3938_v57 = vld [vmem:[%s8009_s24 + $0x10] sm:$0xff] }
 0xe1c   :  { %6873 = vrcp.f32 %v3067_v58  ;;  %v3939_v58 = vld [vmem:[%s8009_s24 + $0x18] sm:$0xff] }
 0xe25   :  { %v6872_v59 = vpop.eup %6871 }
 0xe26   :  { %v6874_v61 = vpop.eup %6873  ;;  %v3098_v62 = vmul.f32 %v6872_v59, %v7630_v25 }
 0xe27   :  { %v3097_v63 = vmul.f32 %v6874_v61, %v7628_v26 }
 0xe28   :  { %6427 = vmatmul.mubr.msk.f32.vlgmr.msra.gmra.mrb[36].mxu1 %vm332_vm2, %v3098_v62 }
 0xe29   :  { %6422 = vmatmul.mubr.msk.f32.vlgmr.msra.gmra.mrb[28].mxu0 %vm332_vm2, %v3097_v63  ;;  %6435 = vmatpush3.msra.mxu1 %v3334_v52 }
 0xe2a   :  { %6430 = vmatpush3.msra.mxu0 %v3258_v51  ;;  %6436 = vmatprep.mubr.msk.f32.mxu1 %vm6999_vm1, %v6998_v27 }
 0xe2b   :  { %6444 = vmatprep.subr.mxu1 %v6998_v27  ;;  %6431 = vmatprep.mubr.msk.f32.mxu0 %vm6999_vm1, %v6998_v27 }
 0xe2c   :  { %6439 = vmatprep.subr.mxu0 %v6998_v27 }
 0xe72   :  { %v3076_v30 = vpop.xlane.xlu1 %3075 }
 0xe73   :  { %6875 = vrcp.f32 %v3076_v30  ;;  %v3073_v31 = vpop.xlane.xlu0 %3072 }
 0xe74   :  { %6877 = vrcp.f32 %v3073_v31 }
 0xe77   :  { %v3082_v2 = vpop.xlane.xlu1 %3081 }
 0xe78   :  { %6879 = vrcp.f32 %v3082_v2  ;;  %v3079_v3 = vpop.xlane.xlu0 %3078 }
 0xe79   :  { %6881 = vrcp.f32 %v3079_v3  ;;  %v6716_v3 = vpack.c.bf16 %v3939_v58, %v3938_v57 }
 0xe7b   :  { %v3088_v4 = vpop.xlane.xlu1 %3087 }
 0xe7c   :  { %6883 = vrcp.f32 %v3088_v4  ;;  %v3085_v5 = vpop.xlane.xlu0 %3084 }
 0xe7d   :  { %v6876_v6 = vpop.eup %6875  ;;  %6885 = vrcp.f32 %v3085_v5 }
 0xe7e   :  { %v6878_v8 = vpop.eup %6877  ;;  %v3100_v0 = vmul.f32 %v6876_v6, %v6860_v34 }
 0xe7f   :  { %v3099_v9 = vmul.f32 %v6878_v8, %v6862_v35  ;;  %v3562_v11 = vpop.permute.xlu1 %3561 }
 0xe80   :  { %6437 = vmatmul.mubr.msk.f32.vlgmr.msra.gmra.mrb[38].mxu1 %vm332_vm2, %v3100_v0  ;;  %v3638_v28 = vpop.permute.xlu0 %3637 }
 0xe81   :  { %6445 = vmatpush3.msra.mxu1 %v3486_v56  ;;  %6432 = vmatmul.mubr.msk.f32.vlgmr.msra.gmra.mrb[30].mxu0 %vm332_vm2, %v3099_v9 }
 0xe82   :  { %v6880_v26 = vpop.eup %6879  ;;  %6440 = vmatpush3.msra.mxu0 %v3410_v54  ;;  %6441 = vmatprep.mubr.msk.f32.mxu0 %vm6999_vm1, %v6998_v27 }
 0xe83   :  { %v6882_v25 = vpop.eup %6881  ;;  %v3102_v29 = vmul.f32 %v6880_v26, %v6864_v38  ;;  %6446 = vmatprep.mubr.msk.f32.mxu1 %vm6999_vm1, %v6998_v27  ;;  %6449 = vmatprep.subr.mxu0 %v6998_v27 }
 0xe84   :  { %v3101_v41 = vmul.f32 %v6882_v25, %v6866_v39  ;;  %6454 = vmatprep.subr.mxu1 %v6998_v27  ;;  %v3852_v25 = vld [vmem:[%s8010_s30 + $0x8] sm:$0xff] }
 0xe85   :  { %6447 = vmatmul.mubr.msk.f32.vlgmr.msra.gmra.mrb[40].mxu1 %vm332_vm2, %v3102_v29 }
 0xe86   :  { %v6884_v10 = vpop.eup %6883  ;;  %6442 = vmatmul.mubr.msk.f32.vlgmr.msra.gmra.mrb[32].mxu0 %vm332_vm2, %v3101_v41  ;;  %6455 = vmatpush3.msra.mxu1 %v3638_v28  ;;  %v3853_v41 = vld [vmem:[%s8010_s30 + $0x10] sm:$0xff]  ;;  %v3854_v28 = vld [vmem:[%s8010_s30 + $0x18] sm:$0xff] }
 0xe87   :  { %v6886_v12 = vpop.eup %6885  ;;  %v3104_v13 = vmul.f32 %v6884_v10, %v7642_v42  ;;  %6450 = vmatpush3.msra.mxu0 %v3562_v11  ;;  %6451 = vmatprep.mubr.msk.f32.mxu0 %vm6999_vm1, %v6998_v27  ;;  %v6708_v10 = vpack.c.bf16 %v3854_v28, %v3853_v41 }
 0xe88   :  { %v3103_v14 = vmul.f32 %v6886_v12, %v7644_v43  ;;  %6456 = vmatprep.mubr.msk.f32.mxu1 %vm6999_vm1, %v6998_v27  ;;  %6697 = vmatprep.subr.bf16.mxu0 %v6696_v20 }
 0xe89   :  { %6457 = vmatmul.mubr.msk.f32.vlgmr.msra.gmra.mrb[42].mxu1 %vm332_vm2, %v3104_v13 }
 0xe8a   :  { %6452 = vmatmul.mubr.msk.f32.vlgmr.msra.gmra.mrb[34].mxu0 %vm332_vm2, %v3103_v14 }
 0xe8b   :  { %6699 = vmatpush3.bf16.msra.mxu0 %v6696_v20 }
 0xe8c   :  { %6701 = vmatprep.subr.bf16.mxu0 %v6700_v48 }
 0xe8f   :  { %6703 = vmatpush3.bf16.msra.mxu0 %v6700_v48 }
 0xe90   :  { %6713 = vmatprep.subr.bf16.mxu0 %v6712_v23 }
 0xefb   :  { %v3253_v15 = vpop.f32.mrb[36].mxu1 }
 0xefc   :  { %v3177_v16 = vpop.f32.mrb[28].mxu0  ;;  %v6428_v17 = vpop.f32.mrb[37].mxu1 }
 0xefd   :  { %v6423_v18 = vpop.f32.mrb[29].mxu0 }
 0xf53   :  { %v3405_v24 = vpop.f32.mrb[38].mxu1 }
 0xf54   :  { %3717 = vrot.lane.b32.xlu0 %v3405_v24, %s7004_s22  ;;  %v3329_v34 = vpop.f32.mrb[30].mxu0  ;;  %v6438_v35 = vpop.f32.mrb[39].mxu1 }
 0xf55   :  { %3715 = vrot.lane.b32.xlu1 %v3329_v34, %s7004_s22  ;;  %v6433_v36 = vpop.f32.mrb[31].mxu0 }
 0xf58   :  { %v3557_v37 = vpop.f32.mrb[40].mxu1 }
 0xf59   :  { %v3481_v38 = vpop.f32.mrb[32].mxu0  ;;  %3725 = vrot.lane.b32.xlu0 %v3557_v37, %s7005_s23  ;;  %v6448_v39 = vpop.f32.mrb[41].mxu1 }
 0xf5a   :  { %3723 = vrot.lane.b32.xlu1 %v3481_v38, %s7005_s23  ;;  %v6443_v40 = vpop.f32.mrb[33].mxu0 }
 0xf5c   :  { %v3709_v1 = vpop.f32.mrb[42].mxu1 }
 0xf5d   :  { %v3633_v42 = vpop.f32.mrb[34].mxu0  ;;  %3733 = vrot.lane.b32.xlu0 %v3709_v1, %s7006_s3  ;;  %v6458_v43 = vpop.f32.mrb[43].mxu1 }
 0xf5e   :  { %3731 = vrot.lane.b32.xlu1 %v3633_v42, %s7006_s3  ;;  %v6453_v45 = vpop.f32.mrb[35].mxu0 }
 0xfc6   :  { %v3718_v49 = vpop.permute.xlu0 %3717 }
 0xfc7   :  { %v3716_v51 = vpop.permute.xlu1 %3715  ;;  %v3738_v56 = vsel %vm332_vm2, %v3253_v15, %v3718_v49 }
 0xfc8   :  { %v3737_v59 = vsel %vm332_vm2, %v3177_v16, %v3716_v51 }
 0xfcb   :  { %v3726_v52 = vpop.permute.xlu0 %3725 }
 0xfcc   :  { %v3724_v54 = vpop.permute.xlu1 %3723  ;;  %v3740_v61 = vsel %vm1661_vm3, %v3738_v56, %v3726_v52 }
 0xfcd   :  { %v3739_v63 = vsel %vm1661_vm3, %v3737_v59, %v3724_v54 }
 0xfcf   :  { %v3734_v62 = vpop.permute.xlu0 %3733 }
 0xfd0   :  { %v3732_v30 = vpop.permute.xlu1 %3731  ;;  %v3742_v31 = vsel %vm1664_vm4, %v3740_v61, %v3734_v62 }
 0xfd1   :  { %v3741_v2 = vsel %vm1664_vm4, %v3739_v63, %v3732_v30 }
 0xfd2   :  { %6467 = vmatprep.mubr.msk.f32.mxu0 %vm193_vm0, %v3741_v2 }
 0xfd3   :  { %6468 = vmatmul.mubr.msk.f32.vlgmr.msra.gmra.mrb[36].mxu0 %vm193_vm0, %v3742_v31 }
 0xfd4   :  { %6715 = vmatpush3.bf16.msra.mxu0 %v6712_v23  ;;  %6489 = vmatprep.mubr.msk.f32.mxu0 %vm193_vm0, %v7467_v46 }
 0xfd5   :  { %6717 = vmatprep.subr.bf16.mxu0 %v6716_v3 }
 0xfd8   :  { %6719 = vmatpush3.bf16.msra.mxu0 %v6716_v3 }
 0xfd9   :  { %6502 = vmatprep.subr.mxu0 %v6998_v27 }
 0xfdb   :  { %6490 = vmatmul.mubr.msk.f32.vlgmr.msra.gmra.mrb[38].mxu0 %vm193_vm0, %v7469_v47 }
 0xfdc   :  { %6504 = vmatprep.mubr.msk.f32.mxu0 %vm6999_vm1, %v6998_v27 }
0x10a6   :  { %v6469_v4 = vpop.f32.mrb[36].mxu0 }
0x10a7   :  { %v7712_v5 = vadd.f32 %v6469_v4, %v7456_v33  ;;  %v3815_v6 = vpop.f32.mrb[37].mxu0 }
0x10a8   :  { %v7715_v46 = vadd.f32 %v3815_v6, %v7453_v32  ;;  %v3851_v32 = vld [vmem:[%s8010_s30] sm:$0xff] }
0x10a9   :  { %v3828_v8 = vmul.f32 %v7712_v5, %v7712_v5  ;;  %v6704_v29 = vpack.c.bf16 %v3852_v25, %v3851_v32 }
0x10aa   :  { %v3827_v47 = vmul.f32 %v7715_v46, %v7715_v46 }
0x10ab   :  { %v3832_v0 = vsel %vm193_vm0, %v3828_v8, 0.0  ;;  %6705 = vmatprep.subr.bf16.mxu1 %v6704_v29 }
0x10ac   :  { %3833 = vadd.xlane.f32.xlu0 %v3832_v0  ;;  %v3829_v9 = vsel %vm193_vm0, %v3827_v47, 0.0  ;;  %6707 = vmatpush3.bf16.msra.mxu1 %v6704_v29 }
0x10ad   :  { %3830 = vadd.xlane.f32.xlu1 %v3829_v9  ;;  %6709 = vmatprep.subr.bf16.mxu1 %v6708_v10 }
0x10ae   :  { %v7723_v33 = vpop.f32.mrb[38].mxu0 }
0x10af   :  { %v7725_v26 = vpop.f32.mrb[39].mxu0 }
0x10b0   :  { %6711 = vmatpush3.bf16.msra.mxu1 %v6708_v10 }
0x10b1   :  { %6492 = vmatprep.subr.mxu1 %v6998_v27 }
0x10be   :  { %4037 = vrot.lane.b32.xlu1 %v7723_v33, %s6996_s0 }
0x10c2   :  { %4041 = vrot.lane.b32.xlu0 %v7723_v33, %s6997_s5  ;;  %4039 = vrot.lane.b32.xlu1 %v7725_v26, %s6997_s5 }
0x10c6   :  { %4045 = vrot.lane.b32.xlu0 %v7723_v33, %s7000_s25  ;;  %4043 = vrot.lane.b32.xlu1 %v7725_v26, %s7000_s25 }
0x10ca   :  { %4035 = vrot.lane.b32.xlu0 %v7725_v26, %s6996_s0 }
0x1139   :  { %v3834_v11 = vpop.xlane.xlu0 %3833 }
0x113a   :  { %v3836_v12 = vmul.f32 0.03125, %v3834_v11  ;;  %v3831_v13 = vpop.xlane.xlu1 %3830 }
0x113b   :  { %v3835_v14 = vmul.f32 0.03125, %v3831_v13 }
0x113c   :  { %v3838_v15 = vadd.f32 1e-06, %v3836_v12 }
0x113d   :  { %v3837_v16 = vadd.f32 1e-06, %v3835_v14  ;;  %v7744_v17 = vpop.permute.xlu0 %4041 }
0x113e   :  { %6887 = vrsqrt.f32 %v3838_v15  ;;  %v7772_v34 = vpop.permute.xlu1 %4037 }
0x113f   :  { %6889 = vrsqrt.f32 %v3837_v16 }
0x1141   :  { %v7746_v18 = vpop.permute.xlu0 %4045 }
0x1142   :  { %v7783_v35 = vpop.permute.xlu1 %4039 }
0x1145   :  { %v7748_v19 = vpop.permute.xlu0 %4035 }
0x1146   :  { %6503 = vmatpush3.xpose.msk.msra.mxu0 %vm332_vm2, %v7748_v19  ;;  %v7785_v36 = vpop.permute.xlu1 %4043 }
0x1147   :  { %6512 = vmatprep.subr.mxu0 %v6998_v27 }
0x1148   :  { %v6888_v44 = vpop.eup %6887 }
0x1149   :  { %v6890_v20 = vpop.eup %6889  ;;  %v3842_v21 = vmul.f32 %v6888_v44, %v7712_v5 }
0x114a   :  { %v3841_v48 = vmul.f32 %v6890_v20, %v7715_v46 }
0x114b   :  { %v3850_v53 = vmul.f32 %v5966_v50, %v3842_v21 }
0x114c   :  { %v3849_v22 = vmul.f32 %v5966_v50, %v3841_v48 }
0x114e   :  { %6478 = vmatprep.mubr.msk.f32.mxu1 %vm193_vm0, %v3849_v22 }
0x114f   :  { %6479 = vmatmul.mubr.msk.f32.vlgmr.msra.gmra.mrb[44].mxu1 %vm193_vm0, %v3850_v53 }
0x1150   :  { %6493 = vmatpush3.xpose.msk.msra.mxu1 %vm332_vm2, %v7725_v26  ;;  %6494 = vmatprep.mubr.msk.f32.mxu1 %vm6999_vm1, %v6998_v27 }
0x1151   :  { %6497 = vmatprep.subr.mxu1 %v6998_v27 }
0x1222   :  { %v6480_v23 = vpop.f32.mrb[44].mxu1 }
0x1223   :  { %4023 = vrot.lane.b32.xlu0 %v6480_v23, %s6996_s0  ;;  %v3927_v24 = vpop.f32.mrb[45].mxu1 }
0x1224   :  { %4021 = vrot.lane.b32.xlu1 %v3927_v24, %s6996_s0  ;;  %6495 = vmatmul.mubr.msk.f32.vlgmr.msra.gmra.mrb[46].mxu1 %vm332_vm2, %v3927_v24 }
0x1225   :  { %6498 = vmatpush3.xpose.msk.msra.mxu1 %vm332_vm2, %v7723_v33  ;;  %6499 = vmatprep.mubr.msk.f32.mxu1 %vm6999_vm1, %v6998_v27 }
0x1226   :  { %6507 = vmatprep.subr.mxu1 %v6998_v27 }
0x1227   :  { %4027 = vrot.lane.b32.xlu0 %v6480_v23, %s6997_s5 }
0x1228   :  { %4025 = vrot.lane.b32.xlu1 %v3927_v24, %s6997_s5  ;;  %6500 = vmatmul.mubr.msk.f32.vlgmr.msra.gmra.mrb[48].mxu1 %vm332_vm2, %v6480_v23 }
0x1229   :  { %6508 = vmatpush3.xpose.msk.msra.mxu1 %vm332_vm2, %v7772_v34  ;;  %6509 = vmatprep.mubr.msk.f32.mxu1 %vm6999_vm1, %v6998_v27 }
0x122a   :  { %6517 = vmatprep.subr.mxu1 %v6998_v27 }
0x122b   :  { %4031 = vrot.lane.b32.xlu0 %v6480_v23, %s7000_s25 }
0x122c   :  { %4029 = vrot.lane.b32.xlu1 %v3927_v24, %s7000_s25 }
0x1295   :  { %v4024_v37 = vpop.permute.xlu0 %4023 }
0x1296   :  { %6510 = vmatmul.mubr.msk.f32.vlgmr.msra.gmra.mrb[50].mxu1 %vm332_vm2, %v4024_v37  ;;  %v4022_v38 = vpop.permute.xlu1 %4021 }
0x1297   :  { %6518 = vmatpush3.xpose.msk.msra.mxu1 %vm332_vm2, %v7744_v17  ;;  %6505 = vmatmul.mubr.msk.f32.vlgmr.msra.gmra.mrb[40].mxu0 %vm332_vm2, %v4022_v38 }
0x1298   :  { %6513 = vmatpush3.xpose.msk.msra.mxu0 %vm332_vm2, %v7783_v35  ;;  %6519 = vmatprep.mubr.msk.f32.mxu1 %vm6999_vm1, %v6998_v27 }
0x1299   :  { %v4028_v39 = vpop.permute.xlu0 %4027  ;;  %6527 = vmatprep.subr.mxu1 %v6998_v27  ;;  %6514 = vmatprep.mubr.msk.f32.mxu0 %vm6999_vm1, %v6998_v27 }
0x129a   :  { %6520 = vmatmul.mubr.msk.f32.vlgmr.msra.gmra.mrb[52].mxu1 %vm332_vm2, %v4028_v39  ;;  %6522 = vmatprep.subr.mxu0 %v6998_v27  ;;  %v4026_v40 = vpop.permute.xlu1 %4025 }
0x129b   :  { %6528 = vmatpush3.xpose.msk.msra.mxu1 %vm332_vm2, %v7746_v18  ;;  %6515 = vmatmul.mubr.msk.f32.vlgmr.msra.gmra.mrb[42].mxu0 %vm332_vm2, %v4026_v40 }
0x129c   :  { %6523 = vmatpush3.xpose.msk.msra.mxu0 %vm332_vm2, %v7785_v36  ;;  %6529 = vmatprep.mubr.msk.f32.mxu1 %vm6999_vm1, %v6998_v27 }
0x129d   :  { %v4032_v1 = vpop.permute.xlu0 %4031  ;;  %6524 = vmatprep.mubr.msk.f32.mxu0 %vm6999_vm1, %v6998_v27  ;;  %6537 = vmatprep.subr.mxu1 %v6998_v27 }
0x129e   :  { %6530 = vmatmul.mubr.msk.f32.vlgmr.msra.gmra.mrb[54].mxu1 %vm332_vm2, %v4032_v1  ;;  %v4030_v42 = vpop.permute.xlu1 %4029  ;;  %6532 = vmatprep.subr.mxu0 %v6998_v27 }
0x129f   :  { %6525 = vmatmul.mubr.msk.f32.vlgmr.msra.gmra.mrb[44].mxu0 %vm332_vm2, %v4030_v42  ;;  %6539 = vmatprep.mubr.msk.f32.mxu1 %vm6999_vm1, %v6998_v27 }
0x12a0   :  { %6534 = vmatprep.mubr.msk.f32.mxu0 %vm6999_vm1, %v6998_v27 }
0x12f7   :  { %v4117_v43 = vpop.f32.mrb[46].mxu1 }
0x12f8   :  { %v4118_v45 = vadd.f32 %v4117_v43, %v7307_v55  ;;  %v6496_v49 = vpop.f32.mrb[47].mxu1 }
0x12fa   :  { %v4639_v51 = vsel %vm332_vm2, %v4118_v45, -inf }
0x12fb   :  { %4640 = vmax.xlane.f32.xlu1 %v4639_v51  ;;  %v4191_v52 = vpop.f32.mrb[48].mxu1 }
0x12fc   :  { %v4192_v54 = vadd.f32 %v4191_v52, %v7312_v60  ;;  %v6501_v56 = vpop.f32.mrb[49].mxu1 }
0x12fe   :  { %v4642_v57 = vsel %vm332_vm2, %v4192_v54, -inf }
0x12ff   :  { %4643 = vmax.xlane.f32.xlu0 %v4642_v57 }
0x1369   :  { %v4339_v58 = vpop.f32.mrb[50].mxu1 }
0x136a   :  { %v4340_v59 = vadd.f32 %v4339_v58, %v7312_v60  ;;  %v4265_v61 = vpop.f32.mrb[40].mxu0  ;;  %v6511_v62 = vpop.f32.mrb[51].mxu1 }
0x136b   :  { %v4266_v63 = vadd.f32 %v4265_v61, %v7307_v55  ;;  %v6506_v30 = vpop.f32.mrb[41].mxu0 }
0x136c   :  { %v4648_v31 = vsel %vm332_vm2, %v4340_v59, -inf }
0x136d   :  { %4649 = vmax.xlane.f32.xlu1 %v4648_v31  ;;  %v4487_v2 = vpop.f32.mrb[52].mxu1  ;;  %v4645_v3 = vsel %vm332_vm2, %v4266_v63, -inf }
0x136e   :  { %v4488_v4 = vadd.f32 %v4487_v2, %v7312_v60  ;;  %v6521_v6 = vpop.f32.mrb[53].mxu1  ;;  %4646 = vmax.xlane.f32.xlu0 %v4645_v3  ;;  %v4413_v8 = vpop.f32.mrb[42].mxu0 }
0x136f   :  { %v4414_v47 = vadd.f32 %v4413_v8, %v7307_v55  ;;  %v6516_v0 = vpop.f32.mrb[43].mxu0 }
0x1370   :  { %v4654_v9 = vsel %vm332_vm2, %v4488_v4, -inf }
0x1371   :  { %4655 = vmax.xlane.f32.xlu1 %v4654_v9  ;;  %v4635_v32 = vpop.f32.mrb[54].mxu1  ;;  %v4651_v25 = vsel %vm332_vm2, %v4414_v47, -inf }
0x1372   :  { %v4636_v29 = vadd.f32 %v4635_v32, %v7312_v60  ;;  %v6531_v41 = vpop.f32.mrb[55].mxu1  ;;  %4652 = vmax.xlane.f32.xlu0 %v4651_v25  ;;  %v4561_v28 = vpop.f32.mrb[44].mxu0 }
0x1373   :  { %v4562_v10 = vadd.f32 %v4561_v28, %v7307_v55  ;;  %v6526_v11 = vpop.f32.mrb[45].mxu0 }
0x1374   :  { %v4660_v12 = vsel %vm332_vm2, %v4636_v29, -inf }
0x1375   :  { %4661 = vmax.xlane.f32.xlu1 %v4660_v12  ;;  %v4657_v13 = vsel %vm332_vm2, %v4562_v10, -inf }
0x1376   :  { %4658 = vmax.xlane.f32.xlu0 %v4657_v13 }
0x1386   :  { %4803 = vrot.lane.b32.xlu1 %v7723_v33, %s7001_s29 }
0x1388   :  { %v4641_v60 = vpop.xlane.xlu1 %4640 }
0x1389   :  { %v4663_v15 = vsub.f32 %v4118_v45, %v4641_v60 }
0x138a   :  { %4879 = vrot.lane.b32.xlu1 %v7748_v19, %s7001_s29 }
0x138b   :  { %v4671_v16 = vmul.f32 1.442695, %v4663_v15 }
0x138c   :  { %4727 = vrot.lane.b32.xlu0 %v7725_v26, %s7001_s29  ;;  %v4644_v55 = vpop.xlane.xlu0 %4643 }
0x138d   :  { %v4664_v14 = vsub.f32 %v4192_v54, %v4644_v55 }
0x138e   :  { %5031 = vrot.lane.b32.xlu1 %v7783_v35, %s7001_s29 }
0x138f   :  { %v4673_v33 = vmul.f32 1.442695, %v4664_v14 }
0x1390   :  { %4955 = vrot.lane.b32.xlu0 %v7772_v34, %s7001_s29 }
0x1391   :  { %6891 = vpow2.f32 %v4673_v33 }
0x1392   :  { %6893 = vpow2.f32 %v4671_v16 }
0x1394   :  { %5107 = vrot.lane.b32.xlu0 %v7744_v17, %s7001_s29 }
0x139b   :  { %v7845_v19 = vpop.eup %6891 }
0x139c   :  { %v7847_v26 = vpop.eup %6893  ;;  %v4690_v44 = vsel %vm332_vm2, %v7845_v19, 0.0 }
0x139d   :  { %v4687_v20 = vsel %vm332_vm2, %v7847_v26, 0.0 }
0x13b2   :  { %4691 = vadd.xlane.f32.xlu1 %v4690_v44 }
0x13b3   :  { %4688 = vadd.xlane.f32.xlu0 %v4687_v20 }
0x13fa   :  { %v4650_v17 = vpop.xlane.xlu1 %4649 }
0x13fb   :  { %v4666_v50 = vsub.f32 %v4340_v59, %v4650_v17  ;;  %v4647_v21 = vpop.xlane.xlu0 %4646 }
0x13fc   :  { %v4665_v48 = vsub.f32 %v4266_v63, %v4647_v21 }
0x13fd   :  { %v4677_v22 = vmul.f32 1.442695, %v4666_v50 }
0x13fe   :  { %v4675_v53 = vmul.f32 1.442695, %v4665_v48  ;;  %v4656_v23 = vpop.xlane.xlu1 %4655 }
0x13ff   :  { %6895 = vpow2.f32 %v4677_v22  ;;  %v4668_v24 = vsub.f32 %v4488_v4, %v4656_v23  ;;  %v4653_v34 = vpop.xlane.xlu0 %4652  ;;  %v4015_v23 = vld [vmem:[%s8012_s27] sm:$0xff] }
0x1400   :  { %6897 = vpow2.f32 %v4675_v53  ;;  %v4667_v35 = vsub.f32 %v4414_v47, %v4653_v34 }
0x1401   :  { %v4681_v37 = vmul.f32 1.442695, %v4668_v24  ;;  %v4016_v24 = vld [vmem:[%s8012_s27 + $0x8] sm:$0xff] }
0x1402   :  { %v4679_v38 = vmul.f32 1.442695, %v4667_v35  ;;  %v4662_v39 = vpop.xlane.xlu1 %4661  ;;  %v6720_v34 = vpack.c.bf16 %v4016_v24, %v4015_v23  ;;  %v4017_v35 = vld [vmem:[%s8012_s27 + $0x10] sm:$0xff] }
0x1403   :  { %6899 = vpow2.f32 %v4681_v37  ;;  %v4670_v40 = vsub.f32 %v4636_v29, %v4662_v39  ;;  %v4659_v1 = vpop.xlane.xlu0 %4658  ;;  %v4018_v37 = vld [vmem:[%s8012_s27 + $0x18] sm:$0xff] }
0x1404   :  { %6901 = vpow2.f32 %v4679_v38  ;;  %v4669_v42 = vsub.f32 %v4562_v10, %v4659_v1  ;;  %v6724_v38 = vpack.c.bf16 %v4018_v37, %v4017_v35  ;;  %v5566_v37 = vld [vmem:[%s8014_s28 + $0x30] sm:$0xff] }
0x1405   :  { %v4685_v43 = vmul.f32 1.442695, %v4670_v40 }
0x1406   :  { %v4683_v45 = vmul.f32 1.442695, %v4669_v42  ;;  %v4804_v49 = vpop.permute.xlu1 %4803 }
0x1407   :  { %6903 = vpow2.f32 %v4685_v43  ;;  %v4728_v51 = vpop.permute.xlu0 %4727  ;;  %6538 = vmatpush3.msra.mxu1 %v4804_v49 }
0x1408   :  { %6905 = vpow2.f32 %v4683_v45  ;;  %6533 = vmatpush3.msra.mxu0 %v4728_v51  ;;  %6547 = vmatprep.subr.mxu1 %v6998_v27 }
0x1409   :  { %v6896_v52 = vpop.eup %6895  ;;  %6542 = vmatprep.subr.mxu0 %v6998_v27 }
0x140a   :  { %v6898_v54 = vpop.eup %6897  ;;  %v4696_v56 = vsel %vm332_vm2, %v6896_v52, 0.0  ;;  %v4880_v3 = vpop.permute.xlu1 %4879 }
0x140b   :  { %4697 = vadd.xlane.f32.xlu1 %v4696_v56  ;;  %v4693_v57 = vsel %vm332_vm2, %v6898_v54, 0.0  ;;  %v4956_v4 = vpop.permute.xlu0 %4955 }
0x140c   :  { %4694 = vadd.xlane.f32.xlu0 %v4693_v57 }
0x140d   :  { %v6900_v58 = vpop.eup %6899 }
0x140e   :  { %v6902_v59 = vpop.eup %6901  ;;  %v4702_v61 = vsel %vm332_vm2, %v6900_v58, 0.0  ;;  %v5032_v6 = vpop.permute.xlu1 %5031 }
0x140f   :  { %4703 = vadd.xlane.f32.xlu1 %v4702_v61  ;;  %v4699_v62 = vsel %vm332_vm2, %v6902_v59, 0.0  ;;  %v5108_v8 = vpop.permute.xlu0 %5107 }
0x1410   :  { %4700 = vadd.xlane.f32.xlu0 %v4699_v62 }
0x1411   :  { %v7859_v63 = vpop.eup %6903 }
0x1412   :  { %v7861_v30 = vpop.eup %6905  ;;  %v4708_v31 = vsel %vm332_vm2, %v7859_v63, 0.0 }
0x1413   :  { %4709 = vadd.xlane.f32.xlu1 %v4708_v31  ;;  %v4705_v2 = vsel %vm332_vm2, %v7861_v30, 0.0 }
0x1414   :  { %4706 = vadd.xlane.f32.xlu0 %v4705_v2 }
0x1424   :  { %5183 = vrot.lane.b32.xlu1 %v7785_v36, %s7001_s29 }
0x142a   :  { %5259 = vrot.lane.b32.xlu0 %v7746_v18, %s7001_s29 }
0x143f   :  { %v4692_v47 = vpop.xlane.xlu1 %4691 }
0x1440   :  { %6907 = vrcp.f32 %v4692_v47  ;;  %v4689_v0 = vpop.xlane.xlu0 %4688 }
0x1441   :  { %6909 = vrcp.f32 %v4689_v0 }
0x144a   :  { %v6908_v9 = vpop.eup %6907 }
0x144b   :  { %v6910_v32 = vpop.eup %6909  ;;  %v4720_v25 = vmul.f32 %v6908_v9, %v7845_v19 }
0x144c   :  { %v4719_v29 = vmul.f32 %v6910_v32, %v7847_v26 }
0x144d   :  { %6540 = vmatmul.mubr.msk.f32.vlgmr.msra.gmra.mrb[56].mxu1 %vm332_vm2, %v4720_v25 }
0x144e   :  { %6548 = vmatpush3.msra.mxu1 %v4956_v4  ;;  %6535 = vmatmul.mubr.msk.f32.vlgmr.msra.gmra.mrb[46].mxu0 %vm332_vm2, %v4719_v29 }
0x144f   :  { %6543 = vmatpush3.msra.mxu0 %v4880_v3  ;;  %6549 = vmatprep.mubr.msk.f32.mxu1 %vm6999_vm1, %v6998_v27 }
0x1450   :  { %6557 = vmatprep.subr.mxu1 %v6998_v27  ;;  %6544 = vmatprep.mubr.msk.f32.mxu0 %vm6999_vm1, %v6998_v27 }
0x1451   :  { %6552 = vmatprep.subr.mxu0 %v6998_v27 }
0x1498   :  { %v4698_v18 = vpop.xlane.xlu1 %4697 }
0x1499   :  { %6911 = vrcp.f32 %v4698_v18  ;;  %v4695_v36 = vpop.xlane.xlu0 %4694 }
0x149a   :  { %6913 = vrcp.f32 %v4695_v36 }
0x149c   :  { %v4704_v41 = vpop.xlane.xlu1 %4703 }
0x149d   :  { %6915 = vrcp.f32 %v4704_v41  ;;  %v4701_v28 = vpop.xlane.xlu0 %4700  ;;  %v5475_v41 = vld [vmem:[%s8013_s26 + $0x10] sm:$0xff] }
0x149e   :  { %6917 = vrcp.f32 %v4701_v28 }
0x14a0   :  { %v4710_v10 = vpop.xlane.xlu1 %4709 }
0x14a1   :  { %6919 = vrcp.f32 %v4710_v10  ;;  %v4707_v11 = vpop.xlane.xlu0 %4706  ;;  %v5476_v10 = vld [vmem:[%s8013_s26 + $0x18] sm:$0xff] }
0x14a2   :  { %6921 = vrcp.f32 %v4707_v11  ;;  %v6732_v11 = vpack.c.bf16 %v5476_v10, %v5475_v41 }
0x14a3   :  { %v6912_v12 = vpop.eup %6911 }
0x14a4   :  { %v6914_v13 = vpop.eup %6913  ;;  %v4722_v55 = vmul.f32 %v6912_v12, %v6896_v52  ;;  %v5184_v44 = vpop.permute.xlu1 %5183  ;;  %v5560_v12 = vld [vmem:[%s8014_s28] sm:$0xff] }
0x14a5   :  { %v4721_v60 = vmul.f32 %v6914_v13, %v6898_v54  ;;  %v5260_v19 = vpop.permute.xlu0 %5259  ;;  %v5561_v13 = vld [vmem:[%s8014_s28 + $0x8] sm:$0xff] }
0x14a6   :  { %6550 = vmatmul.mubr.msk.f32.vlgmr.msra.gmra.mrb[58].mxu1 %vm332_vm2, %v4722_v55  ;;  %v5562_v55 = vld [vmem:[%s8014_s28 + $0x10] sm:$0xff] }
0x14a7   :  { %v6916_v14 = vpop.eup %6915  ;;  %6558 = vmatpush3.msra.mxu1 %v5108_v8  ;;  %6545 = vmatmul.mubr.msk.f32.vlgmr.msra.gmra.mrb[48].mxu0 %vm332_vm2, %v4721_v60  ;;  %v6736_v60 = vpack.c.bf16 %v5561_v13, %v5560_v12  ;;  %v7008_v12 = vmov 0  }
0x14a8   :  { %v6918_v15 = vpop.eup %6917  ;;  %v4724_v33 = vmul.f32 %v6916_v14, %v6900_v58  ;;  %6553 = vmatpush3.msra.mxu0 %v5032_v6  ;;  %6559 = vmatprep.mubr.msk.f32.mxu1 %vm6999_vm1, %v6998_v27  ;;  %v5563_v14 = vld [vmem:[%s8014_s28 + $0x18] sm:$0xff] }
0x14a9   :  { %v4723_v16 = vmul.f32 %v6918_v15, %v6902_v59  ;;  %6567 = vmatprep.subr.mxu1 %v6998_v27  ;;  %6554 = vmatprep.mubr.msk.f32.mxu0 %vm6999_vm1, %v6998_v27  ;;  %v6740_v15 = vpack.c.bf16 %v5563_v14, %v5562_v55 }
0x14aa   :  { %6560 = vmatmul.mubr.msk.f32.vlgmr.msra.gmra.mrb[60].mxu1 %vm332_vm2, %v4724_v33  ;;  %6562 = vmatprep.subr.mxu0 %v6998_v27  ;;  %v5564_v33 = vld [vmem:[%s8014_s28 + $0x20] sm:$0xff] }
0x14ab   :  { %v6920_v26 = vpop.eup %6919  ;;  %6568 = vmatpush3.msra.mxu1 %v5260_v19  ;;  %6555 = vmatmul.mubr.msk.f32.vlgmr.msra.gmra.mrb[50].mxu0 %vm332_vm2, %v4723_v16  ;;  %v5565_v16 = vld [vmem:[%s8014_s28 + $0x28] sm:$0xff] }
0x14ac   :  { %v6922_v20 = vpop.eup %6921  ;;  %v4726_v17 = vmul.f32 %v6920_v26, %v7859_v63  ;;  %6563 = vmatpush3.msra.mxu0 %v5184_v44  ;;  %6569 = vmatprep.mubr.msk.f32.mxu1 %vm6999_vm1, %v6998_v27  ;;  %v6744_v19 = vpack.c.bf16 %v5565_v16, %v5564_v33 }
0x14ad   :  { %v4725_v50 = vmul.f32 %v6922_v20, %v7861_v30  ;;  %6564 = vmatprep.mubr.msk.f32.mxu0 %vm6999_vm1, %v6998_v27  ;;  %6721 = vmatprep.subr.bf16.mxu0 %v6720_v34 }
0x14ae   :  { %6570 = vmatmul.mubr.msk.f32.vlgmr.msra.gmra.mrb[62].mxu1 %vm332_vm2, %v4726_v17  ;;  %6806 = vset.pattern.permute.xlu1 %v7008_v12 }
0x14af   :  { %6565 = vmatmul.mubr.msk.f32.vlgmr.msra.gmra.mrb[52].mxu0 %vm332_vm2, %v4725_v50  ;;  %6805 = vset.pattern.permute.xlu0 %v7008_v12 }
0x14b0   :  { %6723 = vmatpush3.bf16.msra.mxu0 %v6720_v34 }
0x14b1   :  { %6725 = vmatprep.subr.bf16.mxu0 %v6724_v38 }
0x14b4   :  { %6727 = vmatpush3.bf16.msra.mxu0 %v6724_v38  ;;  %v5567_v38 = vld [vmem:[%s8014_s28 + $0x38] sm:$0xff] }
0x14b5   :  { %6737 = vmatprep.subr.bf16.mxu0 %v6736_v60 }
0x1520   :  { %v4875_v21 = vpop.f32.mrb[56].mxu1 }
0x1521   :  { %v4799_v48 = vpop.f32.mrb[46].mxu0  ;;  %v6541_v22 = vpop.f32.mrb[57].mxu1 }
0x1522   :  { %v6536_v53 = vpop.f32.mrb[47].mxu0 }
0x1523   :  { %v5997_v53 = vld [vmem:[%s8015_s1] ss:$0 sm:$0xff] }
0x1579   :  { %v5027_v39 = vpop.f32.mrb[58].mxu1 }
0x157a   :  { %v4951_v40 = vpop.f32.mrb[48].mxu0  ;;  %5339 = vrot.lane.b32.xlu0 %v5027_v39, %s7004_s22  ;;  %v6551_v1 = vpop.f32.mrb[59].mxu1  ;;  %v6748_v39 = vpack.c.bf16 %v5567_v38, %v5566_v37 }
0x157b   :  { %5337 = vrot.lane.b32.xlu1 %v4951_v40, %s7004_s22  ;;  %v6546_v42 = vpop.f32.mrb[49].mxu0 }
0x157d   :  { %v5179_v43 = vpop.f32.mrb[60].mxu1 }
0x157e   :  { %v5103_v45 = vpop.f32.mrb[50].mxu0  ;;  %5347 = vrot.lane.b32.xlu0 %v5179_v43, %s7005_s23  ;;  %v6561_v49 = vpop.f32.mrb[61].mxu1 }
0x157f   :  { %5345 = vrot.lane.b32.xlu1 %v5103_v45, %s7005_s23  ;;  %v6556_v51 = vpop.f32.mrb[51].mxu0 }
0x1581   :  { %v5331_v52 = vpop.f32.mrb[62].mxu1 }
0x1582   :  { %5355 = vrot.lane.b32.xlu0 %v5331_v52, %s7006_s3  ;;  %v5255_v54 = vpop.f32.mrb[52].mxu0  ;;  %v6571_v56 = vpop.f32.mrb[63].mxu1 }
0x1583   :  { %5353 = vrot.lane.b32.xlu1 %v5255_v54, %s7006_s3  ;;  %v6566_v57 = vpop.f32.mrb[53].mxu0 }
0x15ec   :  { %v5340_v58 = vpop.permute.xlu0 %5339 }
0x15ed   :  { %v5338_v59 = vpop.permute.xlu1 %5337  ;;  %v5360_v31 = vsel %vm332_vm2, %v4875_v21, %v5340_v58 }
0x15ee   :  { %v5359_v63 = vsel %vm332_vm2, %v4799_v48, %v5338_v59  ;;  %v5678_v59 = vld [vmem:[%s7163_s4] sm:$0xff] }
0x15f0   :  { %v5348_v61 = vpop.permute.xlu0 %5347 }
0x15f1   :  { %v5346_v62 = vpop.permute.xlu1 %5345  ;;  %v5362_v4 = vsel %vm1661_vm3, %v5360_v31, %v5348_v61  ;;  %v5679_v61 = vld [vmem:[%s7163_s4 + $0x8] sm:$0xff] }
0x15f2   :  { %v5361_v2 = vsel %vm1661_vm3, %v5359_v63, %v5346_v62  ;;  %v5680_v62 = vld [vmem:[%s7163_s4 + $0x10] sm:$0xff]  ;;  %v6752_v63 = vpack.c.bf16 %v5679_v61, %v5678_v59 }
0x15f4   :  { %v5356_v30 = vpop.permute.xlu0 %5355 }
0x15f5   :  { %v5354_v3 = vpop.permute.xlu1 %5353  ;;  %v5364_v8 = vsel %vm1664_vm4, %v5362_v4, %v5356_v30  ;;  %v5681_v30 = vld [vmem:[%s7163_s4 + $0x18] sm:$0xff]  ;;  %s7009_s4 = smov [#allocation2]  }
0x15f6   :  { %v5363_v6 = vsel %vm1664_vm4, %v5361_v2, %v5354_v3  ;;  %v6756_v31 = vpack.c.bf16 %v5681_v30, %v5680_v62  ;;  %s5852_s2 = sshll.u32 %s7009_s4, 4  ;;  %s5853_s2 = int_to_ptr.vmem [resolvable:$true] %s5852_s2 }
0x15f7   :  { %6580 = vmatprep.mubr.msk.f32.mxu0 %vm193_vm0, %v5363_v6  ;;  %s6941_s7 = scalar_lea.vmem %s5853_s2, 16  ;;  %s6945_s10 = scalar_lea.vmem %s5853_s2, 32 }
0x15f8   :  { %6581 = vmatmul.mubr.msk.f32.vlgmr.msra.gmra.mrb[54].mxu0 %vm193_vm0, %v5364_v8  ;;  %p6942_p0 = scmp.ne.s32.totalorder %s5853_s2, %s6941_s7  ;;  %p6946_p1 = scmp.lt.s32.totalorder %s5853_s2, %s5853_s2 }
0x15f9   :  { %6739 = vmatpush3.bf16.msra.mxu0 %v6736_v60  ;;  %p6947_p2 = scmp.lt.s32.totalorder %s6945_s10, %s6941_s7 }
0x15fa   :  { %6741 = vmatprep.subr.bf16.mxu0 %v6740_v15 }
0x15fb   :  { %p6948_p3 = por %p6947_p2, %p6946_p1 }
0x15fd   :  { %6743 = vmatpush3.bf16.msra.mxu0 %v6740_v15  ;;  %p6949_p4 = pnand %p6948_p3, %p6942_p0 }
0x15fe   :  { %6745 = vmatprep.subr.bf16.mxu0 %v6744_v19 }
0x1601   :  { %6747 = vmatpush3.bf16.msra.mxu0 %v6744_v19 }
0x1602   :  { %6749 = vmatprep.subr.bf16.mxu0 %v6748_v39 }
0x1605   :  { %6751 = vmatpush3.bf16.msra.mxu0 %v6748_v39 }
0x16cb   :  { %v6582_v47 = vpop.f32.mrb[54].mxu0 }
0x16cc   :  { %v7918_v0 = vadd.f32 %v6582_v47, %v7712_v5  ;;  %v5437_v9 = vpop.f32.mrb[55].mxu0  ;;  %v5473_v5 = vld [vmem:[%s8013_s26] sm:$0xff] }
0x16cd   :  { %v7921_v32 = vadd.f32 %v5437_v9, %v7715_v46  ;;  %v5474_v46 = vld [vmem:[%s8013_s26 + $0x8] sm:$0xff]  ;;  %v6002_v9 = vld [vmem:[%s7158_s20] ss:$0 sm:$0xff]  ;;  %s8016_s20 = sld [smem:[#allocation6_spill]] }
0x16ce   :  { %v5450_v25 = vmul.f32 %v7918_v0, %v7918_v0  ;;  %v6728_v28 = vpack.c.bf16 %v5474_v46, %v5473_v5 }
0x16cf   :  { %v5449_v29 = vmul.f32 %v7921_v32, %v7921_v32 }
0x16d0   :  { %v5454_v18 = vsel %vm193_vm0, %v5450_v25, 0.0  ;;  %6729 = vmatprep.subr.bf16.mxu1 %v6728_v28 }
0x16d1   :  { %5455 = vadd.xlane.f32.xlu0 %v5454_v18  ;;  %v5451_v36 = vsel %vm193_vm0, %v5449_v29, 0.0  ;;  %6731 = vmatpush3.bf16.msra.mxu1 %v6728_v28 }
0x16d2   :  { %5452 = vadd.xlane.f32.xlu1 %v5451_v36  ;;  %6733 = vmatprep.subr.bf16.mxu1 %v6732_v11 }
0x16d5   :  { %6735 = vmatpush3.bf16.msra.mxu1 %v6732_v11 }
0x16d6   :  { %6753 = vmatprep.subr.bf16.mxu1 %v6752_v63 }
0x175e   :  { %v5456_v26 = vpop.xlane.xlu0 %5455 }
0x175f   :  { %v5458_v44 = vmul.f32 0.03125, %v5456_v26  ;;  %v5453_v20 = vpop.xlane.xlu1 %5452 }
0x1760   :  { %v5457_v17 = vmul.f32 0.03125, %v5453_v20  ;;  %v5790_v20 = vld [vmem:[%s8016_s20 + $0x8] sm:$0xff] }
0x1761   :  { %v5460_v50 = vadd.f32 1e-06, %v5458_v44  ;;  %vm5812_vm9 = vcmp.ge.s32.totalorder %v5790_v20, 0 }
0x1762   :  { %v5459_v21 = vadd.f32 1e-06, %v5457_v17  ;;  %v5789_v17 = vld [vmem:[%s8016_s20] sm:$0xff] }
0x1763   :  { %6923 = vrsqrt.f32 %v5460_v50  ;;  %vm5811_vm10 = vcmp.ge.s32.totalorder %v5789_v17, 0 }
0x1764   :  { %6925 = vrsqrt.f32 %v5459_v21 }
0x176d   :  { %v6924_v48 = vpop.eup %6923 }
0x176e   :  { %v6926_v22 = vpop.eup %6925  ;;  %v5464_v23 = vmul.f32 %v6924_v48, %v7918_v0 }
0x176f   :  { %v5463_v24 = vmul.f32 %v6926_v22, %v7921_v32 }
0x1770   :  { %v5472_v35 = vmul.f32 %v5997_v53, %v5464_v23 }
0x1771   :  { %v5471_v34 = vmul.f32 %v5997_v53, %v5463_v24 }
0x1773   :  { %6591 = vmatprep.mubr.msk.f32.mxu1 %vm193_vm0, %v5471_v34 }
0x1774   :  { %6592 = vmatmul.mubr.msk.f32.vlgmr.msra.gmra.mrb[64].mxu1 %vm193_vm0, %v5472_v35 }
0x1775   :  { %6755 = vmatpush3.bf16.msra.mxu1 %v6752_v63 }
0x1776   :  { %6757 = vmatprep.subr.bf16.mxu1 %v6756_v31 }
0x1779   :  { %6759 = vmatpush3.bf16.msra.mxu1 %v6756_v31 }
0x1847   :  { %v6593_v40 = vpop.f32.mrb[64].mxu1 }
0x1848   :  { %v5549_v1 = vpop.f32.mrb[65].mxu1  ;;  %v5559_v43 = vmax.f32 %v6593_v40, 0.0 }
0x1849   :  { %v5558_v42 = vmax.f32 %v5549_v1, 0.0 }
0x184b   :  { %6610 = vmatprep.mubr.msk.f32.mxu0 %vm1870_vm5, %v5558_v42 }
0x184c   :  { %6611 = vmatmul.mubr.msk.f32.vlgmr.msra.gmra.mrb[56].mxu0 %vm1870_vm5, %v5559_v43 }
0x191f   :  { %v6612_v45 = vpop.f32.mrb[56].mxu0 }
0x1920   :  { %v5650_v49 = vadd.f32 %v6612_v45, %v7918_v0  ;;  %v5640_v51 = vpop.f32.mrb[57].mxu0 }
0x1921   :  { %v5649_v52 = vadd.f32 %v5640_v51, %v7921_v32  ;;  %v6007_v51 = vsel %vm5811_vm10, 1.0, %v6998_v27 }
0x1922   :  { %v5653_v54 = vmul.f32 %v5650_v49, %v5650_v49 }
0x1923   :  { %v5652_v56 = vmul.f32 %v5649_v52, %v5649_v52 }
0x1924   :  { %v5657_v57 = vsel %vm193_vm0, %v5653_v54, 0.0  ;;  %v5829_v54 = vsel %vm5819_vm11, %v6007_v51, 0.0 }
0x1925   :  { %5658 = vadd.xlane.f32.xlu1 %v5657_v57  ;;  %v5654_v58 = vsel %vm193_vm0, %v5652_v56, 0.0 }
0x1926   :  { %5655 = vadd.xlane.f32.xlu0 %v5654_v58 }
0x19b2   :  { %v5659_v2 = vpop.xlane.xlu1 %5658 }
0x19b3   :  { %v5661_v3 = vmul.f32 0.03125, %v5659_v2  ;;  %v5656_v4 = vpop.xlane.xlu0 %5655 }
0x19b4   :  { %v5660_v6 = vmul.f32 0.03125, %v5656_v4 }
0x19b5   :  { %v5663_v8 = vadd.f32 1e-06, %v5661_v3 }
0x19b6   :  { %v5662_v47 = vadd.f32 1e-06, %v5660_v6 }
0x19b7   :  { %6927 = vrsqrt.f32 %v5663_v8 }
0x19b8   :  { %6929 = vrsqrt.f32 %v5662_v47 }
0x19c1   :  { %v6928_v0 = vpop.eup %6927 }
0x19c2   :  { %v6930_v32 = vpop.eup %6929  ;;  %v5667_v25 = vmul.f32 %v6928_v0, %v5650_v49 }
0x19c3   :  { %v5666_v29 = vmul.f32 %v6930_v32, %v5649_v52 }
0x19c4   :  { %v5675_v18 = vmul.f32 %v6002_v9, %v5667_v25 }
0x19c5   :  { %v5674_v36 = vmul.f32 %v6002_v9, %v5666_v29 }
0x19c6   :  { %v5677_v46 = vmul.f32 0.17677669, %v5675_v18 }
0x19c7   :  { %v5676_v5 = vmul.f32 0.17677669, %v5674_v36 }
0x19c9   :  { %6621 = vmatprep.mubr.msk.f32.mxu1 %vm193_vm0, %v5676_v5 }
0x19ca   :  { %6622 = vmatmul.mubr.msk.f32.vlgmr.msra.gmra.mrb[66].mxu1 %vm193_vm0, %v5677_v46 }
0x1a9d   :  { %v6623_v41 = vpop.f32.mrb[66].mxu1 }
0x1a9e   :  { %v5754_v28 = vpop.f32.mrb[67].mxu1  ;;  %v5766_v10 = vsel %vm1870_vm5, %v6623_v41, -inf }
0x1a9f   :  { %5767 = vmax.xlane.f32.xlu1 %v5766_v10  ;;  %v5763_v11 = vsel %vm1870_vm5, %v5754_v28, -inf }
0x1aa0   :  { %5764 = vmax.xlane.f32.xlu0 %v5763_v11 }
0x1b2c   :  { %v5768_v13 = vpop.xlane.xlu1 %5767 }
0x1b2d   :  { %v5770_v55 = vsub.f32 %v6623_v41, %v5768_v13  ;;  %v5765_v60 = vpop.xlane.xlu0 %5764 }
0x1b2e   :  { %v5769_v14 = vsub.f32 %v5754_v28, %v5765_v60 }
0x1b2f   :  { %v5773_v15 = vmul.f32 1.442695, %v5770_v55 }
0x1b30   :  { %v5771_v33 = vmul.f32 1.442695, %v5769_v14 }
0x1b31   :  { %6931 = vpow2.f32 %v5773_v15 }
0x1b32   :  { %6933 = vpow2.f32 %v5771_v33 }
0x1b3b   :  { %v6932_v16 = vpop.eup %6931 }
0x1b3c   :  { %v6934_v19 = vpop.eup %6933  ;;  %v5778_v26 = vsel %vm1870_vm5, %v6932_v16, 0.0 }
0x1b3d   :  { %5779 = vadd.xlane.f32.xlu1 %v5778_v26  ;;  %v5775_v44 = vsel %vm1870_vm5, %v6934_v19, 0.0 }
0x1b3e   :  { %5776 = vadd.xlane.f32.xlu0 %v5775_v44 }
0x1b4e   :  { %5795 = vperm.xlu1 %6806, %v5790_v20  }
0x1b54   :  { %5792 = vperm.xlu0 %6805, %v5789_v17  }
0x1bca   :  { %v5780_v50 = vpop.xlane.xlu1 %5779 }
0x1bcb   :  { %6935 = vlog2.f32 %v5780_v50  ;;  %v5777_v21 = vpop.xlane.xlu0 %5776 }
0x1bcc   :  { %6937 = vlog2.f32 %v5777_v21 }
0x1bce   :  { %v5796_v48 = vpop.permute.xlu1 %5795 }
0x1bcf   :  { %vm5798_vm7 = vcmp.eq.s32.totalorder %v7601_v7, %v5796_v48 }
0x1bd0   :  { %v6006_v38 = vsel %vm5798_vm7, 1.0, %v6998_v27 }
0x1bd3   :  { %v5793_v22 = vpop.permute.xlu0 %5792 }
0x1bd4   :  { %vm5797_vm8 = vcmp.eq.s32.totalorder %v7601_v7, %v5793_v22  ;;  %v6008_v7 = vsel %vm5812_vm9, 1.0, %v6998_v27 }
0x1bd5   :  { %v6936_v53 = vpop.eup %6935  ;;  %v6005_v40 = vsel %vm5797_vm8, 1.0, %v6998_v27  ;;  %v5830_v52 = vsel %vm5819_vm11, %v6008_v7, 0.0 }
0x1bd6   :  { %v6938_v23 = vpop.eup %6937  ;;  %v5784_v24 = vmul.f32 0.6931472, %v6936_v53  ;;  %v5831_v56 = vadd.f32 %v5830_v52, %v5829_v54 }
0x1bd7   :  { %v5782_v34 = vmul.f32 0.6931472, %v6938_v23 }
0x1bd8   :  { %v5786_v35 = vadd.f32 %v5784_v24, %v5768_v13  ;;  %v5832_v57 = vrot.slane %v5831_v56, 4 }
0x1bd9   :  { %v5785_v37 = vadd.f32 %v5782_v34, %v5765_v60 }
0x1bda   :  { %v5788_v39 = vsub.f32 %v6623_v41, %v5786_v35  ;;  %v5833_v58 = vadd.f32 %v5832_v57, %v5831_v56 }
0x1bdb   :  { %v5787_v1 = vsub.f32 %v5754_v28, %v5785_v37 }
0x1bdc   :  { %v5804_v42 = vmul.f32 %v6006_v38, %v5788_v39  ;;  %v5834_v59 = vrot.slane %v5833_v58, 2 }
0x1bdd   :  { %v5803_v43 = vmul.f32 %v6005_v40, %v5787_v1 }
0x1bde   :  { %v5808_v45 = vsel %vm1870_vm5, %v5804_v42, 0.0  ;;  %v5835_v61 = vadd.f32 %v5834_v59, %v5833_v58 }
0x1bdf   :  { %5809 = vadd.xlane.f32.xlu0 %v5808_v45  ;;  %v5805_v49 = vsel %vm1870_vm5, %v5803_v43, 0.0 }
0x1be0   :  { %5806 = vadd.xlane.f32.xlu1 %v5805_v49  ;;  %v5836_v62 = vrot.slane %v5835_v61, 1 }
0x1be2   :  { %v5837_v30 = vadd.f32 %v5836_v62, %v5835_v61 }
0x1be4   :  { %v5839_v6 = vmax.f32 %v5837_v30, 1.0 }
0x1be6   :  { %6939 = vrcp.f32 %v5839_v6 }
0x1bf0   :  { %v6940_v18 = vpop.eup %6939 }
0x1c6c   :  { %v5810_v63 = vpop.xlane.xlu0 %5809 }
0x1c6d   :  { %v5818_v31 = vmul.f32 %v6008_v7, %v5810_v63  ;;  %v5807_v2 = vpop.xlane.xlu1 %5806 }
0x1c6e   :  { %v5817_v3 = vmul.f32 %v6007_v51, %v5807_v2 }
0x1c6f   :  { %v5821_v4 = vsel %vm5819_vm11, %v5818_v31, 0.0 }
0x1c70   :  { %v5820_v27 = vsel %vm5819_vm11, %v5817_v3, 0.0 }
0x1c71   :  { %v5822_v8 = vadd.f32 %v5821_v4, %v5820_v27 }
0x1c73   :  { %v5823_v47 = vrot.slane %v5822_v8, 4 }
0x1c75   :  { %v5824_v0 = vadd.f32 %v5823_v47, %v5822_v8 }
0x1c77   :  { %v5825_v9 = vrot.slane %v5824_v0, 2 }
0x1c79   :  { %v5826_v32 = vadd.f32 %v5825_v9, %v5824_v0 }
0x1c7b   :  { %v5827_v25 = vrot.slane %v5826_v32, 1 }
0x1c7d   :  { %v5828_v29 = vadd.f32 %v5827_v25, %v5826_v32 }
0x1c7f   :  { %v5838_v36 = vsub.f32 0.0, %v5828_v29 }
0x1c81   :  { %v5841_v5 = vmul.f32 %v6940_v18, %v5838_v36 }
0x1c83   :  { %5843 = vst.msk [vmem:[#allocation2] sm:$0x1] %vm5842_vm12, %v5841_v5 }
0x1c84   :  { %6952 = shalt.err (!%p6949_p4)
}
0x1c85   :  { %s6953_s11 = scalar_lea.hbm %s7173_s6, 16 }
0x1c86   :  { %p6954_p5 = scmp.ne.s32.totalorder %s7173_s6, %s6953_s11  ;;  %p6957_p6 = scmp.lt.u32.totalorder %s6953_s11, %s7173_s6 }
0x1c88   :  { %p6959_p7 = pnand %p6957_p6, %p6954_p5 }
0x1c8a   :  { %6962 = shalt.err (!%p6959_p7)
}
0x1c8b   :  { %5855 = dma.vmem_to_hbm [thread:$0]  %s5853_s2, 16, %s7173_s6, [#allocation3]  }
0x1c8c   :  { %6963 = dma.done.wait [#allocation3], 16  }
0x1c8d   :  { %6964 = vsyncadd [#allocation3], 4294967280 }
0x1c8e   :  { %5861 = vsyncpa [#allocation3], 1 }

</bundles_post_ra>
